<compile_context>
chip_gen: v7x
topology: tpu7x:2x2x1
jax: 0.10.0
libtpu: 0.0.40
codegen_flags: <defaults>
</compile_context>

<pallas_src>
import math

import numpy as np
import jax
import jax.numpy as jnp
from jax.experimental import pallas as pl
from jax.experimental.pallas import tpu as pltpu


# -----------------------------------------------------------------------------
# Pallas kernel
# -----------------------------------------------------------------------------
def bassenji_kernel(
        x_ref,
        w1_ref, b1_ref, s1_ref, z1_ref,
        w2_ref, b2_ref, s2_ref, z2_ref,
        w3_ref, b3_ref, s3_ref, z3_ref,
        w4_ref, b4_ref, s4_ref, z4_ref,
        w5_ref, b5_ref, s5_ref, z5_ref,
        w6a_ref, w6b_ref, b6_ref, s6_ref, z6_ref,
        w7a_ref, w7b_ref, w7c_ref, b7_ref, s7_ref, z7_ref,
        w8a_ref, w8b_ref, w8c_ref, w8d_ref, b8_ref,
        out_ref):
    f32 = jnp.float32
    bf16 = jnp.bfloat16

    def make_taps(h, offsets):
        """h: (n, c) f32 at L3 row resolution.  Returns {off: bf16 (n, c)} whose
        row r equals h[r + off] (zero outside [0, n)); None if entirely zero.
        Taps are in-register sublane shifts: one 8-aligned zero-halo concat per
        source plus a static slice per offset -- no scratch stores/reloads and
        no strided loads."""
        n, c = h.shape
        halo = max(abs(o) for o in offsets)
        halo = -(-halo // 8) * 8
        ext = None
        taps = {}
        for off in sorted(set(offsets)):
            if off == 0:
                taps[off] = h.astype(bf16)
            elif abs(off) >= n:
                taps[off] = None            # tap lies entirely in the zero padding
            else:
                if ext is None:
                    z = jnp.zeros((halo, c), f32)
                    ext = jnp.concatenate([z, h, z], axis=0)
                taps[off] = ext[halo + off:halo + off + n, :].astype(bf16)
        return taps

    def mm(acc, a, w):
        p = jnp.dot(a, w, preferred_element_type=f32)
        return p if acc is None else acc + p

    def bn_relu(acc, b_r, s_r, z_r):
        y = jnp.maximum(acc + b_r[...], 0.0)
        return y * s_r[...] + z_r[...]

    x64 = x_ref[0]                                      # (L3, 64): 16 pos x 4 ch

    # ---- layer 1: Conv1d(4->32, K=12, same) + ReLU + MaxPool(4) + BN --------
    # pool-window-major: 16 (pool-slot, phase) matmuls against pre-scattered
    # (64, 32) weights; all-zero weight blocks are skipped at trace time.
    t1 = make_taps(x64, (-1, 0, 1))
    g1 = []
    for u in range(4):
        best = None
        for o in range(4):
            t0 = 4 * u + o - 5                          # first tap offset from 16*r
            acc = None
            for j in (-1, 0, 1):
                if t0 > 16 * j + 15 or t0 + 11 < 16 * j:
                    continue                            # weight block is all zero
                if t1[j] is None:
                    continue                            # tap fully in zero halo
                acc = mm(acc, t1[j], w1_ref[(4 * u + o) * 3 + (j + 1)])
            best = acc if best is None else jnp.maximum(best, acc)
        g1.append(bn_relu(best, b1_ref, s1_ref, z1_ref))    # 4 x (L3, 32) f32

    # ---- layer 2: Conv1d(32->32, K=5, same) + ReLU + MaxPool(2) + BN --------
    t2 = [make_taps(g, (-1, 0, 1)) for g in g1]

    def l1pos(t):                                       # L1 position 4r + t
        return t2[t % 4][t // 4]

    g2 = []
    for v in range(2):
        best = None
        for o in range(2):
            acc = None
            for k in range(5):
                src = l1pos(2 * v + o - 2 + k)
                if src is None:
                    continue
                acc = mm(acc, src, w2_ref[k])
            best = acc if best is None else jnp.maximum(best, acc)
        g2.append(bn_relu(best, b2_ref, s2_ref, z2_ref))     # 2 x (L3, 32)

    # ---- layer 3: Conv1d(32->32, K=5, same) + ReLU + MaxPool(2) + BN --------
    t3 = [make_taps(g, (-1, 0, 1)) for g in g2]

    def l2pos(t):                                       # L2 position 2r + t
        return t3[t % 2][t // 2]

    best = None
    for o in range(2):
        acc = None
        for k in range(5):
            src = l2pos(o - 2 + k)
            if src is None:
                continue
            acc = mm(acc, src, w3_ref[k])
        best = acc if best is None else jnp.maximum(best, acc)
    h3 = bn_relu(best, b3_ref, s3_ref, z3_ref)               # (L3, 32)

    # ---- dilated conv blocks (no pooling): conv + ReLU + BN -----------------
    # Residual concats are replaced by per-source weight splits + accumulation.
    def dilated_block(srcs, w_refs, b_r, s_r, z_r, d):
        offs = [d * (k - 2) for k in range(5)]
        acc = None
        for src, w_ref in zip(srcs, w_refs):
            taps = make_taps(src, offs)
            for k in range(5):
                t = taps[offs[k]]
                if t is None:
                    continue
                acc = mm(acc, t, w_ref[k])
        return bn_relu(acc, b_r, s_r, z_r)

    h4 = dilated_block([h3], [w4_ref], b4_ref, s4_ref, z4_ref, 2)        # (L3,16)
    y5 = dilated_block([h4], [w5_ref], b5_ref, s5_ref, z5_ref, 4)
    y6 = dilated_block([h4, y5], [w6a_ref, w6b_ref],
                       b6_ref, s6_ref, z6_ref, 8)
    y7 = dilated_block([h4, y5, y6], [w7a_ref, w7b_ref, w7c_ref],
                       b7_ref, s7_ref, z7_ref, 16)

    # ---- final 1x1 conv (64 -> 1) + ReLU, lane-dense (1, L3) output ---------
    acc = None
    for src, w_ref in zip((h4, y5, y6, y7), (w8a_ref, w8b_ref, w8c_ref, w8d_ref)):
        p = jax.lax.dot_general(w_ref[...], src.astype(bf16),
                                (((1,), (1,)), ((), ())),
                                preferred_element_type=f32)          # (1, L3)
        acc = p if acc is None else acc + p
    out_ref[0] = jnp.maximum(acc + b8_ref[...], 0.0).astype(out_ref.dtype)


# -----------------------------------------------------------------------------
# Wrapper
# -----------------------------------------------------------------------------
def _full_spec(a):
    return pl.BlockSpec(a.shape, lambda b, _n=a.ndim: (0,) * _n)


def bassenji_pallas(params, x):
    """x: (B, L, 4) float32 -> (B, L // 16) float32 (eval-mode forward)."""
    B, L, Cin = x.shape
    assert Cin == 4 and L % 16 == 0
    L3 = L // 16

    # position-packed input: row r holds raw positions 16r..16r+15 (4 ch each)
    xp = x.reshape(B, L3, 64)

    # ------------------ host-side weight preparation (tiny) ------------------
    def w_np(i):
        return np.asarray(params[i]['w'], np.float32)

    # layer 1: scatter (Co,Ci,K=12) into 16 (pool-slot u, phase o) weights of
    # shape (64, 32) per row-shift block j in {-1,0,+1}; index = (4u+o)*3+(j+1).
    w1 = w_np(0)                                        # (32, 4, 12)
    W1 = np.zeros((48, 64, 32), np.float32)
    for u in range(4):
        for o in range(4):
            for k in range(12):
                t = 4 * u + o - 5 + k                   # tap offset from 16*r
                j, m = t // 16, t % 16
                W1[(4 * u + o) * 3 + (j + 1), 4 * m:4 * m + 4, :] += w1[:, :, k].T

    def per_tap(i):                                     # (Co,Ci,K) -> (K,Ci,Co)
        return np.transpose(w_np(i), (2, 1, 0))

    W2, W3, W4, W5 = per_tap(1), per_tap(2), per_tap(3), per_tap(4)
    W6, W7 = per_tap(5), per_tap(6)                     # (5,32,16), (5,48,16)
    w8 = w_np(7)[:, :, 0]                               # (1, 64)

    bf16 = jnp.bfloat16

    def wt(a):
        return jnp.asarray(a, bf16)

    def vec(name, i):
        return jnp.asarray(np.asarray(params[i][name], np.float32).reshape(1, -1))

    args = [
        xp,
        wt(W1), vec('b', 0), vec('scale', 0), vec('shift', 0),
        wt(W2), vec('b', 1), vec('scale', 1), vec('shift', 1),
        wt(W3), vec('b', 2), vec('scale', 2), vec('shift', 2),
        wt(W4), vec('b', 3), vec('scale', 3), vec('shift', 3),
        wt(W5), vec('b', 4), vec('scale', 4), vec('shift', 4),
        wt(W6[:, :16]), wt(W6[:, 16:]),
        vec('b', 5), vec('scale', 5), vec('shift', 5),
        wt(W7[:, :16]), wt(W7[:, 16:32]), wt(W7[:, 32:]),
        vec('b', 6), vec('scale', 6), vec('shift', 6),
        wt(w8[:, :16]), wt(w8[:, 16:32]), wt(w8[:, 32:48]), wt(w8[:, 48:]),
        jnp.asarray(np.asarray(params[7]['b'], np.float32).reshape(1, 1)),
    ]

    in_specs = [pl.BlockSpec((1, L3, 64), lambda b: (b, 0, 0))]
    in_specs += [_full_spec(a) for a in args[1:]]

    # ------------------ VMEM budget & per-device cap -------------------------
    const_bytes = sum(int(a.size) * a.dtype.itemsize for a in args[1:])
    io_bytes = 2 * (L3 * 64 * 4) + 2 * (L3 * 4)         # double-buffered in/out
    act_bytes = 72 * L3 * 64 * 4                        # live (L3, <=64) slabs
    est_bytes = 2 * const_bytes + io_bytes + act_bytes + (1 << 20)
    try:
        vmem_cap = int(getattr(pltpu.get_tpu_info(), 'vmem_capacity_bytes',
                               64 << 20))
    except Exception:
        vmem_cap = 64 << 20
    vmem_limit = int(max(min(max(est_bytes, 32 << 20), vmem_cap - (4 << 20)),
                         16 << 20))

    out = pl.pallas_call(
        bassenji_kernel,
        out_shape=jax.ShapeDtypeStruct((B, 1, L3), jnp.float32),
        grid_spec=pltpu.PrefetchScalarGridSpec(
            num_scalar_prefetch=0,
            grid=(B,),
            in_specs=in_specs,
            out_specs=pl.BlockSpec((1, 1, L3), lambda b: (b, 0, 0)),
        ),
        compiler_params=pltpu.CompilerParams(
            dimension_semantics=("parallel",),
            vmem_limit_bytes=vmem_limit,
        ),
    )(*args)
    return out[:, 0, :]


# -----------------------------------------------------------------------------
# Deterministic parameter construction (synthetic weights, eval-mode BN folding)
# -----------------------------------------------------------------------------
def make_params(key):
    # (Cin, Cout, K, dilation, has_bn)
    specs = [
        (4, 32, 12, 1, True),
        (32, 32, 5, 1, True),
        (32, 32, 5, 1, True),
        (32, 16, 5, 2, True),
        (16, 16, 5, 4, True),
        (32, 16, 5, 8, True),
        (48, 16, 5, 16, True),
        (64, 1, 1, 1, False),
    ]
    params = []
    for (ci, co, k, d, has_bn) in specs:
        key, kw, kb, kg, kbe, km, kv = jax.random.split(key, 7)
        p = {
            'w': jax.random.normal(kw, (co, ci, k), jnp.float32) / math.sqrt(ci * k),
            'b': 0.05 * jax.random.normal(kb, (co,), jnp.float32),
            'dilation': d,
        }
        if has_bn:
            gamma = 1.0 + 0.1 * jax.random.normal(kg, (co,), jnp.float32)
            beta = 0.1 * jax.random.normal(kbe, (co,), jnp.float32)
            mean = 0.1 * jax.random.normal(km, (co,), jnp.float32)
            var = jax.random.uniform(kv, (co,), jnp.float32, minval=0.5, maxval=1.5)
            scale = gamma / jnp.sqrt(var + 1e-5)
            p['scale'] = scale
            p['shift'] = beta - mean * scale
        params.append(p)
    return params


# -----------------------------------------------------------------------------
# Pure-JAX (XLA) reference, mirrors the PyTorch forward in eval mode
# -----------------------------------------------------------------------------
def bassenji_reference(params, x):
    h = jnp.transpose(x, (0, 2, 1))                     # (B, 4, L)  (torch NCL)

    def conv(h, p):
        w, b, d = p['w'], p['b'], p['dilation']
        k = w.shape[2]
        total = d * (k - 1)
        left = total // 2
        out = jax.lax.conv_general_dilated(
            h, w, window_strides=(1,), padding=[(left, total - left)],
            rhs_dilation=(d,), dimension_numbers=('NCH', 'OIH', 'NCH'),
            precision=jax.lax.Precision.HIGHEST)
        return out + b[None, :, None]

    def bn(h, p):
        return h * p['scale'][None, :, None] + p['shift'][None, :, None]

    def pool(h, k):
        B, C, L = h.shape
        return h.reshape(B, C, L // k, k).max(axis=-1)

    relu = lambda v: jnp.maximum(v, 0.0)

    h = bn(pool(relu(conv(h, params[0])), 4), params[0])
    h = bn(pool(relu(conv(h, params[1])), 2), params[1])
    h = bn(pool(relu(conv(h, params[2])), 2), params[2])
    h = bn(relu(conv(h, params[3])), params[3])
    h = jnp.concatenate([h, bn(relu(conv(h, params[4])), params[4])], axis=1)
    h = jnp.concatenate([h, bn(relu(conv(h, params[5])), params[5])], axis=1)
    h = jnp.concatenate([h, bn(relu(conv(h, params[6])), params[6])], axis=1)
    h = relu(conv(h, params[7]))                        # (B, 1, L/16)
    return h.reshape(h.shape[0], -1)                    # Flatten


# -----------------------------------------------------------------------------
if __name__ == "__main__":
    key = jax.random.PRNGKey(0)
    kp, kx = jax.random.split(key)

    B, L = 2, 128                                       # input: (batch, seq, 4 tracks)
    params = make_params(kp)
    x = jax.random.normal(kx, (B, L, 4), jnp.float32)

    out = jax.block_until_ready(bassenji_pallas(params, x))
    ref = jax.block_until_ready(bassenji_reference(params, x))

    assert out.shape == (B, L // 16), out.shape
    err = float(jnp.max(jnp.abs(out - ref)))
    scale = max(1.0, float(jnp.max(jnp.abs(ref))))
    # Kernel matmuls run with bf16 operands (f32 accumulate) vs. the
    # HIGHEST-precision XLA reference; tolerance sized accordingly.
    assert err <= 0.1 * scale, f"max abs error {err} vs reference scale {scale}"

    print("KERNEL_OK")
</pallas_src>

<mosaic_0001>
module attributes {stable_mosaic.version = 11 : i64} {
  func.func @bassenji_kernel(%arg0: i32, %arg1: memref<1x8x64xf32, #tpu.memory_space<vmem>>, %arg2: memref<48x64x32xbf16, #tpu.memory_space<vmem>>, %arg3: memref<1x32xf32, #tpu.memory_space<vmem>>, %arg4: memref<1x32xf32, #tpu.memory_space<vmem>>, %arg5: memref<1x32xf32, #tpu.memory_space<vmem>>, %arg6: memref<5x32x32xbf16, #tpu.memory_space<vmem>>, %arg7: memref<1x32xf32, #tpu.memory_space<vmem>>, %arg8: memref<1x32xf32, #tpu.memory_space<vmem>>, %arg9: memref<1x32xf32, #tpu.memory_space<vmem>>, %arg10: memref<5x32x32xbf16, #tpu.memory_space<vmem>>, %arg11: memref<1x32xf32, #tpu.memory_space<vmem>>, %arg12: memref<1x32xf32, #tpu.memory_space<vmem>>, %arg13: memref<1x32xf32, #tpu.memory_space<vmem>>, %arg14: memref<5x32x16xbf16, #tpu.memory_space<vmem>>, %arg15: memref<1x16xf32, #tpu.memory_space<vmem>>, %arg16: memref<1x16xf32, #tpu.memory_space<vmem>>, %arg17: memref<1x16xf32, #tpu.memory_space<vmem>>, %arg18: memref<5x16x16xbf16, #tpu.memory_space<vmem>>, %arg19: memref<1x16xf32, #tpu.memory_space<vmem>>, %arg20: memref<1x16xf32, #tpu.memory_space<vmem>>, %arg21: memref<1x16xf32, #tpu.memory_space<vmem>>, %arg22: memref<5x16x16xbf16, #tpu.memory_space<vmem>>, %arg23: memref<5x16x16xbf16, #tpu.memory_space<vmem>>, %arg24: memref<1x16xf32, #tpu.memory_space<vmem>>, %arg25: memref<1x16xf32, #tpu.memory_space<vmem>>, %arg26: memref<1x16xf32, #tpu.memory_space<vmem>>, %arg27: memref<5x16x16xbf16, #tpu.memory_space<vmem>>, %arg28: memref<5x16x16xbf16, #tpu.memory_space<vmem>>, %arg29: memref<5x16x16xbf16, #tpu.memory_space<vmem>>, %arg30: memref<1x16xf32, #tpu.memory_space<vmem>>, %arg31: memref<1x16xf32, #tpu.memory_space<vmem>>, %arg32: memref<1x16xf32, #tpu.memory_space<vmem>>, %arg33: memref<1x16xbf16, #tpu.memory_space<vmem>>, %arg34: memref<1x16xbf16, #tpu.memory_space<vmem>>, %arg35: memref<1x16xbf16, #tpu.memory_space<vmem>>, %arg36: memref<1x16xbf16, #tpu.memory_space<vmem>>, %arg37: memref<1x1xf32, #tpu.memory_space<vmem>>, %arg38: memref<1x1x8xf32, #tpu.memory_space<vmem>>) attributes {dimension_semantics = [#tpu.dimension_semantics<parallel>], iteration_bounds = array<i64: 2>, scalar_prefetch = 0 : i64, scratch_operands = 0 : i64, tpu.core_type = #tpu.core_type<tc>, window_params = [{transform_indices = @transform_0, window_bounds = array<i64: 1, 8, 64>}, {pipeline_mode = #tpu.pipeline_mode<synchronous>, transform_indices = @transform_1, window_bounds = array<i64: 48, 64, 32>}, {pipeline_mode = #tpu.pipeline_mode<synchronous>, transform_indices = @transform_2, window_bounds = array<i64: 1, 32>}, {pipeline_mode = #tpu.pipeline_mode<synchronous>, transform_indices = @transform_3, window_bounds = array<i64: 1, 32>}, {pipeline_mode = #tpu.pipeline_mode<synchronous>, transform_indices = @transform_4, window_bounds = array<i64: 1, 32>}, {pipeline_mode = #tpu.pipeline_mode<synchronous>, transform_indices = @transform_5, window_bounds = array<i64: 5, 32, 32>}, {pipeline_mode = #tpu.pipeline_mode<synchronous>, transform_indices = @transform_6, window_bounds = array<i64: 1, 32>}, {pipeline_mode = #tpu.pipeline_mode<synchronous>, transform_indices = @transform_7, window_bounds = array<i64: 1, 32>}, {pipeline_mode = #tpu.pipeline_mode<synchronous>, transform_indices = @transform_8, window_bounds = array<i64: 1, 32>}, {pipeline_mode = #tpu.pipeline_mode<synchronous>, transform_indices = @transform_9, window_bounds = array<i64: 5, 32, 32>}, {pipeline_mode = #tpu.pipeline_mode<synchronous>, transform_indices = @transform_10, window_bounds = array<i64: 1, 32>}, {pipeline_mode = #tpu.pipeline_mode<synchronous>, transform_indices = @transform_11, window_bounds = array<i64: 1, 32>}, {pipeline_mode = #tpu.pipeline_mode<synchronous>, transform_indices = @transform_12, window_bounds = array<i64: 1, 32>}, {pipeline_mode = #tpu.pipeline_mode<synchronous>, transform_indices = @transform_13, window_bounds = array<i64: 5, 32, 16>}, {pipeline_mode = #tpu.pipeline_mode<synchronous>, transform_indices = @transform_14, window_bounds = array<i64: 1, 16>}, {pipeline_mode = #tpu.pipeline_mode<synchronous>, transform_indices = @transform_15, window_bounds = array<i64: 1, 16>}, {pipeline_mode = #tpu.pipeline_mode<synchronous>, transform_indices = @transform_16, window_bounds = array<i64: 1, 16>}, {pipeline_mode = #tpu.pipeline_mode<synchronous>, transform_indices = @transform_17, window_bounds = array<i64: 5, 16, 16>}, {pipeline_mode = #tpu.pipeline_mode<synchronous>, transform_indices = @transform_18, window_bounds = array<i64: 1, 16>}, {pipeline_mode = #tpu.pipeline_mode<synchronous>, transform_indices = @transform_19, window_bounds = array<i64: 1, 16>}, {pipeline_mode = #tpu.pipeline_mode<synchronous>, transform_indices = @transform_20, window_bounds = array<i64: 1, 16>}, {pipeline_mode = #tpu.pipeline_mode<synchronous>, transform_indices = @transform_21, window_bounds = array<i64: 5, 16, 16>}, {pipeline_mode = #tpu.pipeline_mode<synchronous>, transform_indices = @transform_22, window_bounds = array<i64: 5, 16, 16>}, {pipeline_mode = #tpu.pipeline_mode<synchronous>, transform_indices = @transform_23, window_bounds = array<i64: 1, 16>}, {pipeline_mode = #tpu.pipeline_mode<synchronous>, transform_indices = @transform_24, window_bounds = array<i64: 1, 16>}, {pipeline_mode = #tpu.pipeline_mode<synchronous>, transform_indices = @transform_25, window_bounds = array<i64: 1, 16>}, {pipeline_mode = #tpu.pipeline_mode<synchronous>, transform_indices = @transform_26, window_bounds = array<i64: 5, 16, 16>}, {pipeline_mode = #tpu.pipeline_mode<synchronous>, transform_indices = @transform_27, window_bounds = array<i64: 5, 16, 16>}, {pipeline_mode = #tpu.pipeline_mode<synchronous>, transform_indices = @transform_28, window_bounds = array<i64: 5, 16, 16>}, {pipeline_mode = #tpu.pipeline_mode<synchronous>, transform_indices = @transform_29, window_bounds = array<i64: 1, 16>}, {pipeline_mode = #tpu.pipeline_mode<synchronous>, transform_indices = @transform_30, window_bounds = array<i64: 1, 16>}, {pipeline_mode = #tpu.pipeline_mode<synchronous>, transform_indices = @transform_31, window_bounds = array<i64: 1, 16>}, {pipeline_mode = #tpu.pipeline_mode<synchronous>, transform_indices = @transform_32, window_bounds = array<i64: 1, 16>}, {pipeline_mode = #tpu.pipeline_mode<synchronous>, transform_indices = @transform_33, window_bounds = array<i64: 1, 16>}, {pipeline_mode = #tpu.pipeline_mode<synchronous>, transform_indices = @transform_34, window_bounds = array<i64: 1, 16>}, {pipeline_mode = #tpu.pipeline_mode<synchronous>, transform_indices = @transform_35, window_bounds = array<i64: 1, 16>}, {pipeline_mode = #tpu.pipeline_mode<synchronous>, transform_indices = @transform_36, window_bounds = array<i64: 1, 1>}, {transform_indices = @transform_37, window_bounds = array<i64: 1, 1, 8>}]} {
    %c0 = arith.constant 0 : index
    %c0_0 = arith.constant 0 : index
    %c0_1 = arith.constant 0 : index
    %0 = vector.load %arg1[%c0, %c0_0, %c0_1] : memref<1x8x64xf32, #tpu.memory_space<vmem>>, vector<1x8x64xf32>
    %1 = vector.shape_cast %0 : vector<1x8x64xf32> to vector<8x64xf32>
    %cst = arith.constant 0.000000e+00 : f32
    %2 = vector.broadcast %cst : f32 to vector<8x64xf32>
    %3 = tpu.concatenate %2, %1, %2 in 0 : vector<8x64xf32>, vector<8x64xf32>, vector<8x64xf32> -> vector<24x64xf32>
    %4 = vector.extract_strided_slice %3 {offsets = [7, 0], sizes = [8, 64], strides = [1, 1]} : vector<24x64xf32> to vector<8x64xf32>
    %5 = arith.truncf %4 : vector<8x64xf32> to vector<8x64xbf16>
    %6 = arith.truncf %1 : vector<8x64xf32> to vector<8x64xbf16>
    %7 = vector.extract_strided_slice %3 {offsets = [9, 0], sizes = [8, 64], strides = [1, 1]} : vector<24x64xf32> to vector<8x64xf32>
    %8 = arith.truncf %7 : vector<8x64xf32> to vector<8x64xbf16>
    %c0_2 = arith.constant 0 : index
    %c0_3 = arith.constant 0 : index
    %c0_4 = arith.constant 0 : index
    %9 = vector.load %arg2[%c0_2, %c0_3, %c0_4] : memref<48x64x32xbf16, #tpu.memory_space<vmem>>, vector<1x64x32xbf16>
    %10 = vector.shape_cast %9 : vector<1x64x32xbf16> to vector<64x32xbf16>
    %cst_5 = arith.constant dense<0.000000e+00> : vector<8x32xf32>
    %11 = tpu.matmul %5, %10, %cst_5 {dimension_numbers = #tpu.dot_dimension_numbers<[1], [0], [0], [1], [0, 0, 1, 1], [], []>} : vector<8x64xbf16>, vector<64x32xbf16>, vector<8x32xf32> -> vector<8x32xf32>
    %c1 = arith.constant 1 : index
    %c0_6 = arith.constant 0 : index
    %c0_7 = arith.constant 0 : index
    %12 = vector.load %arg2[%c1, %c0_6, %c0_7] : memref<48x64x32xbf16, #tpu.memory_space<vmem>>, vector<1x64x32xbf16>
    %13 = vector.shape_cast %12 : vector<1x64x32xbf16> to vector<64x32xbf16>
    %cst_8 = arith.constant dense<0.000000e+00> : vector<8x32xf32>
    %14 = tpu.matmul %6, %13, %cst_8 {dimension_numbers = #tpu.dot_dimension_numbers<[1], [0], [0], [1], [0, 0, 1, 1], [], []>} : vector<8x64xbf16>, vector<64x32xbf16>, vector<8x32xf32> -> vector<8x32xf32>
    %15 = arith.addf %11, %14 : vector<8x32xf32>
    %c3 = arith.constant 3 : index
    %c0_9 = arith.constant 0 : index
    %c0_10 = arith.constant 0 : index
    %16 = vector.load %arg2[%c3, %c0_9, %c0_10] : memref<48x64x32xbf16, #tpu.memory_space<vmem>>, vector<1x64x32xbf16>
    %17 = vector.shape_cast %16 : vector<1x64x32xbf16> to vector<64x32xbf16>
    %cst_11 = arith.constant dense<0.000000e+00> : vector<8x32xf32>
    %18 = tpu.matmul %5, %17, %cst_11 {dimension_numbers = #tpu.dot_dimension_numbers<[1], [0], [0], [1], [0, 0, 1, 1], [], []>} : vector<8x64xbf16>, vector<64x32xbf16>, vector<8x32xf32> -> vector<8x32xf32>
    %c4 = arith.constant 4 : index
    %c0_12 = arith.constant 0 : index
    %c0_13 = arith.constant 0 : index
    %19 = vector.load %arg2[%c4, %c0_12, %c0_13] : memref<48x64x32xbf16, #tpu.memory_space<vmem>>, vector<1x64x32xbf16>
    %20 = vector.shape_cast %19 : vector<1x64x32xbf16> to vector<64x32xbf16>
    %cst_14 = arith.constant dense<0.000000e+00> : vector<8x32xf32>
    %21 = tpu.matmul %6, %20, %cst_14 {dimension_numbers = #tpu.dot_dimension_numbers<[1], [0], [0], [1], [0, 0, 1, 1], [], []>} : vector<8x64xbf16>, vector<64x32xbf16>, vector<8x32xf32> -> vector<8x32xf32>
    %22 = arith.addf %18, %21 : vector<8x32xf32>
    %23 = arith.maximumf %15, %22 : vector<8x32xf32>
    %c6 = arith.constant 6 : index
    %c0_15 = arith.constant 0 : index
    %c0_16 = arith.constant 0 : index
    %24 = vector.load %arg2[%c6, %c0_15, %c0_16] : memref<48x64x32xbf16, #tpu.memory_space<vmem>>, vector<1x64x32xbf16>
    %25 = vector.shape_cast %24 : vector<1x64x32xbf16> to vector<64x32xbf16>
    %cst_17 = arith.constant dense<0.000000e+00> : vector<8x32xf32>
    %26 = tpu.matmul %5, %25, %cst_17 {dimension_numbers = #tpu.dot_dimension_numbers<[1], [0], [0], [1], [0, 0, 1, 1], [], []>} : vector<8x64xbf16>, vector<64x32xbf16>, vector<8x32xf32> -> vector<8x32xf32>
    %c7 = arith.constant 7 : index
    %c0_18 = arith.constant 0 : index
    %c0_19 = arith.constant 0 : index
    %27 = vector.load %arg2[%c7, %c0_18, %c0_19] : memref<48x64x32xbf16, #tpu.memory_space<vmem>>, vector<1x64x32xbf16>
    %28 = vector.shape_cast %27 : vector<1x64x32xbf16> to vector<64x32xbf16>
    %cst_20 = arith.constant dense<0.000000e+00> : vector<8x32xf32>
    %29 = tpu.matmul %6, %28, %cst_20 {dimension_numbers = #tpu.dot_dimension_numbers<[1], [0], [0], [1], [0, 0, 1, 1], [], []>} : vector<8x64xbf16>, vector<64x32xbf16>, vector<8x32xf32> -> vector<8x32xf32>
    %30 = arith.addf %26, %29 : vector<8x32xf32>
    %31 = arith.maximumf %23, %30 : vector<8x32xf32>
    %c9 = arith.constant 9 : index
    %c0_21 = arith.constant 0 : index
    %c0_22 = arith.constant 0 : index
    %32 = vector.load %arg2[%c9, %c0_21, %c0_22] : memref<48x64x32xbf16, #tpu.memory_space<vmem>>, vector<1x64x32xbf16>
    %33 = vector.shape_cast %32 : vector<1x64x32xbf16> to vector<64x32xbf16>
    %cst_23 = arith.constant dense<0.000000e+00> : vector<8x32xf32>
    %34 = tpu.matmul %5, %33, %cst_23 {dimension_numbers = #tpu.dot_dimension_numbers<[1], [0], [0], [1], [0, 0, 1, 1], [], []>} : vector<8x64xbf16>, vector<64x32xbf16>, vector<8x32xf32> -> vector<8x32xf32>
    %c10 = arith.constant 10 : index
    %c0_24 = arith.constant 0 : index
    %c0_25 = arith.constant 0 : index
    %35 = vector.load %arg2[%c10, %c0_24, %c0_25] : memref<48x64x32xbf16, #tpu.memory_space<vmem>>, vector<1x64x32xbf16>
    %36 = vector.shape_cast %35 : vector<1x64x32xbf16> to vector<64x32xbf16>
    %cst_26 = arith.constant dense<0.000000e+00> : vector<8x32xf32>
    %37 = tpu.matmul %6, %36, %cst_26 {dimension_numbers = #tpu.dot_dimension_numbers<[1], [0], [0], [1], [0, 0, 1, 1], [], []>} : vector<8x64xbf16>, vector<64x32xbf16>, vector<8x32xf32> -> vector<8x32xf32>
    %38 = arith.addf %34, %37 : vector<8x32xf32>
    %39 = arith.maximumf %31, %38 : vector<8x32xf32>
    %c0_27 = arith.constant 0 : index
    %c0_28 = arith.constant 0 : index
    %40 = vector.load %arg3[%c0_27, %c0_28] : memref<1x32xf32, #tpu.memory_space<vmem>>, vector<1x32xf32>
    %41 = vector.broadcast %40 : vector<1x32xf32> to vector<8x32xf32>
    %42 = arith.addf %39, %41 : vector<8x32xf32>
    %cst_29 = arith.constant 0.000000e+00 : f32
    %43 = vector.broadcast %cst_29 : f32 to vector<8x32xf32>
    %44 = arith.maximumf %42, %43 : vector<8x32xf32>
    %c0_30 = arith.constant 0 : index
    %c0_31 = arith.constant 0 : index
    %45 = vector.load %arg4[%c0_30, %c0_31] : memref<1x32xf32, #tpu.memory_space<vmem>>, vector<1x32xf32>
    %46 = vector.broadcast %45 : vector<1x32xf32> to vector<8x32xf32>
    %47 = arith.mulf %44, %46 : vector<8x32xf32>
    %c0_32 = arith.constant 0 : index
    %c0_33 = arith.constant 0 : index
    %48 = vector.load %arg5[%c0_32, %c0_33] : memref<1x32xf32, #tpu.memory_space<vmem>>, vector<1x32xf32>
    %49 = vector.broadcast %48 : vector<1x32xf32> to vector<8x32xf32>
    %50 = arith.addf %47, %49 : vector<8x32xf32>
    %c12 = arith.constant 12 : index
    %c0_34 = arith.constant 0 : index
    %c0_35 = arith.constant 0 : index
    %51 = vector.load %arg2[%c12, %c0_34, %c0_35] : memref<48x64x32xbf16, #tpu.memory_space<vmem>>, vector<1x64x32xbf16>
    %52 = vector.shape_cast %51 : vector<1x64x32xbf16> to vector<64x32xbf16>
    %cst_36 = arith.constant dense<0.000000e+00> : vector<8x32xf32>
    %53 = tpu.matmul %5, %52, %cst_36 {dimension_numbers = #tpu.dot_dimension_numbers<[1], [0], [0], [1], [0, 0, 1, 1], [], []>} : vector<8x64xbf16>, vector<64x32xbf16>, vector<8x32xf32> -> vector<8x32xf32>
    %c13 = arith.constant 13 : index
    %c0_37 = arith.constant 0 : index
    %c0_38 = arith.constant 0 : index
    %54 = vector.load %arg2[%c13, %c0_37, %c0_38] : memref<48x64x32xbf16, #tpu.memory_space<vmem>>, vector<1x64x32xbf16>
    %55 = vector.shape_cast %54 : vector<1x64x32xbf16> to vector<64x32xbf16>
    %cst_39 = arith.constant dense<0.000000e+00> : vector<8x32xf32>
    %56 = tpu.matmul %6, %55, %cst_39 {dimension_numbers = #tpu.dot_dimension_numbers<[1], [0], [0], [1], [0, 0, 1, 1], [], []>} : vector<8x64xbf16>, vector<64x32xbf16>, vector<8x32xf32> -> vector<8x32xf32>
    %57 = arith.addf %53, %56 : vector<8x32xf32>
    %c16 = arith.constant 16 : index
    %c0_40 = arith.constant 0 : index
    %c0_41 = arith.constant 0 : index
    %58 = vector.load %arg2[%c16, %c0_40, %c0_41] : memref<48x64x32xbf16, #tpu.memory_space<vmem>>, vector<1x64x32xbf16>
    %59 = vector.shape_cast %58 : vector<1x64x32xbf16> to vector<64x32xbf16>
    %cst_42 = arith.constant dense<0.000000e+00> : vector<8x32xf32>
    %60 = tpu.matmul %6, %59, %cst_42 {dimension_numbers = #tpu.dot_dimension_numbers<[1], [0], [0], [1], [0, 0, 1, 1], [], []>} : vector<8x64xbf16>, vector<64x32xbf16>, vector<8x32xf32> -> vector<8x32xf32>
    %61 = arith.maximumf %57, %60 : vector<8x32xf32>
    %c19 = arith.constant 19 : index
    %c0_43 = arith.constant 0 : index
    %c0_44 = arith.constant 0 : index
    %62 = vector.load %arg2[%c19, %c0_43, %c0_44] : memref<48x64x32xbf16, #tpu.memory_space<vmem>>, vector<1x64x32xbf16>
    %63 = vector.shape_cast %62 : vector<1x64x32xbf16> to vector<64x32xbf16>
    %cst_45 = arith.constant dense<0.000000e+00> : vector<8x32xf32>
    %64 = tpu.matmul %6, %63, %cst_45 {dimension_numbers = #tpu.dot_dimension_numbers<[1], [0], [0], [1], [0, 0, 1, 1], [], []>} : vector<8x64xbf16>, vector<64x32xbf16>, vector<8x32xf32> -> vector<8x32xf32>
    %65 = arith.maximumf %61, %64 : vector<8x32xf32>
    %c22 = arith.constant 22 : index
    %c0_46 = arith.constant 0 : index
    %c0_47 = arith.constant 0 : index
    %66 = vector.load %arg2[%c22, %c0_46, %c0_47] : memref<48x64x32xbf16, #tpu.memory_space<vmem>>, vector<1x64x32xbf16>
    %67 = vector.shape_cast %66 : vector<1x64x32xbf16> to vector<64x32xbf16>
    %cst_48 = arith.constant dense<0.000000e+00> : vector<8x32xf32>
    %68 = tpu.matmul %6, %67, %cst_48 {dimension_numbers = #tpu.dot_dimension_numbers<[1], [0], [0], [1], [0, 0, 1, 1], [], []>} : vector<8x64xbf16>, vector<64x32xbf16>, vector<8x32xf32> -> vector<8x32xf32>
    %69 = arith.maximumf %65, %68 : vector<8x32xf32>
    %c0_49 = arith.constant 0 : index
    %c0_50 = arith.constant 0 : index
    %70 = vector.load %arg3[%c0_49, %c0_50] : memref<1x32xf32, #tpu.memory_space<vmem>>, vector<1x32xf32>
    %71 = vector.broadcast %70 : vector<1x32xf32> to vector<8x32xf32>
    %72 = arith.addf %69, %71 : vector<8x32xf32>
    %cst_51 = arith.constant 0.000000e+00 : f32
    %73 = vector.broadcast %cst_51 : f32 to vector<8x32xf32>
    %74 = arith.maximumf %72, %73 : vector<8x32xf32>
    %c0_52 = arith.constant 0 : index
    %c0_53 = arith.constant 0 : index
    %75 = vector.load %arg4[%c0_52, %c0_53] : memref<1x32xf32, #tpu.memory_space<vmem>>, vector<1x32xf32>
    %76 = vector.broadcast %75 : vector<1x32xf32> to vector<8x32xf32>
    %77 = arith.mulf %74, %76 : vector<8x32xf32>
    %c0_54 = arith.constant 0 : index
    %c0_55 = arith.constant 0 : index
    %78 = vector.load %arg5[%c0_54, %c0_55] : memref<1x32xf32, #tpu.memory_space<vmem>>, vector<1x32xf32>
    %79 = vector.broadcast %78 : vector<1x32xf32> to vector<8x32xf32>
    %80 = arith.addf %77, %79 : vector<8x32xf32>
    %c25 = arith.constant 25 : index
    %c0_56 = arith.constant 0 : index
    %c0_57 = arith.constant 0 : index
    %81 = vector.load %arg2[%c25, %c0_56, %c0_57] : memref<48x64x32xbf16, #tpu.memory_space<vmem>>, vector<1x64x32xbf16>
    %82 = vector.shape_cast %81 : vector<1x64x32xbf16> to vector<64x32xbf16>
    %cst_58 = arith.constant dense<0.000000e+00> : vector<8x32xf32>
    %83 = tpu.matmul %6, %82, %cst_58 {dimension_numbers = #tpu.dot_dimension_numbers<[1], [0], [0], [1], [0, 0, 1, 1], [], []>} : vector<8x64xbf16>, vector<64x32xbf16>, vector<8x32xf32> -> vector<8x32xf32>
    %c28 = arith.constant 28 : index
    %c0_59 = arith.constant 0 : index
    %c0_60 = arith.constant 0 : index
    %84 = vector.load %arg2[%c28, %c0_59, %c0_60] : memref<48x64x32xbf16, #tpu.memory_space<vmem>>, vector<1x64x32xbf16>
    %85 = vector.shape_cast %84 : vector<1x64x32xbf16> to vector<64x32xbf16>
    %cst_61 = arith.constant dense<0.000000e+00> : vector<8x32xf32>
    %86 = tpu.matmul %6, %85, %cst_61 {dimension_numbers = #tpu.dot_dimension_numbers<[1], [0], [0], [1], [0, 0, 1, 1], [], []>} : vector<8x64xbf16>, vector<64x32xbf16>, vector<8x32xf32> -> vector<8x32xf32>
    %87 = arith.maximumf %83, %86 : vector<8x32xf32>
    %c31 = arith.constant 31 : index
    %c0_62 = arith.constant 0 : index
    %c0_63 = arith.constant 0 : index
    %88 = vector.load %arg2[%c31, %c0_62, %c0_63] : memref<48x64x32xbf16, #tpu.memory_space<vmem>>, vector<1x64x32xbf16>
    %89 = vector.shape_cast %88 : vector<1x64x32xbf16> to vector<64x32xbf16>
    %cst_64 = arith.constant dense<0.000000e+00> : vector<8x32xf32>
    %90 = tpu.matmul %6, %89, %cst_64 {dimension_numbers = #tpu.dot_dimension_numbers<[1], [0], [0], [1], [0, 0, 1, 1], [], []>} : vector<8x64xbf16>, vector<64x32xbf16>, vector<8x32xf32> -> vector<8x32xf32>
    %c32 = arith.constant 32 : index
    %c0_65 = arith.constant 0 : index
    %c0_66 = arith.constant 0 : index
    %91 = vector.load %arg2[%c32, %c0_65, %c0_66] : memref<48x64x32xbf16, #tpu.memory_space<vmem>>, vector<1x64x32xbf16>
    %92 = vector.shape_cast %91 : vector<1x64x32xbf16> to vector<64x32xbf16>
    %cst_67 = arith.constant dense<0.000000e+00> : vector<8x32xf32>
    %93 = tpu.matmul %8, %92, %cst_67 {dimension_numbers = #tpu.dot_dimension_numbers<[1], [0], [0], [1], [0, 0, 1, 1], [], []>} : vector<8x64xbf16>, vector<64x32xbf16>, vector<8x32xf32> -> vector<8x32xf32>
    %94 = arith.addf %90, %93 : vector<8x32xf32>
    %95 = arith.maximumf %87, %94 : vector<8x32xf32>
    %c34 = arith.constant 34 : index
    %c0_68 = arith.constant 0 : index
    %c0_69 = arith.constant 0 : index
    %96 = vector.load %arg2[%c34, %c0_68, %c0_69] : memref<48x64x32xbf16, #tpu.memory_space<vmem>>, vector<1x64x32xbf16>
    %97 = vector.shape_cast %96 : vector<1x64x32xbf16> to vector<64x32xbf16>
    %cst_70 = arith.constant dense<0.000000e+00> : vector<8x32xf32>
    %98 = tpu.matmul %6, %97, %cst_70 {dimension_numbers = #tpu.dot_dimension_numbers<[1], [0], [0], [1], [0, 0, 1, 1], [], []>} : vector<8x64xbf16>, vector<64x32xbf16>, vector<8x32xf32> -> vector<8x32xf32>
    %c35 = arith.constant 35 : index
    %c0_71 = arith.constant 0 : index
    %c0_72 = arith.constant 0 : index
    %99 = vector.load %arg2[%c35, %c0_71, %c0_72] : memref<48x64x32xbf16, #tpu.memory_space<vmem>>, vector<1x64x32xbf16>
    %100 = vector.shape_cast %99 : vector<1x64x32xbf16> to vector<64x32xbf16>
    %cst_73 = arith.constant dense<0.000000e+00> : vector<8x32xf32>
    %101 = tpu.matmul %8, %100, %cst_73 {dimension_numbers = #tpu.dot_dimension_numbers<[1], [0], [0], [1], [0, 0, 1, 1], [], []>} : vector<8x64xbf16>, vector<64x32xbf16>, vector<8x32xf32> -> vector<8x32xf32>
    %102 = arith.addf %98, %101 : vector<8x32xf32>
    %103 = arith.maximumf %95, %102 : vector<8x32xf32>
    %c0_74 = arith.constant 0 : index
    %c0_75 = arith.constant 0 : index
    %104 = vector.load %arg3[%c0_74, %c0_75] : memref<1x32xf32, #tpu.memory_space<vmem>>, vector<1x32xf32>
    %105 = vector.broadcast %104 : vector<1x32xf32> to vector<8x32xf32>
    %106 = arith.addf %103, %105 : vector<8x32xf32>
    %cst_76 = arith.constant 0.000000e+00 : f32
    %107 = vector.broadcast %cst_76 : f32 to vector<8x32xf32>
    %108 = arith.maximumf %106, %107 : vector<8x32xf32>
    %c0_77 = arith.constant 0 : index
    %c0_78 = arith.constant 0 : index
    %109 = vector.load %arg4[%c0_77, %c0_78] : memref<1x32xf32, #tpu.memory_space<vmem>>, vector<1x32xf32>
    %110 = vector.broadcast %109 : vector<1x32xf32> to vector<8x32xf32>
    %111 = arith.mulf %108, %110 : vector<8x32xf32>
    %c0_79 = arith.constant 0 : index
    %c0_80 = arith.constant 0 : index
    %112 = vector.load %arg5[%c0_79, %c0_80] : memref<1x32xf32, #tpu.memory_space<vmem>>, vector<1x32xf32>
    %113 = vector.broadcast %112 : vector<1x32xf32> to vector<8x32xf32>
    %114 = arith.addf %111, %113 : vector<8x32xf32>
    %c37 = arith.constant 37 : index
    %c0_81 = arith.constant 0 : index
    %c0_82 = arith.constant 0 : index
    %115 = vector.load %arg2[%c37, %c0_81, %c0_82] : memref<48x64x32xbf16, #tpu.memory_space<vmem>>, vector<1x64x32xbf16>
    %116 = vector.shape_cast %115 : vector<1x64x32xbf16> to vector<64x32xbf16>
    %cst_83 = arith.constant dense<0.000000e+00> : vector<8x32xf32>
    %117 = tpu.matmul %6, %116, %cst_83 {dimension_numbers = #tpu.dot_dimension_numbers<[1], [0], [0], [1], [0, 0, 1, 1], [], []>} : vector<8x64xbf16>, vector<64x32xbf16>, vector<8x32xf32> -> vector<8x32xf32>
    %c38 = arith.constant 38 : index
    %c0_84 = arith.constant 0 : index
    %c0_85 = arith.constant 0 : index
    %118 = vector.load %arg2[%c38, %c0_84, %c0_85] : memref<48x64x32xbf16, #tpu.memory_space<vmem>>, vector<1x64x32xbf16>
    %119 = vector.shape_cast %118 : vector<1x64x32xbf16> to vector<64x32xbf16>
    %cst_86 = arith.constant dense<0.000000e+00> : vector<8x32xf32>
    %120 = tpu.matmul %8, %119, %cst_86 {dimension_numbers = #tpu.dot_dimension_numbers<[1], [0], [0], [1], [0, 0, 1, 1], [], []>} : vector<8x64xbf16>, vector<64x32xbf16>, vector<8x32xf32> -> vector<8x32xf32>
    %121 = arith.addf %117, %120 : vector<8x32xf32>
    %c40 = arith.constant 40 : index
    %c0_87 = arith.constant 0 : index
    %c0_88 = arith.constant 0 : index
    %122 = vector.load %arg2[%c40, %c0_87, %c0_88] : memref<48x64x32xbf16, #tpu.memory_space<vmem>>, vector<1x64x32xbf16>
    %123 = vector.shape_cast %122 : vector<1x64x32xbf16> to vector<64x32xbf16>
    %cst_89 = arith.constant dense<0.000000e+00> : vector<8x32xf32>
    %124 = tpu.matmul %6, %123, %cst_89 {dimension_numbers = #tpu.dot_dimension_numbers<[1], [0], [0], [1], [0, 0, 1, 1], [], []>} : vector<8x64xbf16>, vector<64x32xbf16>, vector<8x32xf32> -> vector<8x32xf32>
    %c41 = arith.constant 41 : index
    %c0_90 = arith.constant 0 : index
    %c0_91 = arith.constant 0 : index
    %125 = vector.load %arg2[%c41, %c0_90, %c0_91] : memref<48x64x32xbf16, #tpu.memory_space<vmem>>, vector<1x64x32xbf16>
    %126 = vector.shape_cast %125 : vector<1x64x32xbf16> to vector<64x32xbf16>
    %cst_92 = arith.constant dense<0.000000e+00> : vector<8x32xf32>
    %127 = tpu.matmul %8, %126, %cst_92 {dimension_numbers = #tpu.dot_dimension_numbers<[1], [0], [0], [1], [0, 0, 1, 1], [], []>} : vector<8x64xbf16>, vector<64x32xbf16>, vector<8x32xf32> -> vector<8x32xf32>
    %128 = arith.addf %124, %127 : vector<8x32xf32>
    %129 = arith.maximumf %121, %128 : vector<8x32xf32>
    %c43 = arith.constant 43 : index
    %c0_93 = arith.constant 0 : index
    %c0_94 = arith.constant 0 : index
    %130 = vector.load %arg2[%c43, %c0_93, %c0_94] : memref<48x64x32xbf16, #tpu.memory_space<vmem>>, vector<1x64x32xbf16>
    %131 = vector.shape_cast %130 : vector<1x64x32xbf16> to vector<64x32xbf16>
    %cst_95 = arith.constant dense<0.000000e+00> : vector<8x32xf32>
    %132 = tpu.matmul %6, %131, %cst_95 {dimension_numbers = #tpu.dot_dimension_numbers<[1], [0], [0], [1], [0, 0, 1, 1], [], []>} : vector<8x64xbf16>, vector<64x32xbf16>, vector<8x32xf32> -> vector<8x32xf32>
    %c44 = arith.constant 44 : index
    %c0_96 = arith.constant 0 : index
    %c0_97 = arith.constant 0 : index
    %133 = vector.load %arg2[%c44, %c0_96, %c0_97] : memref<48x64x32xbf16, #tpu.memory_space<vmem>>, vector<1x64x32xbf16>
    %134 = vector.shape_cast %133 : vector<1x64x32xbf16> to vector<64x32xbf16>
    %cst_98 = arith.constant dense<0.000000e+00> : vector<8x32xf32>
    %135 = tpu.matmul %8, %134, %cst_98 {dimension_numbers = #tpu.dot_dimension_numbers<[1], [0], [0], [1], [0, 0, 1, 1], [], []>} : vector<8x64xbf16>, vector<64x32xbf16>, vector<8x32xf32> -> vector<8x32xf32>
    %136 = arith.addf %132, %135 : vector<8x32xf32>
    %137 = arith.maximumf %129, %136 : vector<8x32xf32>
    %c46 = arith.constant 46 : index
    %c0_99 = arith.constant 0 : index
    %c0_100 = arith.constant 0 : index
    %138 = vector.load %arg2[%c46, %c0_99, %c0_100] : memref<48x64x32xbf16, #tpu.memory_space<vmem>>, vector<1x64x32xbf16>
    %139 = vector.shape_cast %138 : vector<1x64x32xbf16> to vector<64x32xbf16>
    %cst_101 = arith.constant dense<0.000000e+00> : vector<8x32xf32>
    %140 = tpu.matmul %6, %139, %cst_101 {dimension_numbers = #tpu.dot_dimension_numbers<[1], [0], [0], [1], [0, 0, 1, 1], [], []>} : vector<8x64xbf16>, vector<64x32xbf16>, vector<8x32xf32> -> vector<8x32xf32>
    %c47 = arith.constant 47 : index
    %c0_102 = arith.constant 0 : index
    %c0_103 = arith.constant 0 : index
    %141 = vector.load %arg2[%c47, %c0_102, %c0_103] : memref<48x64x32xbf16, #tpu.memory_space<vmem>>, vector<1x64x32xbf16>
    %142 = vector.shape_cast %141 : vector<1x64x32xbf16> to vector<64x32xbf16>
    %cst_104 = arith.constant dense<0.000000e+00> : vector<8x32xf32>
    %143 = tpu.matmul %8, %142, %cst_104 {dimension_numbers = #tpu.dot_dimension_numbers<[1], [0], [0], [1], [0, 0, 1, 1], [], []>} : vector<8x64xbf16>, vector<64x32xbf16>, vector<8x32xf32> -> vector<8x32xf32>
    %144 = arith.addf %140, %143 : vector<8x32xf32>
    %145 = arith.maximumf %137, %144 : vector<8x32xf32>
    %c0_105 = arith.constant 0 : index
    %c0_106 = arith.constant 0 : index
    %146 = vector.load %arg3[%c0_105, %c0_106] : memref<1x32xf32, #tpu.memory_space<vmem>>, vector<1x32xf32>
    %147 = vector.broadcast %146 : vector<1x32xf32> to vector<8x32xf32>
    %148 = arith.addf %145, %147 : vector<8x32xf32>
    %cst_107 = arith.constant 0.000000e+00 : f32
    %149 = vector.broadcast %cst_107 : f32 to vector<8x32xf32>
    %150 = arith.maximumf %148, %149 : vector<8x32xf32>
    %c0_108 = arith.constant 0 : index
    %c0_109 = arith.constant 0 : index
    %151 = vector.load %arg4[%c0_108, %c0_109] : memref<1x32xf32, #tpu.memory_space<vmem>>, vector<1x32xf32>
    %152 = vector.broadcast %151 : vector<1x32xf32> to vector<8x32xf32>
    %153 = arith.mulf %150, %152 : vector<8x32xf32>
    %c0_110 = arith.constant 0 : index
    %c0_111 = arith.constant 0 : index
    %154 = vector.load %arg5[%c0_110, %c0_111] : memref<1x32xf32, #tpu.memory_space<vmem>>, vector<1x32xf32>
    %155 = vector.broadcast %154 : vector<1x32xf32> to vector<8x32xf32>
    %156 = arith.addf %153, %155 : vector<8x32xf32>
    %cst_112 = arith.constant 0.000000e+00 : f32
    %157 = vector.broadcast %cst_112 : f32 to vector<8x32xf32>
    %158 = tpu.concatenate %157, %50, %157 in 0 : vector<8x32xf32>, vector<8x32xf32>, vector<8x32xf32> -> vector<24x32xf32>
    %159 = arith.truncf %50 : vector<8x32xf32> to vector<8x32xbf16>
    %160 = vector.extract_strided_slice %158 {offsets = [9, 0], sizes = [8, 32], strides = [1, 1]} : vector<24x32xf32> to vector<8x32xf32>
    %161 = arith.truncf %160 : vector<8x32xf32> to vector<8x32xbf16>
    %cst_113 = arith.constant 0.000000e+00 : f32
    %162 = vector.broadcast %cst_113 : f32 to vector<8x32xf32>
    %163 = tpu.concatenate %162, %80, %162 in 0 : vector<8x32xf32>, vector<8x32xf32>, vector<8x32xf32> -> vector<24x32xf32>
    %164 = arith.truncf %80 : vector<8x32xf32> to vector<8x32xbf16>
    %165 = vector.extract_strided_slice %163 {offsets = [9, 0], sizes = [8, 32], strides = [1, 1]} : vector<24x32xf32> to vector<8x32xf32>
    %166 = arith.truncf %165 : vector<8x32xf32> to vector<8x32xbf16>
    %cst_114 = arith.constant 0.000000e+00 : f32
    %167 = vector.broadcast %cst_114 : f32 to vector<8x32xf32>
    %168 = tpu.concatenate %167, %114, %167 in 0 : vector<8x32xf32>, vector<8x32xf32>, vector<8x32xf32> -> vector<24x32xf32>
    %169 = vector.extract_strided_slice %168 {offsets = [7, 0], sizes = [8, 32], strides = [1, 1]} : vector<24x32xf32> to vector<8x32xf32>
    %170 = arith.truncf %169 : vector<8x32xf32> to vector<8x32xbf16>
    %171 = arith.truncf %114 : vector<8x32xf32> to vector<8x32xbf16>
    %cst_115 = arith.constant 0.000000e+00 : f32
    %172 = vector.broadcast %cst_115 : f32 to vector<8x32xf32>
    %173 = tpu.concatenate %172, %156, %172 in 0 : vector<8x32xf32>, vector<8x32xf32>, vector<8x32xf32> -> vector<24x32xf32>
    %174 = vector.extract_strided_slice %173 {offsets = [7, 0], sizes = [8, 32], strides = [1, 1]} : vector<24x32xf32> to vector<8x32xf32>
    %175 = arith.truncf %174 : vector<8x32xf32> to vector<8x32xbf16>
    %176 = arith.truncf %156 : vector<8x32xf32> to vector<8x32xbf16>
    %c0_116 = arith.constant 0 : index
    %c0_117 = arith.constant 0 : index
    %c0_118 = arith.constant 0 : index
    %177 = vector.load %arg6[%c0_116, %c0_117, %c0_118] : memref<5x32x32xbf16, #tpu.memory_space<vmem>>, vector<1x32x32xbf16>
    %178 = vector.shape_cast %177 : vector<1x32x32xbf16> to vector<32x32xbf16>
    %cst_119 = arith.constant dense<0.000000e+00> : vector<8x32xf32>
    %179 = tpu.matmul %170, %178, %cst_119 {dimension_numbers = #tpu.dot_dimension_numbers<[1], [0], [0], [1], [0, 0, 1, 1], [], []>} : vector<8x32xbf16>, vector<32x32xbf16>, vector<8x32xf32> -> vector<8x32xf32>
    %c1_120 = arith.constant 1 : index
    %c0_121 = arith.constant 0 : index
    %c0_122 = arith.constant 0 : index
    %180 = vector.load %arg6[%c1_120, %c0_121, %c0_122] : memref<5x32x32xbf16, #tpu.memory_space<vmem>>, vector<1x32x32xbf16>
    %181 = vector.shape_cast %180 : vector<1x32x32xbf16> to vector<32x32xbf16>
    %cst_123 = arith.constant dense<0.000000e+00> : vector<8x32xf32>
    %182 = tpu.matmul %175, %181, %cst_123 {dimension_numbers = #tpu.dot_dimension_numbers<[1], [0], [0], [1], [0, 0, 1, 1], [], []>} : vector<8x32xbf16>, vector<32x32xbf16>, vector<8x32xf32> -> vector<8x32xf32>
    %183 = arith.addf %179, %182 : vector<8x32xf32>
    %c2 = arith.constant 2 : index
    %c0_124 = arith.constant 0 : index
    %c0_125 = arith.constant 0 : index
    %184 = vector.load %arg6[%c2, %c0_124, %c0_125] : memref<5x32x32xbf16, #tpu.memory_space<vmem>>, vector<1x32x32xbf16>
    %185 = vector.shape_cast %184 : vector<1x32x32xbf16> to vector<32x32xbf16>
    %cst_126 = arith.constant dense<0.000000e+00> : vector<8x32xf32>
    %186 = tpu.matmul %159, %185, %cst_126 {dimension_numbers = #tpu.dot_dimension_numbers<[1], [0], [0], [1], [0, 0, 1, 1], [], []>} : vector<8x32xbf16>, vector<32x32xbf16>, vector<8x32xf32> -> vector<8x32xf32>
    %187 = arith.addf %183, %186 : vector<8x32xf32>
    %c3_127 = arith.constant 3 : index
    %c0_128 = arith.constant 0 : index
    %c0_129 = arith.constant 0 : index
    %188 = vector.load %arg6[%c3_127, %c0_128, %c0_129] : memref<5x32x32xbf16, #tpu.memory_space<vmem>>, vector<1x32x32xbf16>
    %189 = vector.shape_cast %188 : vector<1x32x32xbf16> to vector<32x32xbf16>
    %cst_130 = arith.constant dense<0.000000e+00> : vector<8x32xf32>
    %190 = tpu.matmul %164, %189, %cst_130 {dimension_numbers = #tpu.dot_dimension_numbers<[1], [0], [0], [1], [0, 0, 1, 1], [], []>} : vector<8x32xbf16>, vector<32x32xbf16>, vector<8x32xf32> -> vector<8x32xf32>
    %191 = arith.addf %187, %190 : vector<8x32xf32>
    %c4_131 = arith.constant 4 : index
    %c0_132 = arith.constant 0 : index
    %c0_133 = arith.constant 0 : index
    %192 = vector.load %arg6[%c4_131, %c0_132, %c0_133] : memref<5x32x32xbf16, #tpu.memory_space<vmem>>, vector<1x32x32xbf16>
    %193 = vector.shape_cast %192 : vector<1x32x32xbf16> to vector<32x32xbf16>
    %cst_134 = arith.constant dense<0.000000e+00> : vector<8x32xf32>
    %194 = tpu.matmul %171, %193, %cst_134 {dimension_numbers = #tpu.dot_dimension_numbers<[1], [0], [0], [1], [0, 0, 1, 1], [], []>} : vector<8x32xbf16>, vector<32x32xbf16>, vector<8x32xf32> -> vector<8x32xf32>
    %195 = arith.addf %191, %194 : vector<8x32xf32>
    %c0_135 = arith.constant 0 : index
    %c0_136 = arith.constant 0 : index
    %c0_137 = arith.constant 0 : index
    %196 = vector.load %arg6[%c0_135, %c0_136, %c0_137] : memref<5x32x32xbf16, #tpu.memory_space<vmem>>, vector<1x32x32xbf16>
    %197 = vector.shape_cast %196 : vector<1x32x32xbf16> to vector<32x32xbf16>
    %cst_138 = arith.constant dense<0.000000e+00> : vector<8x32xf32>
    %198 = tpu.matmul %175, %197, %cst_138 {dimension_numbers = #tpu.dot_dimension_numbers<[1], [0], [0], [1], [0, 0, 1, 1], [], []>} : vector<8x32xbf16>, vector<32x32xbf16>, vector<8x32xf32> -> vector<8x32xf32>
    %c1_139 = arith.constant 1 : index
    %c0_140 = arith.constant 0 : index
    %c0_141 = arith.constant 0 : index
    %199 = vector.load %arg6[%c1_139, %c0_140, %c0_141] : memref<5x32x32xbf16, #tpu.memory_space<vmem>>, vector<1x32x32xbf16>
    %200 = vector.shape_cast %199 : vector<1x32x32xbf16> to vector<32x32xbf16>
    %cst_142 = arith.constant dense<0.000000e+00> : vector<8x32xf32>
    %201 = tpu.matmul %159, %200, %cst_142 {dimension_numbers = #tpu.dot_dimension_numbers<[1], [0], [0], [1], [0, 0, 1, 1], [], []>} : vector<8x32xbf16>, vector<32x32xbf16>, vector<8x32xf32> -> vector<8x32xf32>
    %202 = arith.addf %198, %201 : vector<8x32xf32>
    %c2_143 = arith.constant 2 : index
    %c0_144 = arith.constant 0 : index
    %c0_145 = arith.constant 0 : index
    %203 = vector.load %arg6[%c2_143, %c0_144, %c0_145] : memref<5x32x32xbf16, #tpu.memory_space<vmem>>, vector<1x32x32xbf16>
    %204 = vector.shape_cast %203 : vector<1x32x32xbf16> to vector<32x32xbf16>
    %cst_146 = arith.constant dense<0.000000e+00> : vector<8x32xf32>
    %205 = tpu.matmul %164, %204, %cst_146 {dimension_numbers = #tpu.dot_dimension_numbers<[1], [0], [0], [1], [0, 0, 1, 1], [], []>} : vector<8x32xbf16>, vector<32x32xbf16>, vector<8x32xf32> -> vector<8x32xf32>
    %206 = arith.addf %202, %205 : vector<8x32xf32>
    %c3_147 = arith.constant 3 : index
    %c0_148 = arith.constant 0 : index
    %c0_149 = arith.constant 0 : index
    %207 = vector.load %arg6[%c3_147, %c0_148, %c0_149] : memref<5x32x32xbf16, #tpu.memory_space<vmem>>, vector<1x32x32xbf16>
    %208 = vector.shape_cast %207 : vector<1x32x32xbf16> to vector<32x32xbf16>
    %cst_150 = arith.constant dense<0.000000e+00> : vector<8x32xf32>
    %209 = tpu.matmul %171, %208, %cst_150 {dimension_numbers = #tpu.dot_dimension_numbers<[1], [0], [0], [1], [0, 0, 1, 1], [], []>} : vector<8x32xbf16>, vector<32x32xbf16>, vector<8x32xf32> -> vector<8x32xf32>
    %210 = arith.addf %206, %209 : vector<8x32xf32>
    %c4_151 = arith.constant 4 : index
    %c0_152 = arith.constant 0 : index
    %c0_153 = arith.constant 0 : index
    %211 = vector.load %arg6[%c4_151, %c0_152, %c0_153] : memref<5x32x32xbf16, #tpu.memory_space<vmem>>, vector<1x32x32xbf16>
    %212 = vector.shape_cast %211 : vector<1x32x32xbf16> to vector<32x32xbf16>
    %cst_154 = arith.constant dense<0.000000e+00> : vector<8x32xf32>
    %213 = tpu.matmul %176, %212, %cst_154 {dimension_numbers = #tpu.dot_dimension_numbers<[1], [0], [0], [1], [0, 0, 1, 1], [], []>} : vector<8x32xbf16>, vector<32x32xbf16>, vector<8x32xf32> -> vector<8x32xf32>
    %214 = arith.addf %210, %213 : vector<8x32xf32>
    %215 = arith.maximumf %195, %214 : vector<8x32xf32>
    %c0_155 = arith.constant 0 : index
    %c0_156 = arith.constant 0 : index
    %216 = vector.load %arg7[%c0_155, %c0_156] : memref<1x32xf32, #tpu.memory_space<vmem>>, vector<1x32xf32>
    %217 = vector.broadcast %216 : vector<1x32xf32> to vector<8x32xf32>
    %218 = arith.addf %215, %217 : vector<8x32xf32>
    %cst_157 = arith.constant 0.000000e+00 : f32
    %219 = vector.broadcast %cst_157 : f32 to vector<8x32xf32>
    %220 = arith.maximumf %218, %219 : vector<8x32xf32>
    %c0_158 = arith.constant 0 : index
    %c0_159 = arith.constant 0 : index
    %221 = vector.load %arg8[%c0_158, %c0_159] : memref<1x32xf32, #tpu.memory_space<vmem>>, vector<1x32xf32>
    %222 = vector.broadcast %221 : vector<1x32xf32> to vector<8x32xf32>
    %223 = arith.mulf %220, %222 : vector<8x32xf32>
    %c0_160 = arith.constant 0 : index
    %c0_161 = arith.constant 0 : index
    %224 = vector.load %arg9[%c0_160, %c0_161] : memref<1x32xf32, #tpu.memory_space<vmem>>, vector<1x32xf32>
    %225 = vector.broadcast %224 : vector<1x32xf32> to vector<8x32xf32>
    %226 = arith.addf %223, %225 : vector<8x32xf32>
    %c0_162 = arith.constant 0 : index
    %c0_163 = arith.constant 0 : index
    %c0_164 = arith.constant 0 : index
    %227 = vector.load %arg6[%c0_162, %c0_163, %c0_164] : memref<5x32x32xbf16, #tpu.memory_space<vmem>>, vector<1x32x32xbf16>
    %228 = vector.shape_cast %227 : vector<1x32x32xbf16> to vector<32x32xbf16>
    %cst_165 = arith.constant dense<0.000000e+00> : vector<8x32xf32>
    %229 = tpu.matmul %159, %228, %cst_165 {dimension_numbers = #tpu.dot_dimension_numbers<[1], [0], [0], [1], [0, 0, 1, 1], [], []>} : vector<8x32xbf16>, vector<32x32xbf16>, vector<8x32xf32> -> vector<8x32xf32>
    %c1_166 = arith.constant 1 : index
    %c0_167 = arith.constant 0 : index
    %c0_168 = arith.constant 0 : index
    %230 = vector.load %arg6[%c1_166, %c0_167, %c0_168] : memref<5x32x32xbf16, #tpu.memory_space<vmem>>, vector<1x32x32xbf16>
    %231 = vector.shape_cast %230 : vector<1x32x32xbf16> to vector<32x32xbf16>
    %cst_169 = arith.constant dense<0.000000e+00> : vector<8x32xf32>
    %232 = tpu.matmul %164, %231, %cst_169 {dimension_numbers = #tpu.dot_dimension_numbers<[1], [0], [0], [1], [0, 0, 1, 1], [], []>} : vector<8x32xbf16>, vector<32x32xbf16>, vector<8x32xf32> -> vector<8x32xf32>
    %233 = arith.addf %229, %232 : vector<8x32xf32>
    %c2_170 = arith.constant 2 : index
    %c0_171 = arith.constant 0 : index
    %c0_172 = arith.constant 0 : index
    %234 = vector.load %arg6[%c2_170, %c0_171, %c0_172] : memref<5x32x32xbf16, #tpu.memory_space<vmem>>, vector<1x32x32xbf16>
    %235 = vector.shape_cast %234 : vector<1x32x32xbf16> to vector<32x32xbf16>
    %cst_173 = arith.constant dense<0.000000e+00> : vector<8x32xf32>
    %236 = tpu.matmul %171, %235, %cst_173 {dimension_numbers = #tpu.dot_dimension_numbers<[1], [0], [0], [1], [0, 0, 1, 1], [], []>} : vector<8x32xbf16>, vector<32x32xbf16>, vector<8x32xf32> -> vector<8x32xf32>
    %237 = arith.addf %233, %236 : vector<8x32xf32>
    %c3_174 = arith.constant 3 : index
    %c0_175 = arith.constant 0 : index
    %c0_176 = arith.constant 0 : index
    %238 = vector.load %arg6[%c3_174, %c0_175, %c0_176] : memref<5x32x32xbf16, #tpu.memory_space<vmem>>, vector<1x32x32xbf16>
    %239 = vector.shape_cast %238 : vector<1x32x32xbf16> to vector<32x32xbf16>
    %cst_177 = arith.constant dense<0.000000e+00> : vector<8x32xf32>
    %240 = tpu.matmul %176, %239, %cst_177 {dimension_numbers = #tpu.dot_dimension_numbers<[1], [0], [0], [1], [0, 0, 1, 1], [], []>} : vector<8x32xbf16>, vector<32x32xbf16>, vector<8x32xf32> -> vector<8x32xf32>
    %241 = arith.addf %237, %240 : vector<8x32xf32>
    %c4_178 = arith.constant 4 : index
    %c0_179 = arith.constant 0 : index
    %c0_180 = arith.constant 0 : index
    %242 = vector.load %arg6[%c4_178, %c0_179, %c0_180] : memref<5x32x32xbf16, #tpu.memory_space<vmem>>, vector<1x32x32xbf16>
    %243 = vector.shape_cast %242 : vector<1x32x32xbf16> to vector<32x32xbf16>
    %cst_181 = arith.constant dense<0.000000e+00> : vector<8x32xf32>
    %244 = tpu.matmul %161, %243, %cst_181 {dimension_numbers = #tpu.dot_dimension_numbers<[1], [0], [0], [1], [0, 0, 1, 1], [], []>} : vector<8x32xbf16>, vector<32x32xbf16>, vector<8x32xf32> -> vector<8x32xf32>
    %245 = arith.addf %241, %244 : vector<8x32xf32>
    %c0_182 = arith.constant 0 : index
    %c0_183 = arith.constant 0 : index
    %c0_184 = arith.constant 0 : index
    %246 = vector.load %arg6[%c0_182, %c0_183, %c0_184] : memref<5x32x32xbf16, #tpu.memory_space<vmem>>, vector<1x32x32xbf16>
    %247 = vector.shape_cast %246 : vector<1x32x32xbf16> to vector<32x32xbf16>
    %cst_185 = arith.constant dense<0.000000e+00> : vector<8x32xf32>
    %248 = tpu.matmul %164, %247, %cst_185 {dimension_numbers = #tpu.dot_dimension_numbers<[1], [0], [0], [1], [0, 0, 1, 1], [], []>} : vector<8x32xbf16>, vector<32x32xbf16>, vector<8x32xf32> -> vector<8x32xf32>
    %c1_186 = arith.constant 1 : index
    %c0_187 = arith.constant 0 : index
    %c0_188 = arith.constant 0 : index
    %249 = vector.load %arg6[%c1_186, %c0_187, %c0_188] : memref<5x32x32xbf16, #tpu.memory_space<vmem>>, vector<1x32x32xbf16>
    %250 = vector.shape_cast %249 : vector<1x32x32xbf16> to vector<32x32xbf16>
    %cst_189 = arith.constant dense<0.000000e+00> : vector<8x32xf32>
    %251 = tpu.matmul %171, %250, %cst_189 {dimension_numbers = #tpu.dot_dimension_numbers<[1], [0], [0], [1], [0, 0, 1, 1], [], []>} : vector<8x32xbf16>, vector<32x32xbf16>, vector<8x32xf32> -> vector<8x32xf32>
    %252 = arith.addf %248, %251 : vector<8x32xf32>
    %c2_190 = arith.constant 2 : index
    %c0_191 = arith.constant 0 : index
    %c0_192 = arith.constant 0 : index
    %253 = vector.load %arg6[%c2_190, %c0_191, %c0_192] : memref<5x32x32xbf16, #tpu.memory_space<vmem>>, vector<1x32x32xbf16>
    %254 = vector.shape_cast %253 : vector<1x32x32xbf16> to vector<32x32xbf16>
    %cst_193 = arith.constant dense<0.000000e+00> : vector<8x32xf32>
    %255 = tpu.matmul %176, %254, %cst_193 {dimension_numbers = #tpu.dot_dimension_numbers<[1], [0], [0], [1], [0, 0, 1, 1], [], []>} : vector<8x32xbf16>, vector<32x32xbf16>, vector<8x32xf32> -> vector<8x32xf32>
    %256 = arith.addf %252, %255 : vector<8x32xf32>
    %c3_194 = arith.constant 3 : index
    %c0_195 = arith.constant 0 : index
    %c0_196 = arith.constant 0 : index
    %257 = vector.load %arg6[%c3_194, %c0_195, %c0_196] : memref<5x32x32xbf16, #tpu.memory_space<vmem>>, vector<1x32x32xbf16>
    %258 = vector.shape_cast %257 : vector<1x32x32xbf16> to vector<32x32xbf16>
    %cst_197 = arith.constant dense<0.000000e+00> : vector<8x32xf32>
    %259 = tpu.matmul %161, %258, %cst_197 {dimension_numbers = #tpu.dot_dimension_numbers<[1], [0], [0], [1], [0, 0, 1, 1], [], []>} : vector<8x32xbf16>, vector<32x32xbf16>, vector<8x32xf32> -> vector<8x32xf32>
    %260 = arith.addf %256, %259 : vector<8x32xf32>
    %c4_198 = arith.constant 4 : index
    %c0_199 = arith.constant 0 : index
    %c0_200 = arith.constant 0 : index
    %261 = vector.load %arg6[%c4_198, %c0_199, %c0_200] : memref<5x32x32xbf16, #tpu.memory_space<vmem>>, vector<1x32x32xbf16>
    %262 = vector.shape_cast %261 : vector<1x32x32xbf16> to vector<32x32xbf16>
    %cst_201 = arith.constant dense<0.000000e+00> : vector<8x32xf32>
    %263 = tpu.matmul %166, %262, %cst_201 {dimension_numbers = #tpu.dot_dimension_numbers<[1], [0], [0], [1], [0, 0, 1, 1], [], []>} : vector<8x32xbf16>, vector<32x32xbf16>, vector<8x32xf32> -> vector<8x32xf32>
    %264 = arith.addf %260, %263 : vector<8x32xf32>
    %265 = arith.maximumf %245, %264 : vector<8x32xf32>
    %c0_202 = arith.constant 0 : index
    %c0_203 = arith.constant 0 : index
    %266 = vector.load %arg7[%c0_202, %c0_203] : memref<1x32xf32, #tpu.memory_space<vmem>>, vector<1x32xf32>
    %267 = vector.broadcast %266 : vector<1x32xf32> to vector<8x32xf32>
    %268 = arith.addf %265, %267 : vector<8x32xf32>
    %cst_204 = arith.constant 0.000000e+00 : f32
    %269 = vector.broadcast %cst_204 : f32 to vector<8x32xf32>
    %270 = arith.maximumf %268, %269 : vector<8x32xf32>
    %c0_205 = arith.constant 0 : index
    %c0_206 = arith.constant 0 : index
    %271 = vector.load %arg8[%c0_205, %c0_206] : memref<1x32xf32, #tpu.memory_space<vmem>>, vector<1x32xf32>
    %272 = vector.broadcast %271 : vector<1x32xf32> to vector<8x32xf32>
    %273 = arith.mulf %270, %272 : vector<8x32xf32>
    %c0_207 = arith.constant 0 : index
    %c0_208 = arith.constant 0 : index
    %274 = vector.load %arg9[%c0_207, %c0_208] : memref<1x32xf32, #tpu.memory_space<vmem>>, vector<1x32xf32>
    %275 = vector.broadcast %274 : vector<1x32xf32> to vector<8x32xf32>
    %276 = arith.addf %273, %275 : vector<8x32xf32>
    %cst_209 = arith.constant 0.000000e+00 : f32
    %277 = vector.broadcast %cst_209 : f32 to vector<8x32xf32>
    %278 = tpu.concatenate %277, %226, %277 in 0 : vector<8x32xf32>, vector<8x32xf32>, vector<8x32xf32> -> vector<24x32xf32>
    %279 = vector.extract_strided_slice %278 {offsets = [7, 0], sizes = [8, 32], strides = [1, 1]} : vector<24x32xf32> to vector<8x32xf32>
    %280 = arith.truncf %279 : vector<8x32xf32> to vector<8x32xbf16>
    %281 = arith.truncf %226 : vector<8x32xf32> to vector<8x32xbf16>
    %282 = vector.extract_strided_slice %278 {offsets = [9, 0], sizes = [8, 32], strides = [1, 1]} : vector<24x32xf32> to vector<8x32xf32>
    %283 = arith.truncf %282 : vector<8x32xf32> to vector<8x32xbf16>
    %cst_210 = arith.constant 0.000000e+00 : f32
    %284 = vector.broadcast %cst_210 : f32 to vector<8x32xf32>
    %285 = tpu.concatenate %284, %276, %284 in 0 : vector<8x32xf32>, vector<8x32xf32>, vector<8x32xf32> -> vector<24x32xf32>
    %286 = vector.extract_strided_slice %285 {offsets = [7, 0], sizes = [8, 32], strides = [1, 1]} : vector<24x32xf32> to vector<8x32xf32>
    %287 = arith.truncf %286 : vector<8x32xf32> to vector<8x32xbf16>
    %288 = arith.truncf %276 : vector<8x32xf32> to vector<8x32xbf16>
    %289 = vector.extract_strided_slice %285 {offsets = [9, 0], sizes = [8, 32], strides = [1, 1]} : vector<24x32xf32> to vector<8x32xf32>
    %290 = arith.truncf %289 : vector<8x32xf32> to vector<8x32xbf16>
    %c0_211 = arith.constant 0 : index
    %c0_212 = arith.constant 0 : index
    %c0_213 = arith.constant 0 : index
    %291 = vector.load %arg10[%c0_211, %c0_212, %c0_213] : memref<5x32x32xbf16, #tpu.memory_space<vmem>>, vector<1x32x32xbf16>
    %292 = vector.shape_cast %291 : vector<1x32x32xbf16> to vector<32x32xbf16>
    %cst_214 = arith.constant dense<0.000000e+00> : vector<8x32xf32>
    %293 = tpu.matmul %280, %292, %cst_214 {dimension_numbers = #tpu.dot_dimension_numbers<[1], [0], [0], [1], [0, 0, 1, 1], [], []>} : vector<8x32xbf16>, vector<32x32xbf16>, vector<8x32xf32> -> vector<8x32xf32>
    %c1_215 = arith.constant 1 : index
    %c0_216 = arith.constant 0 : index
    %c0_217 = arith.constant 0 : index
    %294 = vector.load %arg10[%c1_215, %c0_216, %c0_217] : memref<5x32x32xbf16, #tpu.memory_space<vmem>>, vector<1x32x32xbf16>
    %295 = vector.shape_cast %294 : vector<1x32x32xbf16> to vector<32x32xbf16>
    %cst_218 = arith.constant dense<0.000000e+00> : vector<8x32xf32>
    %296 = tpu.matmul %287, %295, %cst_218 {dimension_numbers = #tpu.dot_dimension_numbers<[1], [0], [0], [1], [0, 0, 1, 1], [], []>} : vector<8x32xbf16>, vector<32x32xbf16>, vector<8x32xf32> -> vector<8x32xf32>
    %297 = arith.addf %293, %296 : vector<8x32xf32>
    %c2_219 = arith.constant 2 : index
    %c0_220 = arith.constant 0 : index
    %c0_221 = arith.constant 0 : index
    %298 = vector.load %arg10[%c2_219, %c0_220, %c0_221] : memref<5x32x32xbf16, #tpu.memory_space<vmem>>, vector<1x32x32xbf16>
    %299 = vector.shape_cast %298 : vector<1x32x32xbf16> to vector<32x32xbf16>
    %cst_222 = arith.constant dense<0.000000e+00> : vector<8x32xf32>
    %300 = tpu.matmul %281, %299, %cst_222 {dimension_numbers = #tpu.dot_dimension_numbers<[1], [0], [0], [1], [0, 0, 1, 1], [], []>} : vector<8x32xbf16>, vector<32x32xbf16>, vector<8x32xf32> -> vector<8x32xf32>
    %301 = arith.addf %297, %300 : vector<8x32xf32>
    %c3_223 = arith.constant 3 : index
    %c0_224 = arith.constant 0 : index
    %c0_225 = arith.constant 0 : index
    %302 = vector.load %arg10[%c3_223, %c0_224, %c0_225] : memref<5x32x32xbf16, #tpu.memory_space<vmem>>, vector<1x32x32xbf16>
    %303 = vector.shape_cast %302 : vector<1x32x32xbf16> to vector<32x32xbf16>
    %cst_226 = arith.constant dense<0.000000e+00> : vector<8x32xf32>
    %304 = tpu.matmul %288, %303, %cst_226 {dimension_numbers = #tpu.dot_dimension_numbers<[1], [0], [0], [1], [0, 0, 1, 1], [], []>} : vector<8x32xbf16>, vector<32x32xbf16>, vector<8x32xf32> -> vector<8x32xf32>
    %305 = arith.addf %301, %304 : vector<8x32xf32>
    %c4_227 = arith.constant 4 : index
    %c0_228 = arith.constant 0 : index
    %c0_229 = arith.constant 0 : index
    %306 = vector.load %arg10[%c4_227, %c0_228, %c0_229] : memref<5x32x32xbf16, #tpu.memory_space<vmem>>, vector<1x32x32xbf16>
    %307 = vector.shape_cast %306 : vector<1x32x32xbf16> to vector<32x32xbf16>
    %cst_230 = arith.constant dense<0.000000e+00> : vector<8x32xf32>
    %308 = tpu.matmul %283, %307, %cst_230 {dimension_numbers = #tpu.dot_dimension_numbers<[1], [0], [0], [1], [0, 0, 1, 1], [], []>} : vector<8x32xbf16>, vector<32x32xbf16>, vector<8x32xf32> -> vector<8x32xf32>
    %309 = arith.addf %305, %308 : vector<8x32xf32>
    %c0_231 = arith.constant 0 : index
    %c0_232 = arith.constant 0 : index
    %c0_233 = arith.constant 0 : index
    %310 = vector.load %arg10[%c0_231, %c0_232, %c0_233] : memref<5x32x32xbf16, #tpu.memory_space<vmem>>, vector<1x32x32xbf16>
    %311 = vector.shape_cast %310 : vector<1x32x32xbf16> to vector<32x32xbf16>
    %cst_234 = arith.constant dense<0.000000e+00> : vector<8x32xf32>
    %312 = tpu.matmul %287, %311, %cst_234 {dimension_numbers = #tpu.dot_dimension_numbers<[1], [0], [0], [1], [0, 0, 1, 1], [], []>} : vector<8x32xbf16>, vector<32x32xbf16>, vector<8x32xf32> -> vector<8x32xf32>
    %c1_235 = arith.constant 1 : index
    %c0_236 = arith.constant 0 : index
    %c0_237 = arith.constant 0 : index
    %313 = vector.load %arg10[%c1_235, %c0_236, %c0_237] : memref<5x32x32xbf16, #tpu.memory_space<vmem>>, vector<1x32x32xbf16>
    %314 = vector.shape_cast %313 : vector<1x32x32xbf16> to vector<32x32xbf16>
    %cst_238 = arith.constant dense<0.000000e+00> : vector<8x32xf32>
    %315 = tpu.matmul %281, %314, %cst_238 {dimension_numbers = #tpu.dot_dimension_numbers<[1], [0], [0], [1], [0, 0, 1, 1], [], []>} : vector<8x32xbf16>, vector<32x32xbf16>, vector<8x32xf32> -> vector<8x32xf32>
    %316 = arith.addf %312, %315 : vector<8x32xf32>
    %c2_239 = arith.constant 2 : index
    %c0_240 = arith.constant 0 : index
    %c0_241 = arith.constant 0 : index
    %317 = vector.load %arg10[%c2_239, %c0_240, %c0_241] : memref<5x32x32xbf16, #tpu.memory_space<vmem>>, vector<1x32x32xbf16>
    %318 = vector.shape_cast %317 : vector<1x32x32xbf16> to vector<32x32xbf16>
    %cst_242 = arith.constant dense<0.000000e+00> : vector<8x32xf32>
    %319 = tpu.matmul %288, %318, %cst_242 {dimension_numbers = #tpu.dot_dimension_numbers<[1], [0], [0], [1], [0, 0, 1, 1], [], []>} : vector<8x32xbf16>, vector<32x32xbf16>, vector<8x32xf32> -> vector<8x32xf32>
    %320 = arith.addf %316, %319 : vector<8x32xf32>
    %c3_243 = arith.constant 3 : index
    %c0_244 = arith.constant 0 : index
    %c0_245 = arith.constant 0 : index
    %321 = vector.load %arg10[%c3_243, %c0_244, %c0_245] : memref<5x32x32xbf16, #tpu.memory_space<vmem>>, vector<1x32x32xbf16>
    %322 = vector.shape_cast %321 : vector<1x32x32xbf16> to vector<32x32xbf16>
    %cst_246 = arith.constant dense<0.000000e+00> : vector<8x32xf32>
    %323 = tpu.matmul %283, %322, %cst_246 {dimension_numbers = #tpu.dot_dimension_numbers<[1], [0], [0], [1], [0, 0, 1, 1], [], []>} : vector<8x32xbf16>, vector<32x32xbf16>, vector<8x32xf32> -> vector<8x32xf32>
    %324 = arith.addf %320, %323 : vector<8x32xf32>
    %c4_247 = arith.constant 4 : index
    %c0_248 = arith.constant 0 : index
    %c0_249 = arith.constant 0 : index
    %325 = vector.load %arg10[%c4_247, %c0_248, %c0_249] : memref<5x32x32xbf16, #tpu.memory_space<vmem>>, vector<1x32x32xbf16>
    %326 = vector.shape_cast %325 : vector<1x32x32xbf16> to vector<32x32xbf16>
    %cst_250 = arith.constant dense<0.000000e+00> : vector<8x32xf32>
    %327 = tpu.matmul %290, %326, %cst_250 {dimension_numbers = #tpu.dot_dimension_numbers<[1], [0], [0], [1], [0, 0, 1, 1], [], []>} : vector<8x32xbf16>, vector<32x32xbf16>, vector<8x32xf32> -> vector<8x32xf32>
    %328 = arith.addf %324, %327 : vector<8x32xf32>
    %329 = arith.maximumf %309, %328 : vector<8x32xf32>
    %c0_251 = arith.constant 0 : index
    %c0_252 = arith.constant 0 : index
    %330 = vector.load %arg11[%c0_251, %c0_252] : memref<1x32xf32, #tpu.memory_space<vmem>>, vector<1x32xf32>
    %331 = vector.broadcast %330 : vector<1x32xf32> to vector<8x32xf32>
    %332 = arith.addf %329, %331 : vector<8x32xf32>
    %cst_253 = arith.constant 0.000000e+00 : f32
    %333 = vector.broadcast %cst_253 : f32 to vector<8x32xf32>
    %334 = arith.maximumf %332, %333 : vector<8x32xf32>
    %c0_254 = arith.constant 0 : index
    %c0_255 = arith.constant 0 : index
    %335 = vector.load %arg12[%c0_254, %c0_255] : memref<1x32xf32, #tpu.memory_space<vmem>>, vector<1x32xf32>
    %336 = vector.broadcast %335 : vector<1x32xf32> to vector<8x32xf32>
    %337 = arith.mulf %334, %336 : vector<8x32xf32>
    %c0_256 = arith.constant 0 : index
    %c0_257 = arith.constant 0 : index
    %338 = vector.load %arg13[%c0_256, %c0_257] : memref<1x32xf32, #tpu.memory_space<vmem>>, vector<1x32xf32>
    %339 = vector.broadcast %338 : vector<1x32xf32> to vector<8x32xf32>
    %340 = arith.addf %337, %339 : vector<8x32xf32>
    %cst_258 = arith.constant 0.000000e+00 : f32
    %341 = vector.broadcast %cst_258 : f32 to vector<8x32xf32>
    %342 = tpu.concatenate %341, %340, %341 in 0 : vector<8x32xf32>, vector<8x32xf32>, vector<8x32xf32> -> vector<24x32xf32>
    %343 = vector.extract_strided_slice %342 {offsets = [4, 0], sizes = [8, 32], strides = [1, 1]} : vector<24x32xf32> to vector<8x32xf32>
    %344 = arith.truncf %343 : vector<8x32xf32> to vector<8x32xbf16>
    %345 = vector.extract_strided_slice %342 {offsets = [6, 0], sizes = [8, 32], strides = [1, 1]} : vector<24x32xf32> to vector<8x32xf32>
    %346 = arith.truncf %345 : vector<8x32xf32> to vector<8x32xbf16>
    %347 = arith.truncf %340 : vector<8x32xf32> to vector<8x32xbf16>
    %348 = vector.extract_strided_slice %342 {offsets = [10, 0], sizes = [8, 32], strides = [1, 1]} : vector<24x32xf32> to vector<8x32xf32>
    %349 = arith.truncf %348 : vector<8x32xf32> to vector<8x32xbf16>
    %350 = vector.extract_strided_slice %342 {offsets = [12, 0], sizes = [8, 32], strides = [1, 1]} : vector<24x32xf32> to vector<8x32xf32>
    %351 = arith.truncf %350 : vector<8x32xf32> to vector<8x32xbf16>
    %c0_259 = arith.constant 0 : index
    %c0_260 = arith.constant 0 : index
    %c0_261 = arith.constant 0 : index
    %352 = vector.load %arg14[%c0_259, %c0_260, %c0_261] : memref<5x32x16xbf16, #tpu.memory_space<vmem>>, vector<1x32x16xbf16>
    %353 = vector.shape_cast %352 : vector<1x32x16xbf16> to vector<32x16xbf16>
    %cst_262 = arith.constant dense<0.000000e+00> : vector<8x16xf32>
    %354 = tpu.matmul %344, %353, %cst_262 {dimension_numbers = #tpu.dot_dimension_numbers<[1], [0], [0], [1], [0, 0, 1, 1], [], []>} : vector<8x32xbf16>, vector<32x16xbf16>, vector<8x16xf32> -> vector<8x16xf32>
    %c1_263 = arith.constant 1 : index
    %c0_264 = arith.constant 0 : index
    %c0_265 = arith.constant 0 : index
    %355 = vector.load %arg14[%c1_263, %c0_264, %c0_265] : memref<5x32x16xbf16, #tpu.memory_space<vmem>>, vector<1x32x16xbf16>
    %356 = vector.shape_cast %355 : vector<1x32x16xbf16> to vector<32x16xbf16>
    %cst_266 = arith.constant dense<0.000000e+00> : vector<8x16xf32>
    %357 = tpu.matmul %346, %356, %cst_266 {dimension_numbers = #tpu.dot_dimension_numbers<[1], [0], [0], [1], [0, 0, 1, 1], [], []>} : vector<8x32xbf16>, vector<32x16xbf16>, vector<8x16xf32> -> vector<8x16xf32>
    %358 = arith.addf %354, %357 : vector<8x16xf32>
    %c2_267 = arith.constant 2 : index
    %c0_268 = arith.constant 0 : index
    %c0_269 = arith.constant 0 : index
    %359 = vector.load %arg14[%c2_267, %c0_268, %c0_269] : memref<5x32x16xbf16, #tpu.memory_space<vmem>>, vector<1x32x16xbf16>
    %360 = vector.shape_cast %359 : vector<1x32x16xbf16> to vector<32x16xbf16>
    %cst_270 = arith.constant dense<0.000000e+00> : vector<8x16xf32>
    %361 = tpu.matmul %347, %360, %cst_270 {dimension_numbers = #tpu.dot_dimension_numbers<[1], [0], [0], [1], [0, 0, 1, 1], [], []>} : vector<8x32xbf16>, vector<32x16xbf16>, vector<8x16xf32> -> vector<8x16xf32>
    %362 = arith.addf %358, %361 : vector<8x16xf32>
    %c3_271 = arith.constant 3 : index
    %c0_272 = arith.constant 0 : index
    %c0_273 = arith.constant 0 : index
    %363 = vector.load %arg14[%c3_271, %c0_272, %c0_273] : memref<5x32x16xbf16, #tpu.memory_space<vmem>>, vector<1x32x16xbf16>
    %364 = vector.shape_cast %363 : vector<1x32x16xbf16> to vector<32x16xbf16>
    %cst_274 = arith.constant dense<0.000000e+00> : vector<8x16xf32>
    %365 = tpu.matmul %349, %364, %cst_274 {dimension_numbers = #tpu.dot_dimension_numbers<[1], [0], [0], [1], [0, 0, 1, 1], [], []>} : vector<8x32xbf16>, vector<32x16xbf16>, vector<8x16xf32> -> vector<8x16xf32>
    %366 = arith.addf %362, %365 : vector<8x16xf32>
    %c4_275 = arith.constant 4 : index
    %c0_276 = arith.constant 0 : index
    %c0_277 = arith.constant 0 : index
    %367 = vector.load %arg14[%c4_275, %c0_276, %c0_277] : memref<5x32x16xbf16, #tpu.memory_space<vmem>>, vector<1x32x16xbf16>
    %368 = vector.shape_cast %367 : vector<1x32x16xbf16> to vector<32x16xbf16>
    %cst_278 = arith.constant dense<0.000000e+00> : vector<8x16xf32>
    %369 = tpu.matmul %351, %368, %cst_278 {dimension_numbers = #tpu.dot_dimension_numbers<[1], [0], [0], [1], [0, 0, 1, 1], [], []>} : vector<8x32xbf16>, vector<32x16xbf16>, vector<8x16xf32> -> vector<8x16xf32>
    %370 = arith.addf %366, %369 : vector<8x16xf32>
    %c0_279 = arith.constant 0 : index
    %c0_280 = arith.constant 0 : index
    %371 = vector.load %arg15[%c0_279, %c0_280] : memref<1x16xf32, #tpu.memory_space<vmem>>, vector<1x16xf32>
    %372 = vector.broadcast %371 : vector<1x16xf32> to vector<8x16xf32>
    %373 = arith.addf %370, %372 : vector<8x16xf32>
    %cst_281 = arith.constant 0.000000e+00 : f32
    %374 = vector.broadcast %cst_281 : f32 to vector<8x16xf32>
    %375 = arith.maximumf %373, %374 : vector<8x16xf32>
    %c0_282 = arith.constant 0 : index
    %c0_283 = arith.constant 0 : index
    %376 = vector.load %arg16[%c0_282, %c0_283] : memref<1x16xf32, #tpu.memory_space<vmem>>, vector<1x16xf32>
    %377 = vector.broadcast %376 : vector<1x16xf32> to vector<8x16xf32>
    %378 = arith.mulf %375, %377 : vector<8x16xf32>
    %c0_284 = arith.constant 0 : index
    %c0_285 = arith.constant 0 : index
    %379 = vector.load %arg17[%c0_284, %c0_285] : memref<1x16xf32, #tpu.memory_space<vmem>>, vector<1x16xf32>
    %380 = vector.broadcast %379 : vector<1x16xf32> to vector<8x16xf32>
    %381 = arith.addf %378, %380 : vector<8x16xf32>
    %cst_286 = arith.constant 0.000000e+00 : f32
    %382 = vector.broadcast %cst_286 : f32 to vector<8x16xf32>
    %383 = tpu.concatenate %382, %381, %382 in 0 : vector<8x16xf32>, vector<8x16xf32>, vector<8x16xf32> -> vector<24x16xf32>
    %384 = vector.extract_strided_slice %383 {offsets = [4, 0], sizes = [8, 16], strides = [1, 1]} : vector<24x16xf32> to vector<8x16xf32>
    %385 = arith.truncf %384 : vector<8x16xf32> to vector<8x16xbf16>
    %386 = arith.truncf %381 : vector<8x16xf32> to vector<8x16xbf16>
    %387 = vector.extract_strided_slice %383 {offsets = [12, 0], sizes = [8, 16], strides = [1, 1]} : vector<24x16xf32> to vector<8x16xf32>
    %388 = arith.truncf %387 : vector<8x16xf32> to vector<8x16xbf16>
    %c1_287 = arith.constant 1 : index
    %c0_288 = arith.constant 0 : index
    %c0_289 = arith.constant 0 : index
    %389 = vector.load %arg18[%c1_287, %c0_288, %c0_289] : memref<5x16x16xbf16, #tpu.memory_space<vmem>>, vector<1x16x16xbf16>
    %390 = vector.shape_cast %389 : vector<1x16x16xbf16> to vector<16x16xbf16>
    %cst_290 = arith.constant dense<0.000000e+00> : vector<8x16xf32>
    %391 = tpu.matmul %385, %390, %cst_290 {dimension_numbers = #tpu.dot_dimension_numbers<[1], [0], [0], [1], [0, 0, 1, 1], [], []>} : vector<8x16xbf16>, vector<16x16xbf16>, vector<8x16xf32> -> vector<8x16xf32>
    %c2_291 = arith.constant 2 : index
    %c0_292 = arith.constant 0 : index
    %c0_293 = arith.constant 0 : index
    %392 = vector.load %arg18[%c2_291, %c0_292, %c0_293] : memref<5x16x16xbf16, #tpu.memory_space<vmem>>, vector<1x16x16xbf16>
    %393 = vector.shape_cast %392 : vector<1x16x16xbf16> to vector<16x16xbf16>
    %cst_294 = arith.constant dense<0.000000e+00> : vector<8x16xf32>
    %394 = tpu.matmul %386, %393, %cst_294 {dimension_numbers = #tpu.dot_dimension_numbers<[1], [0], [0], [1], [0, 0, 1, 1], [], []>} : vector<8x16xbf16>, vector<16x16xbf16>, vector<8x16xf32> -> vector<8x16xf32>
    %395 = arith.addf %391, %394 : vector<8x16xf32>
    %c3_295 = arith.constant 3 : index
    %c0_296 = arith.constant 0 : index
    %c0_297 = arith.constant 0 : index
    %396 = vector.load %arg18[%c3_295, %c0_296, %c0_297] : memref<5x16x16xbf16, #tpu.memory_space<vmem>>, vector<1x16x16xbf16>
    %397 = vector.shape_cast %396 : vector<1x16x16xbf16> to vector<16x16xbf16>
    %cst_298 = arith.constant dense<0.000000e+00> : vector<8x16xf32>
    %398 = tpu.matmul %388, %397, %cst_298 {dimension_numbers = #tpu.dot_dimension_numbers<[1], [0], [0], [1], [0, 0, 1, 1], [], []>} : vector<8x16xbf16>, vector<16x16xbf16>, vector<8x16xf32> -> vector<8x16xf32>
    %399 = arith.addf %395, %398 : vector<8x16xf32>
    %c0_299 = arith.constant 0 : index
    %c0_300 = arith.constant 0 : index
    %400 = vector.load %arg19[%c0_299, %c0_300] : memref<1x16xf32, #tpu.memory_space<vmem>>, vector<1x16xf32>
    %401 = vector.broadcast %400 : vector<1x16xf32> to vector<8x16xf32>
    %402 = arith.addf %399, %401 : vector<8x16xf32>
    %cst_301 = arith.constant 0.000000e+00 : f32
    %403 = vector.broadcast %cst_301 : f32 to vector<8x16xf32>
    %404 = arith.maximumf %402, %403 : vector<8x16xf32>
    %c0_302 = arith.constant 0 : index
    %c0_303 = arith.constant 0 : index
    %405 = vector.load %arg20[%c0_302, %c0_303] : memref<1x16xf32, #tpu.memory_space<vmem>>, vector<1x16xf32>
    %406 = vector.broadcast %405 : vector<1x16xf32> to vector<8x16xf32>
    %407 = arith.mulf %404, %406 : vector<8x16xf32>
    %c0_304 = arith.constant 0 : index
    %c0_305 = arith.constant 0 : index
    %408 = vector.load %arg21[%c0_304, %c0_305] : memref<1x16xf32, #tpu.memory_space<vmem>>, vector<1x16xf32>
    %409 = vector.broadcast %408 : vector<1x16xf32> to vector<8x16xf32>
    %410 = arith.addf %407, %409 : vector<8x16xf32>
    %411 = arith.truncf %381 : vector<8x16xf32> to vector<8x16xbf16>
    %c2_306 = arith.constant 2 : index
    %c0_307 = arith.constant 0 : index
    %c0_308 = arith.constant 0 : index
    %412 = vector.load %arg22[%c2_306, %c0_307, %c0_308] : memref<5x16x16xbf16, #tpu.memory_space<vmem>>, vector<1x16x16xbf16>
    %413 = vector.shape_cast %412 : vector<1x16x16xbf16> to vector<16x16xbf16>
    %cst_309 = arith.constant dense<0.000000e+00> : vector<8x16xf32>
    %414 = tpu.matmul %411, %413, %cst_309 {dimension_numbers = #tpu.dot_dimension_numbers<[1], [0], [0], [1], [0, 0, 1, 1], [], []>} : vector<8x16xbf16>, vector<16x16xbf16>, vector<8x16xf32> -> vector<8x16xf32>
    %415 = arith.truncf %410 : vector<8x16xf32> to vector<8x16xbf16>
    %c2_310 = arith.constant 2 : index
    %c0_311 = arith.constant 0 : index
    %c0_312 = arith.constant 0 : index
    %416 = vector.load %arg23[%c2_310, %c0_311, %c0_312] : memref<5x16x16xbf16, #tpu.memory_space<vmem>>, vector<1x16x16xbf16>
    %417 = vector.shape_cast %416 : vector<1x16x16xbf16> to vector<16x16xbf16>
    %cst_313 = arith.constant dense<0.000000e+00> : vector<8x16xf32>
    %418 = tpu.matmul %415, %417, %cst_313 {dimension_numbers = #tpu.dot_dimension_numbers<[1], [0], [0], [1], [0, 0, 1, 1], [], []>} : vector<8x16xbf16>, vector<16x16xbf16>, vector<8x16xf32> -> vector<8x16xf32>
    %419 = arith.addf %414, %418 : vector<8x16xf32>
    %c0_314 = arith.constant 0 : index
    %c0_315 = arith.constant 0 : index
    %420 = vector.load %arg24[%c0_314, %c0_315] : memref<1x16xf32, #tpu.memory_space<vmem>>, vector<1x16xf32>
    %421 = vector.broadcast %420 : vector<1x16xf32> to vector<8x16xf32>
    %422 = arith.addf %419, %421 : vector<8x16xf32>
    %cst_316 = arith.constant 0.000000e+00 : f32
    %423 = vector.broadcast %cst_316 : f32 to vector<8x16xf32>
    %424 = arith.maximumf %422, %423 : vector<8x16xf32>
    %c0_317 = arith.constant 0 : index
    %c0_318 = arith.constant 0 : index
    %425 = vector.load %arg25[%c0_317, %c0_318] : memref<1x16xf32, #tpu.memory_space<vmem>>, vector<1x16xf32>
    %426 = vector.broadcast %425 : vector<1x16xf32> to vector<8x16xf32>
    %427 = arith.mulf %424, %426 : vector<8x16xf32>
    %c0_319 = arith.constant 0 : index
    %c0_320 = arith.constant 0 : index
    %428 = vector.load %arg26[%c0_319, %c0_320] : memref<1x16xf32, #tpu.memory_space<vmem>>, vector<1x16xf32>
    %429 = vector.broadcast %428 : vector<1x16xf32> to vector<8x16xf32>
    %430 = arith.addf %427, %429 : vector<8x16xf32>
    %431 = arith.truncf %381 : vector<8x16xf32> to vector<8x16xbf16>
    %c2_321 = arith.constant 2 : index
    %c0_322 = arith.constant 0 : index
    %c0_323 = arith.constant 0 : index
    %432 = vector.load %arg27[%c2_321, %c0_322, %c0_323] : memref<5x16x16xbf16, #tpu.memory_space<vmem>>, vector<1x16x16xbf16>
    %433 = vector.shape_cast %432 : vector<1x16x16xbf16> to vector<16x16xbf16>
    %cst_324 = arith.constant dense<0.000000e+00> : vector<8x16xf32>
    %434 = tpu.matmul %431, %433, %cst_324 {dimension_numbers = #tpu.dot_dimension_numbers<[1], [0], [0], [1], [0, 0, 1, 1], [], []>} : vector<8x16xbf16>, vector<16x16xbf16>, vector<8x16xf32> -> vector<8x16xf32>
    %435 = arith.truncf %410 : vector<8x16xf32> to vector<8x16xbf16>
    %c2_325 = arith.constant 2 : index
    %c0_326 = arith.constant 0 : index
    %c0_327 = arith.constant 0 : index
    %436 = vector.load %arg28[%c2_325, %c0_326, %c0_327] : memref<5x16x16xbf16, #tpu.memory_space<vmem>>, vector<1x16x16xbf16>
    %437 = vector.shape_cast %436 : vector<1x16x16xbf16> to vector<16x16xbf16>
    %cst_328 = arith.constant dense<0.000000e+00> : vector<8x16xf32>
    %438 = tpu.matmul %435, %437, %cst_328 {dimension_numbers = #tpu.dot_dimension_numbers<[1], [0], [0], [1], [0, 0, 1, 1], [], []>} : vector<8x16xbf16>, vector<16x16xbf16>, vector<8x16xf32> -> vector<8x16xf32>
    %439 = arith.addf %434, %438 : vector<8x16xf32>
    %440 = arith.truncf %430 : vector<8x16xf32> to vector<8x16xbf16>
    %c2_329 = arith.constant 2 : index
    %c0_330 = arith.constant 0 : index
    %c0_331 = arith.constant 0 : index
    %441 = vector.load %arg29[%c2_329, %c0_330, %c0_331] : memref<5x16x16xbf16, #tpu.memory_space<vmem>>, vector<1x16x16xbf16>
    %442 = vector.shape_cast %441 : vector<1x16x16xbf16> to vector<16x16xbf16>
    %cst_332 = arith.constant dense<0.000000e+00> : vector<8x16xf32>
    %443 = tpu.matmul %440, %442, %cst_332 {dimension_numbers = #tpu.dot_dimension_numbers<[1], [0], [0], [1], [0, 0, 1, 1], [], []>} : vector<8x16xbf16>, vector<16x16xbf16>, vector<8x16xf32> -> vector<8x16xf32>
    %444 = arith.addf %439, %443 : vector<8x16xf32>
    %c0_333 = arith.constant 0 : index
    %c0_334 = arith.constant 0 : index
    %445 = vector.load %arg30[%c0_333, %c0_334] : memref<1x16xf32, #tpu.memory_space<vmem>>, vector<1x16xf32>
    %446 = vector.broadcast %445 : vector<1x16xf32> to vector<8x16xf32>
    %447 = arith.addf %444, %446 : vector<8x16xf32>
    %cst_335 = arith.constant 0.000000e+00 : f32
    %448 = vector.broadcast %cst_335 : f32 to vector<8x16xf32>
    %449 = arith.maximumf %447, %448 : vector<8x16xf32>
    %c0_336 = arith.constant 0 : index
    %c0_337 = arith.constant 0 : index
    %450 = vector.load %arg31[%c0_336, %c0_337] : memref<1x16xf32, #tpu.memory_space<vmem>>, vector<1x16xf32>
    %451 = vector.broadcast %450 : vector<1x16xf32> to vector<8x16xf32>
    %452 = arith.mulf %449, %451 : vector<8x16xf32>
    %c0_338 = arith.constant 0 : index
    %c0_339 = arith.constant 0 : index
    %453 = vector.load %arg32[%c0_338, %c0_339] : memref<1x16xf32, #tpu.memory_space<vmem>>, vector<1x16xf32>
    %454 = vector.broadcast %453 : vector<1x16xf32> to vector<8x16xf32>
    %455 = arith.addf %452, %454 : vector<8x16xf32>
    %c0_340 = arith.constant 0 : index
    %c0_341 = arith.constant 0 : index
    %456 = vector.load %arg33[%c0_340, %c0_341] : memref<1x16xbf16, #tpu.memory_space<vmem>>, vector<1x16xbf16>
    %457 = arith.truncf %381 : vector<8x16xf32> to vector<8x16xbf16>
    %cst_342 = arith.constant dense<0.000000e+00> : vector<1x8xf32>
    %458 = tpu.matmul %456, %457, %cst_342 {dimension_numbers = #tpu.dot_dimension_numbers<[1], [1], [0], [0], [0, 0, 1, 0], [], []>} : vector<1x16xbf16>, vector<8x16xbf16>, vector<1x8xf32> -> vector<1x8xf32>
    %c0_343 = arith.constant 0 : index
    %c0_344 = arith.constant 0 : index
    %459 = vector.load %arg34[%c0_343, %c0_344] : memref<1x16xbf16, #tpu.memory_space<vmem>>, vector<1x16xbf16>
    %460 = arith.truncf %410 : vector<8x16xf32> to vector<8x16xbf16>
    %cst_345 = arith.constant dense<0.000000e+00> : vector<1x8xf32>
    %461 = tpu.matmul %459, %460, %cst_345 {dimension_numbers = #tpu.dot_dimension_numbers<[1], [1], [0], [0], [0, 0, 1, 0], [], []>} : vector<1x16xbf16>, vector<8x16xbf16>, vector<1x8xf32> -> vector<1x8xf32>
    %462 = arith.addf %458, %461 : vector<1x8xf32>
    %c0_346 = arith.constant 0 : index
    %c0_347 = arith.constant 0 : index
    %463 = vector.load %arg35[%c0_346, %c0_347] : memref<1x16xbf16, #tpu.memory_space<vmem>>, vector<1x16xbf16>
    %464 = arith.truncf %430 : vector<8x16xf32> to vector<8x16xbf16>
    %cst_348 = arith.constant dense<0.000000e+00> : vector<1x8xf32>
    %465 = tpu.matmul %463, %464, %cst_348 {dimension_numbers = #tpu.dot_dimension_numbers<[1], [1], [0], [0], [0, 0, 1, 0], [], []>} : vector<1x16xbf16>, vector<8x16xbf16>, vector<1x8xf32> -> vector<1x8xf32>
    %466 = arith.addf %462, %465 : vector<1x8xf32>
    %c0_349 = arith.constant 0 : index
    %c0_350 = arith.constant 0 : index
    %467 = vector.load %arg36[%c0_349, %c0_350] : memref<1x16xbf16, #tpu.memory_space<vmem>>, vector<1x16xbf16>
    %468 = arith.truncf %455 : vector<8x16xf32> to vector<8x16xbf16>
    %cst_351 = arith.constant dense<0.000000e+00> : vector<1x8xf32>
    %469 = tpu.matmul %467, %468, %cst_351 {dimension_numbers = #tpu.dot_dimension_numbers<[1], [1], [0], [0], [0, 0, 1, 0], [], []>} : vector<1x16xbf16>, vector<8x16xbf16>, vector<1x8xf32> -> vector<1x8xf32>
    %470 = arith.addf %466, %469 : vector<1x8xf32>
    %c0_352 = arith.constant 0 : index
    %c0_353 = arith.constant 0 : index
    %471 = vector.load %arg37[%c0_352, %c0_353] : memref<1x1xf32, #tpu.memory_space<vmem>>, vector<1x1xf32>
    %472 = vector.broadcast %471 : vector<1x1xf32> to vector<1x8xf32>
    %473 = arith.addf %470, %472 : vector<1x8xf32>
    %cst_354 = arith.constant 0.000000e+00 : f32
    %474 = vector.broadcast %cst_354 : f32 to vector<1x8xf32>
    %475 = arith.maximumf %473, %474 : vector<1x8xf32>
    %c0_355 = arith.constant 0 : index
    %c0_356 = arith.constant 0 : index
    %c0_357 = arith.constant 0 : index
    %476 = vector.load %arg38[%c0_355, %c0_356, %c0_357] : memref<1x1x8xf32, #tpu.memory_space<vmem>>, vector<1x1x8xf32>
    %477 = vector.shape_cast %476 : vector<1x1x8xf32> to vector<1x8xf32>
    %478 = vector.shape_cast %475 : vector<1x8xf32> to vector<1x1x8xf32>
    tpu.vector_store %arg38[%c0_355, %c0_356, %c0_357], %478 {strides = array<i32>} : memref<1x1x8xf32, #tpu.memory_space<vmem>>, vector<1x1x8xf32>,
    return
  }
  func.func @transform_0(%arg0: i32) -> (i32, i32, i32) {
    %c0_i32 = arith.constant 0 : i32
    %c0_i32_0 = arith.constant 0 : i32
    %c0_i32_1 = arith.constant 0 : i32
    return %arg0, %c0_i32, %c0_i32_0 : i32, i32, i32
  }
  func.func @transform_1(%arg0: i32) -> (i32, i32, i32) {
    %c0_i32 = arith.constant 0 : i32
    %c0_i32_0 = arith.constant 0 : i32
    %c0_i32_1 = arith.constant 0 : i32
    %c0_i32_2 = arith.constant 0 : i32
    return %c0_i32, %c0_i32_0, %c0_i32_1 : i32, i32, i32
  }
  func.func @transform_2(%arg0: i32) -> (i32, i32) {
    %c0_i32 = arith.constant 0 : i32
    %c0_i32_0 = arith.constant 0 : i32
    %c0_i32_1 = arith.constant 0 : i32
    return %c0_i32, %c0_i32_0 : i32, i32
  }
  func.func @transform_3(%arg0: i32) -> (i32, i32) {
    %c0_i32 = arith.constant 0 : i32
    %c0_i32_0 = arith.constant 0 : i32
    %c0_i32_1 = arith.constant 0 : i32
    return %c0_i32, %c0_i32_0 : i32, i32
  }
  func.func @transform_4(%arg0: i32) -> (i32, i32) {
    %c0_i32 = arith.constant 0 : i32
    %c0_i32_0 = arith.constant 0 : i32
    %c0_i32_1 = arith.constant 0 : i32
    return %c0_i32, %c0_i32_0 : i32, i32
  }
  func.func @transform_5(%arg0: i32) -> (i32, i32, i32) {
    %c0_i32 = arith.constant 0 : i32
    %c0_i32_0 = arith.constant 0 : i32
    %c0_i32_1 = arith.constant 0 : i32
    %c0_i32_2 = arith.constant 0 : i32
    return %c0_i32, %c0_i32_0, %c0_i32_1 : i32, i32, i32
  }
  func.func @transform_6(%arg0: i32) -> (i32, i32) {
    %c0_i32 = arith.constant 0 : i32
    %c0_i32_0 = arith.constant 0 : i32
    %c0_i32_1 = arith.constant 0 : i32
    return %c0_i32, %c0_i32_0 : i32, i32
  }
  func.func @transform_7(%arg0: i32) -> (i32, i32) {
    %c0_i32 = arith.constant 0 : i32
    %c0_i32_0 = arith.constant 0 : i32
    %c0_i32_1 = arith.constant 0 : i32
    return %c0_i32, %c0_i32_0 : i32, i32
  }
  func.func @transform_8(%arg0: i32) -> (i32, i32) {
    %c0_i32 = arith.constant 0 : i32
    %c0_i32_0 = arith.constant 0 : i32
    %c0_i32_1 = arith.constant 0 : i32
    return %c0_i32, %c0_i32_0 : i32, i32
  }
  func.func @transform_9(%arg0: i32) -> (i32, i32, i32) {
    %c0_i32 = arith.constant 0 : i32
    %c0_i32_0 = arith.constant 0 : i32
    %c0_i32_1 = arith.constant 0 : i32
    %c0_i32_2 = arith.constant 0 : i32
    return %c0_i32, %c0_i32_0, %c0_i32_1 : i32, i32, i32
  }
  func.func @transform_10(%arg0: i32) -> (i32, i32) {
    %c0_i32 = arith.constant 0 : i32
    %c0_i32_0 = arith.constant 0 : i32
    %c0_i32_1 = arith.constant 0 : i32
    return %c0_i32, %c0_i32_0 : i32, i32
  }
  func.func @transform_11(%arg0: i32) -> (i32, i32) {
    %c0_i32 = arith.constant 0 : i32
    %c0_i32_0 = arith.constant 0 : i32
    %c0_i32_1 = arith.constant 0 : i32
    return %c0_i32, %c0_i32_0 : i32, i32
  }
  func.func @transform_12(%arg0: i32) -> (i32, i32) {
    %c0_i32 = arith.constant 0 : i32
    %c0_i32_0 = arith.constant 0 : i32
    %c0_i32_1 = arith.constant 0 : i32
    return %c0_i32, %c0_i32_0 : i32, i32
  }
  func.func @transform_13(%arg0: i32) -> (i32, i32, i32) {
    %c0_i32 = arith.constant 0 : i32
    %c0_i32_0 = arith.constant 0 : i32
    %c0_i32_1 = arith.constant 0 : i32
    %c0_i32_2 = arith.constant 0 : i32
    return %c0_i32, %c0_i32_0, %c0_i32_1 : i32, i32, i32
  }
  func.func @transform_14(%arg0: i32) -> (i32, i32) {
    %c0_i32 = arith.constant 0 : i32
    %c0_i32_0 = arith.constant 0 : i32
    %c0_i32_1 = arith.constant 0 : i32
    return %c0_i32, %c0_i32_0 : i32, i32
  }
  func.func @transform_15(%arg0: i32) -> (i32, i32) {
    %c0_i32 = arith.constant 0 : i32
    %c0_i32_0 = arith.constant 0 : i32
    %c0_i32_1 = arith.constant 0 : i32
    return %c0_i32, %c0_i32_0 : i32, i32
  }
  func.func @transform_16(%arg0: i32) -> (i32, i32) {
    %c0_i32 = arith.constant 0 : i32
    %c0_i32_0 = arith.constant 0 : i32
    %c0_i32_1 = arith.constant 0 : i32
    return %c0_i32, %c0_i32_0 : i32, i32
  }
  func.func @transform_17(%arg0: i32) -> (i32, i32, i32) {
    %c0_i32 = arith.constant 0 : i32
    %c0_i32_0 = arith.constant 0 : i32
    %c0_i32_1 = arith.constant 0 : i32
    %c0_i32_2 = arith.constant 0 : i32
    return %c0_i32, %c0_i32_0, %c0_i32_1 : i32, i32, i32
  }
  func.func @transform_18(%arg0: i32) -> (i32, i32) {
    %c0_i32 = arith.constant 0 : i32
    %c0_i32_0 = arith.constant 0 : i32
    %c0_i32_1 = arith.constant 0 : i32
    return %c0_i32, %c0_i32_0 : i32, i32
  }
  func.func @transform_19(%arg0: i32) -> (i32, i32) {
    %c0_i32 = arith.constant 0 : i32
    %c0_i32_0 = arith.constant 0 : i32
    %c0_i32_1 = arith.constant 0 : i32
    return %c0_i32, %c0_i32_0 : i32, i32
  }
  func.func @transform_20(%arg0: i32) -> (i32, i32) {
    %c0_i32 = arith.constant 0 : i32
    %c0_i32_0 = arith.constant 0 : i32
    %c0_i32_1 = arith.constant 0 : i32
    return %c0_i32, %c0_i32_0 : i32, i32
  }
  func.func @transform_21(%arg0: i32) -> (i32, i32, i32) {
    %c0_i32 = arith.constant 0 : i32
    %c0_i32_0 = arith.constant 0 : i32
    %c0_i32_1 = arith.constant 0 : i32
    %c0_i32_2 = arith.constant 0 : i32
    return %c0_i32, %c0_i32_0, %c0_i32_1 : i32, i32, i32
  }
  func.func @transform_22(%arg0: i32) -> (i32, i32, i32) {
    %c0_i32 = arith.constant 0 : i32
    %c0_i32_0 = arith.constant 0 : i32
    %c0_i32_1 = arith.constant 0 : i32
    %c0_i32_2 = arith.constant 0 : i32
    return %c0_i32, %c0_i32_0, %c0_i32_1 : i32, i32, i32
  }
  func.func @transform_23(%arg0: i32) -> (i32, i32) {
    %c0_i32 = arith.constant 0 : i32
    %c0_i32_0 = arith.constant 0 : i32
    %c0_i32_1 = arith.constant 0 : i32
    return %c0_i32, %c0_i32_0 : i32, i32
  }
  func.func @transform_24(%arg0: i32) -> (i32, i32) {
    %c0_i32 = arith.constant 0 : i32
    %c0_i32_0 = arith.constant 0 : i32
    %c0_i32_1 = arith.constant 0 : i32
    return %c0_i32, %c0_i32_0 : i32, i32
  }
  func.func @transform_25(%arg0: i32) -> (i32, i32) {
    %c0_i32 = arith.constant 0 : i32
    %c0_i32_0 = arith.constant 0 : i32
    %c0_i32_1 = arith.constant 0 : i32
    return %c0_i32, %c0_i32_0 : i32, i32
  }
  func.func @transform_26(%arg0: i32) -> (i32, i32, i32) {
    %c0_i32 = arith.constant 0 : i32
    %c0_i32_0 = arith.constant 0 : i32
    %c0_i32_1 = arith.constant 0 : i32
    %c0_i32_2 = arith.constant 0 : i32
    return %c0_i32, %c0_i32_0, %c0_i32_1 : i32, i32, i32
  }
  func.func @transform_27(%arg0: i32) -> (i32, i32, i32) {
    %c0_i32 = arith.constant 0 : i32
    %c0_i32_0 = arith.constant 0 : i32
    %c0_i32_1 = arith.constant 0 : i32
    %c0_i32_2 = arith.constant 0 : i32
    return %c0_i32, %c0_i32_0, %c0_i32_1 : i32, i32, i32
  }
  func.func @transform_28(%arg0: i32) -> (i32, i32, i32) {
    %c0_i32 = arith.constant 0 : i32
    %c0_i32_0 = arith.constant 0 : i32
    %c0_i32_1 = arith.constant 0 : i32
    %c0_i32_2 = arith.constant 0 : i32
    return %c0_i32, %c0_i32_0, %c0_i32_1 : i32, i32, i32
  }
  func.func @transform_29(%arg0: i32) -> (i32, i32) {
    %c0_i32 = arith.constant 0 : i32
    %c0_i32_0 = arith.constant 0 : i32
    %c0_i32_1 = arith.constant 0 : i32
    return %c0_i32, %c0_i32_0 : i32, i32
  }
  func.func @transform_30(%arg0: i32) -> (i32, i32) {
    %c0_i32 = arith.constant 0 : i32
    %c0_i32_0 = arith.constant 0 : i32
    %c0_i32_1 = arith.constant 0 : i32
    return %c0_i32, %c0_i32_0 : i32, i32
  }
  func.func @transform_31(%arg0: i32) -> (i32, i32) {
    %c0_i32 = arith.constant 0 : i32
    %c0_i32_0 = arith.constant 0 : i32
    %c0_i32_1 = arith.constant 0 : i32
    return %c0_i32, %c0_i32_0 : i32, i32
  }
  func.func @transform_32(%arg0: i32) -> (i32, i32) {
    %c0_i32 = arith.constant 0 : i32
    %c0_i32_0 = arith.constant 0 : i32
    %c0_i32_1 = arith.constant 0 : i32
    return %c0_i32, %c0_i32_0 : i32, i32
  }
  func.func @transform_33(%arg0: i32) -> (i32, i32) {
    %c0_i32 = arith.constant 0 : i32
    %c0_i32_0 = arith.constant 0 : i32
    %c0_i32_1 = arith.constant 0 : i32
    return %c0_i32, %c0_i32_0 : i32, i32
  }
  func.func @transform_34(%arg0: i32) -> (i32, i32) {
    %c0_i32 = arith.constant 0 : i32
    %c0_i32_0 = arith.constant 0 : i32
    %c0_i32_1 = arith.constant 0 : i32
    return %c0_i32, %c0_i32_0 : i32, i32
  }
  func.func @transform_35(%arg0: i32) -> (i32, i32) {
    %c0_i32 = arith.constant 0 : i32
    %c0_i32_0 = arith.constant 0 : i32
    %c0_i32_1 = arith.constant 0 : i32
    return %c0_i32, %c0_i32_0 : i32, i32
  }
  func.func @transform_36(%arg0: i32) -> (i32, i32) {
    %c0_i32 = arith.constant 0 : i32
    %c0_i32_0 = arith.constant 0 : i32
    %c0_i32_1 = arith.constant 0 : i32
    return %c0_i32, %c0_i32_0 : i32, i32
  }
  func.func @transform_37(%arg0: i32) -> (i32, i32, i32) {
    %c0_i32 = arith.constant 0 : i32
    %c0_i32_0 = arith.constant 0 : i32
    %c0_i32_1 = arith.constant 0 : i32
    return %arg0, %c0_i32, %c0_i32_0 : i32, i32, i32
  }
}

</mosaic_0001>

<bundles_post_ra>
// kernel: tpu_custom_call.1
= control target key start
LH: loop header
LB: loop body
LE: loop exit
PB: predicated region body
PF: predicated region fallthrough
CT: control target
= control target key end

     0   :  { %s7754_s6 = smov 1   ;;  %s7755_s10 = smov 2   ;;  %s8834_s0 = inlined_call_operand.smem [shape: u32[38], index: -1, kind: input, shape index: {}] }
   0x1   :  { %s7803_s5 = sld [smem:[%s8834_s0]]   ;;  %s7756_s14 = smov 3  }
   0x2   :  { %s7808_s9 = sld [smem:[%s8834_s0 + %s7754_s6]]   ;;  %s7757_s18 = smov 4  }
   0x3   :  { %s7813_s13 = sld [smem:[%s8834_s0 + %s7755_s10]]   ;;  %s7758_s22 = smov 5  }
   0x4   :  { %s7818_s17 = sld [smem:[%s8834_s0 + %s7756_s14]]   ;;  %s7759_s26 = smov 6  }
   0x5   :  { %s7823_s21 = sld [smem:[%s8834_s0 + %s7757_s18]]   ;;  %s7760_s30 = smov 7  }
   0x6   :  { %s7828_s25 = sld [smem:[%s8834_s0 + %s7758_s22]]   ;;  %s7761_s4 = smov 8  }
   0x7   :  { %8838 = sst [smem:[#allocation6_spill]] %s7803_s5  ;;  %s7762_s10 = smov 9  }
   0x8   :  { %8839 = sst [smem:[#allocation7_spill]] %s7808_s9  ;;  %s7763_s15 = smov 10  }
   0x9   :  { %s7833_s29 = sld [smem:[%s8834_s0 + %s7759_s26]]   ;;  %s7764_s20 = smov 11  }
   0xa   :  { %s7838_s3 = sld [smem:[%s8834_s0 + %s7760_s30]]   ;;  %s7765_s26 = smov 12  }
   0xb   :  { %s7843_s8 = sld [smem:[%s8834_s0 + %s7761_s4]]   ;;  %s7766_s1 = smov 13  }
   0xc   :  { %s7848_s14 = sld [smem:[%s8834_s0 + %s7762_s10]]   ;;  %s7767_s7 = smov 14  }
   0xd   :  { %s7853_s19 = sld [smem:[%s8834_s0 + %s7763_s15]]   ;;  %s7768_s15 = smov 15  }
   0xe   :  { %s7858_s24 = sld [smem:[%s8834_s0 + %s7764_s20]]   ;;  %s7769_s22 = smov 16  }
   0xf   :  { %s7863_s30 = sld [smem:[%s8834_s0 + %s7765_s26]]   ;;  %s7770_s28 = smov 17  }
  0x10   :  { %8840 = sst [smem:[#allocation8_spill]] %s7838_s3 }
  0x11   :  { %8841 = sst [smem:[#allocation9_spill]] %s7843_s8 }
  0x12   :  { %s7868_s6 = sld [smem:[%s8834_s0 + %s7766_s1]]   ;;  %s7790_s1 = smov 37  }
  0x13   :  { %s7873_s12 = sld [smem:[%s8834_s0 + %s7767_s7]]   ;;  %s7771_s7 = smov 18  }
  0x14   :  { %s7878_s20 = sld [smem:[%s8834_s0 + %s7768_s15]]   ;;  %s7772_s15 = smov 19  }
  0x15   :  { %s7883_s27 = sld [smem:[%s8834_s0 + %s7769_s22]]   ;;  %s7773_s22 = smov 20  }
  0x16   :  { %s7888_s4 = sld [smem:[%s8834_s0 + %s7770_s28]]   ;;  %s7774_s28 = smov 21  }
  0x18   :  { %8842 = sst [smem:[#allocation10_spill]] %s7868_s6 }
  0x19   :  { %8843 = sst [smem:[#allocation11_spill]] %s7873_s12 }
  0x1a   :  { %8844 = sst [smem:[#allocation12_spill]] %s7878_s20 }
  0x1b   :  { %8845 = sst [smem:[#allocation13_spill]] %s7883_s27 }
  0x1c   :  { %8846 = sst [smem:[#allocation14_spill]] %s7888_s4 }
  0x1d   :  { %s7893_s12 = sld [smem:[%s8834_s0 + %s7771_s7]]   ;;  %s7775_s7 = smov 22  }
  0x1e   :  { %s7898_s20 = sld [smem:[%s8834_s0 + %s7772_s15]]   ;;  %s7776_s15 = smov 23  }
  0x1f   :  { %s7903_s27 = sld [smem:[%s8834_s0 + %s7773_s22]]   ;;  %s7777_s22 = smov 24  }
  0x20   :  { %s7908_s4 = sld [smem:[%s8834_s0 + %s7774_s28]]   ;;  %s7778_s28 = smov 25  }
  0x23   :  { %8847 = sst [smem:[#allocation15_spill]] %s7893_s12 }
  0x24   :  { %8848 = sst [smem:[#allocation16_spill]] %s7898_s20 }
  0x25   :  { %8849 = sst [smem:[#allocation17_spill]] %s7903_s27 }
  0x26   :  { %8850 = sst [smem:[#allocation18_spill]] %s7908_s4 }
  0x27   :  { %s7913_s12 = sld [smem:[%s8834_s0 + %s7775_s7]]   ;;  %s7779_s7 = smov 26  }
  0x28   :  { %s7918_s20 = sld [smem:[%s8834_s0 + %s7776_s15]]   ;;  %s7780_s15 = smov 27  }
  0x29   :  { %s7923_s27 = sld [smem:[%s8834_s0 + %s7777_s22]]   ;;  %s7781_s22 = smov 28  }
  0x2a   :  { %s7928_s4 = sld [smem:[%s8834_s0 + %s7778_s28]]   ;;  %s7782_s28 = smov 29  }
  0x2d   :  { %8851 = sst [smem:[#allocation19_spill]] %s7913_s12 }
  0x2e   :  { %8852 = sst [smem:[#allocation20_spill]] %s7918_s20 }
  0x2f   :  { %8853 = sst [smem:[#allocation21_spill]] %s7923_s27 }
  0x30   :  { %8854 = sst [smem:[#allocation22_spill]] %s7928_s4 }
  0x31   :  { %s7933_s12 = sld [smem:[%s8834_s0 + %s7779_s7]]   ;;  %s7783_s7 = smov 30  }
  0x32   :  { %s7938_s20 = sld [smem:[%s8834_s0 + %s7780_s15]]   ;;  %s7784_s15 = smov 31  }
  0x33   :  { %s7943_s27 = sld [smem:[%s8834_s0 + %s7781_s22]]   ;;  %s7785_s22 = smov 32  }
  0x34   :  { %s7948_s4 = sld [smem:[%s8834_s0 + %s7782_s28]]   ;;  %s7786_s28 = smov 33  }
  0x37   :  { %8855 = sst [smem:[#allocation23_spill]] %s7933_s12 }
  0x38   :  { %8856 = sst [smem:[#allocation24_spill]] %s7938_s20 }
  0x39   :  { %8857 = sst [smem:[#allocation25_spill]] %s7943_s27 }
  0x3a   :  { %8858 = sst [smem:[#allocation26_spill]] %s7948_s4 }
  0x3b   :  { %s7953_s12 = sld [smem:[%s8834_s0 + %s7783_s7]]   ;;  %s7787_s7 = smov 34  }
  0x3c   :  { %s7958_s20 = sld [smem:[%s8834_s0 + %s7784_s15]]   ;;  %s7788_s15 = smov 35  }
  0x3d   :  { %s7963_s27 = sld [smem:[%s8834_s0 + %s7785_s22]]   ;;  %s7789_s22 = smov 36  }
  0x3e   :  { %s7968_s4 = sld [smem:[%s8834_s0 + %s7786_s28]]  }
  0x41   :  { %8859 = sst [smem:[#allocation27_spill]] %s7953_s12 }
  0x42   :  { %8860 = sst [smem:[#allocation28_spill]] %s7958_s20 }
  0x43   :  { %8861 = sst [smem:[#allocation29_spill]] %s7963_s27 }
  0x44   :  { %8862 = sst [smem:[#allocation30_spill]] %s7968_s4 }
  0x45   :  { %s7973_s12 = sld [smem:[%s8834_s0 + %s7787_s7]]  }
  0x46   :  { %s7978_s20 = sld [smem:[%s8834_s0 + %s7788_s15]]  }
  0x47   :  { %s5860_s27 = sld [smem:[%s8834_s0 + %s7789_s22]]  }
  0x48   :  { %s7986_s4 = sld [smem:[%s8834_s0 + %s7790_s1]]  }
  0x4d   :  { %v80_v0 = vstv %s5860_s27 }
  0x4e   :  { %81 = vst [vmem:[#allocation2] sm:$0x1] %v80_v0 }
  0x4f   :  { %82 = vsyncpa [#allocation4], 0 }
  0x50   :  { %84 = vsyncpa [#allocation4 + $0x1], 0  ;;  %s7988_s7 = smov 0   ;;  %s7990_s10 = smov 0  }
  0x51   :  { %s7992_s11 = smov 0   ;;  %s7994_s15 = smov 0  }
  0x52 LB: > { %s8863_s9 = sld [smem:[#allocation7_spill]]  ;;  %s8864_s6 = sld [smem:[#allocation10_spill]]  ;;  %s7744_s10 = sphi %s7990_s10, %s8891_s10   ;;  %s7740_s7 = sphi %s7988_s7, %s8890_s7   ;;  %s7752_s15 = sphi %s7994_s15, %s8893_s15   ;;  %s7748_s11 = sphi %s7992_s11, %s8892_s11  }
  0x53   : > { %s8009_s0 = sadd.s32 4294967295, %s7752_s15   ;;  %s5863_s27 = sadd.s32 4294967294, %s7752_s15  }
  0x54   : > { %s8013_s16 = sadd.s32 1, %s7752_s15   ;;  %s879_s18 = sadd.s32 1, %s7748_s11 }
  0x55   : > { %s876_s22 = ssub.s32 %s7752_s15, %s8013_s16  ;;  %p889_p0 = scmp.ne.s32.totalorder %s7748_s11, %s7744_s10 }
  0x56   : > { %p877_p1 = scmp.eq.s32.totalorder %s876_s22, 0  ;;  %p890_p2 = scmp.eq.s32.totalorder %s8009_s0, 1 }
  0x57   : > { %p895_p3 = scmp.ne.s32.totalorder %s7744_s10, %s7740_s7  ;;  %p896_p4 = scmp.eq.s32.totalorder %s5863_s27, 1 }
  0x58   : > { %s8024_s23 = scalar_select %p877_p1, %s7748_s11, %s879_s18  }
  0x59   : > { %p8026_p5 = por %p890_p2, %p889_p0  ;;  %p8030_p6 = por %p896_p4, %p895_p3 }
  0x5a   : > { %p5866_p7 = scmp.ge.s32.totalorder %s7752_s15, 1  ;;  %p1029_p8 = scmp.lt.s32.totalorder %s7752_s15, 3 }
  0x5c   : > { %p1030_p9 = pnand %p5866_p7, %p1029_p8 }
  0x5d   : > { %v7544_v1 = vld [vmem:[%s8863_s9 + $0x20] sm:$0xff] (!%p1030_p9)   ;;  %v7791_v2 = vmov (!%p1030_p9), 0.0   ;;  %v7546_v4 = vld [vmem:[%s8863_s9 + $0x28] sm:$0xff] (!%p1030_p9)   ;;  %s8867_s5 = sld [smem:[#allocation6_spill]] (!%p1030_p9)  ;;  %vm7792_vm0 = vmmov (!%p1030_p9), 0   ;;  %p1119_p10 = scmp.lt.s32.totalorder (!%p1030_p9), %s8009_s0, 1 }
  0x5e   : > { %1033 = sbr.rel (%p1030_p9) target bundleno = 2318 (0x90e), region = 168  ;;  %6648 = vmatprep.subr.bf16.mxu0 (!%p1030_p9), %v7791_v2  ;;  %6672 = vmatprep.subr.bf16.mxu1 (!%p1030_p9), %v7791_v2  ;;  %v7545_v3 = vld [vmem:[%s8863_s9 + $0x80] sm:$0xff] (!%p1030_p9)   ;;  %v7547_v5 = vld [vmem:[%s8863_s9 + $0x88] sm:$0xff] (!%p1030_p9)   ;;  %v7548_v6 = vld [vmem:[%s8863_s9 + $0x30] sm:$0xff] (!%p1030_p9)   ;;  %vm1169_vm1 = vcmask (!%p1030_p9), 523264   ;;  %vm3209_vm2 = vcmask (!%p1030_p9), 261120  }
  0x5f   : > { %6649 = vmatpush3.bf16.msra.mxu0 (!%p1030_p9), %v7544_v1  ;;  %6656 = vmatprep.mubr.msk.bf16.mxu0 (!%p1030_p9), %vm7792_vm0, %v7791_v2  ;;  %v7549_v7 = vld [vmem:[%s8863_s9 + $0x90] sm:$0xff] (!%p1030_p9)   ;;  %v7550_v8 = vld [vmem:[%s8863_s9 + $0x38] sm:$0xff] (!%p1030_p9)   ;;  %v7552_v12 = vld [vmem:[%s8863_s9] sm:$0xff] (!%p1030_p9)   ;;  %s8868_s3 = sld [smem:[#allocation8_spill]] (!%p1030_p9)  ;;  %s8869_s8 = sld [smem:[#allocation9_spill]] (!%p1030_p9)  ;;  %vm5083_vm3 = vcmask (!%p1030_p9), 130048  }
  0x60   : > { %6673 = vmatpush3.bf16.msra.mxu1 (!%p1030_p9), %v7545_v3  ;;  %6650 = vmatprep.subr.bf16.mxu0 (!%p1030_p9), %v7791_v2  ;;  %v7551_v10 = vld [vmem:[%s8863_s9 + $0x98] sm:$0xff] (!%p1030_p9)   ;;  %v7553_v13 = vld [vmem:[%s8863_s9 + $0x60] sm:$0xff] (!%p1030_p9)   ;;  %v7554_v15 = vld [vmem:[%s8863_s9 + $0x8] sm:$0xff] (!%p1030_p9)   ;;  %s8870_s18 = sld [smem:[#allocation14_spill]] (!%p1030_p9)  ;;  %s8871_s22 = sld [smem:[#allocation11_spill]] (!%p1030_p9)  ;;  %vm5756_vm4 = vcmask (!%p1030_p9), 57344  }
  0x61   : > { %6674 = vmatprep.subr.bf16.mxu1 (!%p1030_p9), %v7791_v2  ;;  %6680 = vmatprep.mubr.msk.bf16.mxu1 (!%p1030_p9), %vm7792_vm0, %v7791_v2  ;;  %v7555_v16 = vld [vmem:[%s8863_s9 + $0x68] sm:$0xff] (!%p1030_p9)   ;;  %v7556_v19 = vld [vmem:[%s8863_s9 + $0x10] sm:$0xff] (!%p1030_p9)   ;;  %v7558_v23 = vld [vmem:[%s8863_s9 + $0x18] sm:$0xff] (!%p1030_p9)  }
  0x62   : > { %v7557_v20 = vld [vmem:[%s8863_s9 + $0x70] sm:$0xff] (!%p1030_p9)   ;;  %v7559_v24 = vld [vmem:[%s8863_s9 + $0x78] sm:$0xff] (!%p1030_p9)   ;;  %v7560_v26 = vld [vmem:[%s8863_s9 + $0xe0] sm:$0xff] (!%p1030_p9)  }
  0x63   : > { %6651 = vmatpush3.bf16.msra.mxu0 (!%p1030_p9), %v7546_v4  ;;  %v7561_v27 = vld [vmem:[%s8863_s9 + $0x140] sm:$0xff] (!%p1030_p9)   ;;  %v7562_v28 = vld [vmem:[%s8863_s9 + $0xe8] sm:$0xff] (!%p1030_p9)   ;;  %v7564_v30 = vld [vmem:[%s8863_s9 + $0xf0] sm:$0xff] (!%p1030_p9)  }
  0x64   : > { %6675 = vmatpush3.bf16.msra.mxu1 (!%p1030_p9), %v7547_v5  ;;  %6652 = vmatprep.subr.bf16.mxu0 (!%p1030_p9), %v7791_v2  ;;  %v7563_v29 = vld [vmem:[%s8863_s9 + $0x148] sm:$0xff] (!%p1030_p9)   ;;  %v7565_v31 = vld [vmem:[%s8863_s9 + $0x150] sm:$0xff] (!%p1030_p9)   ;;  %v7566_v32 = vld [vmem:[%s8863_s9 + $0xf8] sm:$0xff] (!%p1030_p9)  }
  0x65   : > { %s1120_s28 = scalar_select %p1119_p10, %s8009_s0, 1  ;;  %6676 = vmatprep.subr.bf16.mxu1 %v7791_v2  ;;  %v7567_v33 = vld [vmem:[%s8863_s9 + $0x158] sm:$0xff]   ;;  %v7568_v34 = vld [vmem:[%s8863_s9 + $0xc0] sm:$0xff]   ;;  %v7570_v36 = vld [vmem:[%s8863_s9 + $0xc8] sm:$0xff]  }
  0x66   : > { %v7569_v35 = vld [vmem:[%s8863_s9 + $0x120] sm:$0xff]   ;;  %v7571_v37 = vld [vmem:[%s8863_s9 + $0x128] sm:$0xff]   ;;  %v7572_v38 = vld [vmem:[%s8863_s9 + $0xd0] sm:$0xff]  }
  0x67   : > { %s5867_s2 = sshll.u32 %s1120_s28, 3  ;;  %6653 = vmatpush3.bf16.msra.mxu0 %v7548_v6  ;;  %v7573_v39 = vld [vmem:[%s8863_s9 + $0x130] sm:$0xff]   ;;  %v7574_v40 = vld [vmem:[%s8863_s9 + $0xd8] sm:$0xff]   ;;  %v7576_v42 = vld [vmem:[%s8863_s9 + $0x1a0] sm:$0xff]   ;;  %s8872_s28 = sld [smem:[#allocation12_spill]] }
  0x68   : > { %s1122_s27 = scalar_lea.vmem %s8867_s5, %s5867_s2  ;;  %6677 = vmatpush3.bf16.msra.mxu1 %v7549_v7  ;;  %6654 = vmatprep.subr.bf16.mxu0 %v7791_v2  ;;  %v7575_v41 = vld [vmem:[%s8863_s9 + $0x138] sm:$0xff]   ;;  %v7577_v43 = vld [vmem:[%s8863_s9 + $0x200] sm:$0xff]   ;;  %v7578_v44 = vld [vmem:[%s8863_s9 + $0x1a8] sm:$0xff]   ;;  %s8873_s2 = sld [smem:[#allocation13_spill]] }
  0x69   : > { %v8056_v9 = vld [vmem:[%s1122_s27] sm:$0xff]  ;;  %6678 = vmatprep.subr.bf16.mxu1 %v7791_v2  ;;  %v7579_v45 = vld [vmem:[%s8863_s9 + $0x208] sm:$0xff]   ;;  %v7580_v46 = vld [vmem:[%s8863_s9 + $0x1b0] sm:$0xff]   ;;  %s8874_s27 = sld [smem:[#allocation18_spill]] }
  0x6a   : > { %v8063_v11 = vpack.c.bf16 %v8056_v9, %v8056_v9  ;;  %v1125_v14 = vpack.c.bf16 %v8056_v9, %v7791_v2  ;;  %v7581_v47 = vld [vmem:[%s8863_s9 + $0x210] sm:$0xff]   ;;  %v7582_v48 = vld [vmem:[%s8863_s9 + $0x1b8] sm:$0xff]   ;;  %v7584_v50 = vld [vmem:[%s8863_s9 + $0x180] sm:$0xff]   ;;  %v1127_v62 = vpack.c.bf16 %v7791_v2, %v8056_v9 }
  0x6b   : > { %6655 = vmatpush3.bf16.msra.mxu0 %v7550_v8  ;;  %v7583_v49 = vld [vmem:[%s8863_s9 + $0x218] sm:$0xff]   ;;  %v7585_v51 = vld [vmem:[%s8863_s9 + $0x260] sm:$0xff]   ;;  %v7586_v52 = vld [vmem:[%s8863_s9 + $0x188] sm:$0xff]  }
  0x6c   : > { %6679 = vmatpush3.bf16.msra.mxu1 %v7551_v10  ;;  %6660 = vmatprep.subr.bf16.mxu0 %v7791_v2  ;;  %v1214_v17 = vshrl.u32 %v1125_v14, 16  ;;  %v1217_v18 = vshll.u32 %v1125_v14, 16  ;;  %v7587_v53 = vld [vmem:[%s8863_s9 + $0x268] sm:$0xff]   ;;  %v7588_v54 = vld [vmem:[%s8863_s9 + $0x190] sm:$0xff]   ;;  %v7590_v56 = vld [vmem:[%s8863_s9 + $0x198] sm:$0xff]   ;;  %v2294_v1 = vshll.u32 %v1127_v62, 16 }
  0x6d   : > { %6684 = vmatprep.subr.bf16.mxu1 %v7791_v2  ;;  %v7589_v55 = vld [vmem:[%s8863_s9 + $0x270] sm:$0xff]   ;;  %v7591_v57 = vld [vmem:[%s8863_s9 + $0x278] sm:$0xff]   ;;  %v7592_v58 = vld [vmem:[%s8863_s9 + $0x2c0] sm:$0xff]   ;;  %v2292_v5 = vshrl.u32 %v1127_v62, 16 }
  0x6e   : > { %6657 = vmatmul.mubr.msk.bf16.vlgmr.msra.gmra.mrb[0].mxu0 %vm1169_vm1, %v8063_v11  ;;  %v1216_v21 = vrot.slane %v1214_v17, 3  ;;  %v1219_v22 = vrot.slane %v1217_v18, 4  ;;  %v7593_v59 = vld [vmem:[%s8863_s9 + $0x320] sm:$0xff]   ;;  %v7594_v60 = vld [vmem:[%s8863_s9 + $0x2c8] sm:$0xff]   ;;  %v7596_v63 = vld [vmem:[%s8863_s9 + $0x2d0] sm:$0xff]   ;;  %v2296_v7 = vrot.slane %v2294_v1, 1 }
  0x6f   : > { %6661 = vmatpush3.bf16.msra.mxu0 %v7552_v12  ;;  %6681 = vmatmul.mubr.msk.bf16.vlgmr.msra.gmra.mrb[0].mxu1 %vm1169_vm1, %v8063_v11  ;;  %v7595_v61 = vld [vmem:[%s8863_s9 + $0x328] sm:$0xff]   ;;  %v7597_v0 = vld [vmem:[%s8863_s9 + $0x330] sm:$0xff]   ;;  %v7598_v3 = vld [vmem:[%s8863_s9 + $0x2d8] sm:$0xff]  }
  0x70   : > { %6685 = vmatpush3.bf16.msra.mxu1 %v7553_v13  ;;  %6662 = vmatprep.subr.bf16.mxu0 %v7791_v2  ;;  %v8091_v25 = vor.u32 %v1219_v22, %v1216_v21  ;;  %v7599_v4 = vld [vmem:[%s8863_s9 + $0x338] sm:$0xff]   ;;  %v7600_v6 = vld [vmem:[%s8863_s9 + $0x380] sm:$0xff]   ;;  %v7602_v9 = vld [vmem:[%s8863_s9 + $0x388] sm:$0xff]   ;;  %v8241_v18 = vor.u32 %v2296_v7, %v2292_v5 }
  0x71   : > { %6686 = vmatprep.subr.bf16.mxu1 %v7791_v2  ;;  %6668 = vmatprep.mubr.msk.bf16.mxu0 %vm7792_vm0, %v7791_v2  ;;  %v7601_v8 = vld [vmem:[%s8863_s9 + $0x400] sm:$0xff]   ;;  %v7603_v10 = vld [vmem:[%s8863_s9 + $0x408] sm:$0xff]   ;;  %v7604_v12 = vld [vmem:[%s8863_s9 + $0x390] sm:$0xff]  }
  0x72   : > { %6692 = vmatprep.mubr.msk.bf16.mxu1 %vm7792_vm0, %v7791_v2  ;;  %v7605_v13 = vld [vmem:[%s8863_s9 + $0x410] sm:$0xff]   ;;  %v7606_v14 = vld [vmem:[%s8863_s9 + $0x398] sm:$0xff]   ;;  %v7608_v17 = vld [vmem:[%s8863_s9 + $0x3e0] sm:$0xff]  }
  0x73   : > { %6663 = vmatpush3.bf16.msra.mxu0 %v7554_v15  ;;  %v7607_v15 = vld [vmem:[%s8863_s9 + $0x418] sm:$0xff]   ;;  %v7613_v21 = vld [vmem:[%s8863_s9 + $0x470] sm:$0xff]  }
  0x74   : > { %6687 = vmatpush3.bf16.msra.mxu1 %v7555_v16  ;;  %6664 = vmatprep.subr.bf16.mxu0 %v7791_v2  ;;  %v7609_v16 = vld [vmem:[%s8863_s9 + $0x460] sm:$0xff]   ;;  %v7612_v22 = vld [vmem:[%s8863_s9 + $0x3f0] sm:$0xff]   ;;  %v7651_v62 = vld [vmem:[%s8863_s9 + $0x5d8] sm:$0xff]  }
  0x75   : > { %6688 = vmatprep.subr.bf16.mxu1 %v7791_v2 }
  0x77   : > { %6665 = vmatpush3.bf16.msra.mxu0 %v7556_v19  ;;  %v7611_v19 = vld [vmem:[%s8863_s9 + $0x468] sm:$0xff]  }
  0x78   : > { %6689 = vmatpush3.bf16.msra.mxu1 %v7557_v20  ;;  %6666 = vmatprep.subr.bf16.mxu0 %v7791_v2  ;;  %v7610_v20 = vld [vmem:[%s8863_s9 + $0x3e8] sm:$0xff]  }
  0x79   : > { %6690 = vmatprep.subr.bf16.mxu1 %v7791_v2 }
  0x7b   : > { %6667 = vmatpush3.bf16.msra.mxu0 %v7558_v23  ;;  %v7615_v23 = vld [vmem:[%s8863_s9 + $0x478] sm:$0xff]  }
  0x7c   : > { %6691 = vmatpush3.bf16.msra.mxu1 %v7559_v24  ;;  %6696 = vmatprep.subr.bf16.mxu0 %v7791_v2  ;;  %v7614_v24 = vld [vmem:[%s8863_s9 + $0x3f8] sm:$0xff]  }
  0x7d   : > { %6720 = vmatprep.subr.bf16.mxu1 %v7791_v2 }
  0x7e   : > { %6669 = vmatmul.mubr.msk.bf16.vlgmr.msra.gmra.mrb[0].mxu0 %vm1169_vm1, %v8091_v25 }
  0x7f   : > { %6693 = vmatmul.mubr.msk.bf16.vlgmr.msra.gmra.mrb[0].mxu1 %vm1169_vm1, %v8091_v25  ;;  %6697 = vmatpush3.bf16.msra.mxu0 %v7560_v26  ;;  %v7617_v26 = vld [vmem:[%s8863_s9 + $0x4c0] sm:$0xff]  }
  0x80   : > { %6721 = vmatpush3.bf16.msra.mxu1 %v7561_v27  ;;  %6698 = vmatprep.subr.bf16.mxu0 %v7791_v2  ;;  %v7618_v27 = vld [vmem:[%s8863_s9 + $0x448] sm:$0xff]  }
  0x81   : > { %6722 = vmatprep.subr.bf16.mxu1 %v7791_v2  ;;  %6704 = vmatprep.mubr.msk.bf16.mxu0 %vm7792_vm0, %v7791_v2 }
  0x82   : > { %6728 = vmatprep.mubr.msk.bf16.mxu1 %vm7792_vm0, %v7791_v2 }
  0x83   : > { %6699 = vmatpush3.bf16.msra.mxu0 %v7562_v28  ;;  %v7619_v28 = vld [vmem:[%s8863_s9 + $0x4c8] sm:$0xff]  }
  0x84   : > { %6723 = vmatpush3.bf16.msra.mxu1 %v7563_v29  ;;  %6700 = vmatprep.subr.bf16.mxu0 %v7791_v2  ;;  %v7620_v29 = vld [vmem:[%s8863_s9 + $0x450] sm:$0xff]  }
  0x85   : > { %6724 = vmatprep.subr.bf16.mxu1 %v7791_v2 }
  0x87   : > { %6701 = vmatpush3.bf16.msra.mxu0 %v7564_v30  ;;  %v7621_v30 = vld [vmem:[%s8863_s9 + $0x4d0] sm:$0xff]  }
  0x88   : > { %6725 = vmatpush3.bf16.msra.mxu1 %v7565_v31  ;;  %6702 = vmatprep.subr.bf16.mxu0 %v7791_v2  ;;  %v7622_v31 = vld [vmem:[%s8863_s9 + $0x458] sm:$0xff]  }
  0x89   : > { %6726 = vmatprep.subr.bf16.mxu1 %v7791_v2 }
  0x8b   : > { %6703 = vmatpush3.bf16.msra.mxu0 %v7566_v32  ;;  %v7623_v32 = vld [vmem:[%s8863_s9 + $0x4d8] sm:$0xff]  }
  0x8c   : > { %6727 = vmatpush3.bf16.msra.mxu1 %v7567_v33  ;;  %6708 = vmatprep.subr.bf16.mxu0 %v7791_v2  ;;  %v7625_v33 = vld [vmem:[%s8863_s9 + $0x520] sm:$0xff]  }
  0x8d   : > { %6732 = vmatprep.subr.bf16.mxu1 %v7791_v2 }
  0x8e   : > { %6705 = vmatmul.mubr.msk.bf16.vlgmr.msra.gmra.mrb[4].mxu0 %vm1169_vm1, %v8063_v11 }
  0x8f   : > { %6709 = vmatpush3.bf16.msra.mxu0 %v7568_v34  ;;  %6729 = vmatmul.mubr.msk.bf16.vlgmr.msra.gmra.mrb[4].mxu1 %vm1169_vm1, %v8063_v11  ;;  %v7624_v34 = vld [vmem:[%s8863_s9 + $0x4a0] sm:$0xff]  }
  0x90   : > { %6733 = vmatpush3.bf16.msra.mxu1 %v7569_v35  ;;  %6710 = vmatprep.subr.bf16.mxu0 %v7791_v2  ;;  %v7627_v35 = vld [vmem:[%s8863_s9 + $0x528] sm:$0xff]  }
  0x91   : > { %6734 = vmatprep.subr.bf16.mxu1 %v7791_v2  ;;  %6716 = vmatprep.mubr.msk.bf16.mxu0 %vm7792_vm0, %v7791_v2 }
  0x92   : > { %6740 = vmatprep.mubr.msk.bf16.mxu1 %vm7792_vm0, %v7791_v2 }
  0x93   : > { %6711 = vmatpush3.bf16.msra.mxu0 %v7570_v36  ;;  %v7626_v36 = vld [vmem:[%s8863_s9 + $0x4a8] sm:$0xff]  }
  0x94   : > { %6735 = vmatpush3.bf16.msra.mxu1 %v7571_v37  ;;  %6712 = vmatprep.subr.bf16.mxu0 %v7791_v2  ;;  %v7629_v37 = vld [vmem:[%s8863_s9 + $0x530] sm:$0xff]  }
  0x95   : > { %6736 = vmatprep.subr.bf16.mxu1 %v7791_v2 }
  0x97   : > { %6713 = vmatpush3.bf16.msra.mxu0 %v7572_v38  ;;  %v7628_v38 = vld [vmem:[%s8863_s9 + $0x4b0] sm:$0xff]  }
  0x98   : > { %6737 = vmatpush3.bf16.msra.mxu1 %v7573_v39  ;;  %6714 = vmatprep.subr.bf16.mxu0 %v7791_v2  ;;  %v7631_v39 = vld [vmem:[%s8863_s9 + $0x538] sm:$0xff]  }
  0x99   : > { %6738 = vmatprep.subr.bf16.mxu1 %v7791_v2 }
  0x9b   : > { %6715 = vmatpush3.bf16.msra.mxu0 %v7574_v40  ;;  %v7630_v40 = vld [vmem:[%s8863_s9 + $0x4b8] sm:$0xff]  }
  0x9c   : > { %6739 = vmatpush3.bf16.msra.mxu1 %v7575_v41  ;;  %6744 = vmatprep.subr.bf16.mxu0 %v7791_v2  ;;  %v7632_v41 = vld [vmem:[%s8863_s9 + $0x500] sm:$0xff]  }
  0x9d   : > { %6768 = vmatprep.subr.bf16.mxu1 %v7791_v2 }
  0x9e   : > { %6717 = vmatmul.mubr.msk.bf16.vlgmr.msra.gmra.mrb[4].mxu0 %vm1169_vm1, %v8091_v25 }
  0x9f   : > { %6741 = vmatmul.mubr.msk.bf16.vlgmr.msra.gmra.mrb[4].mxu1 %vm1169_vm1, %v8091_v25  ;;  %6745 = vmatpush3.bf16.msra.mxu0 %v7576_v42  ;;  %v7633_v42 = vld [vmem:[%s8863_s9 + $0x580] sm:$0xff]  }
  0xa0   : > { %6769 = vmatpush3.bf16.msra.mxu1 %v7577_v43  ;;  %6746 = vmatprep.subr.bf16.mxu0 %v7791_v2  ;;  %v7634_v43 = vld [vmem:[%s8863_s9 + $0x508] sm:$0xff]  }
  0xa1   : > { %6770 = vmatprep.subr.bf16.mxu1 %v7791_v2  ;;  %6752 = vmatprep.mubr.msk.bf16.mxu0 %vm7792_vm0, %v7791_v2 }
  0xa2   : > { %6776 = vmatprep.mubr.msk.bf16.mxu1 %vm7792_vm0, %v7791_v2 }
  0xa3   : > { %6747 = vmatpush3.bf16.msra.mxu0 %v7578_v44  ;;  %v7635_v44 = vld [vmem:[%s8863_s9 + $0x588] sm:$0xff]  }
  0xa4   : > { %6771 = vmatpush3.bf16.msra.mxu1 %v7579_v45  ;;  %6748 = vmatprep.subr.bf16.mxu0 %v7791_v2  ;;  %v7636_v45 = vld [vmem:[%s8863_s9 + $0x510] sm:$0xff]  }
  0xa5   : > { %6772 = vmatprep.subr.bf16.mxu1 %v7791_v2 }
  0xa7   : > { %6749 = vmatpush3.bf16.msra.mxu0 %v7580_v46  ;;  %v7637_v46 = vld [vmem:[%s8863_s9 + $0x590] sm:$0xff]  }
  0xa8   : > { %6773 = vmatpush3.bf16.msra.mxu1 %v7581_v47  ;;  %6750 = vmatprep.subr.bf16.mxu0 %v7791_v2  ;;  %v7638_v47 = vld [vmem:[%s8863_s9 + $0x518] sm:$0xff]  }
  0xa9   : > { %6774 = vmatprep.subr.bf16.mxu1 %v7791_v2 }
  0xab   : > { %6751 = vmatpush3.bf16.msra.mxu0 %v7582_v48  ;;  %v7639_v48 = vld [vmem:[%s8863_s9 + $0x598] sm:$0xff]  }
  0xac   : > { %6775 = vmatpush3.bf16.msra.mxu1 %v7583_v49  ;;  %6756 = vmatprep.subr.bf16.mxu0 %v7791_v2  ;;  %v7641_v49 = vld [vmem:[%s8863_s9 + $0x5e0] sm:$0xff]  }
  0xad   : > { %6780 = vmatprep.subr.bf16.mxu1 %v7791_v2 }
  0xae   : > { %6753 = vmatmul.mubr.msk.bf16.vlgmr.msra.gmra.mrb[8].mxu0 %vm1169_vm1, %v8063_v11 }
  0xaf   : > { %6757 = vmatpush3.bf16.msra.mxu0 %v7584_v50  ;;  %6777 = vmatmul.mubr.msk.bf16.vlgmr.msra.gmra.mrb[8].mxu1 %vm1169_vm1, %v8063_v11  ;;  %v7640_v50 = vld [vmem:[%s8863_s9 + $0x560] sm:$0xff]  }
  0xb0   : > { %6781 = vmatpush3.bf16.msra.mxu1 %v7585_v51  ;;  %6758 = vmatprep.subr.bf16.mxu0 %v7791_v2  ;;  %v7643_v51 = vld [vmem:[%s8863_s9 + $0x5e8] sm:$0xff]  }
  0xb1   : > { %6782 = vmatprep.subr.bf16.mxu1 %v7791_v2  ;;  %6764 = vmatprep.mubr.msk.bf16.mxu0 %vm7792_vm0, %v7791_v2 }
  0xb2   : > { %6788 = vmatprep.mubr.msk.bf16.mxu1 %vm7792_vm0, %v7791_v2 }
  0xb3   : > { %6759 = vmatpush3.bf16.msra.mxu0 %v7586_v52  ;;  %v7642_v52 = vld [vmem:[%s8863_s9 + $0x568] sm:$0xff]  }
  0xb4   : > { %6783 = vmatpush3.bf16.msra.mxu1 %v7587_v53  ;;  %6760 = vmatprep.subr.bf16.mxu0 %v7791_v2  ;;  %v7645_v53 = vld [vmem:[%s8863_s9 + $0x5f0] sm:$0xff]  }
  0xb5   : > { %6784 = vmatprep.subr.bf16.mxu1 %v7791_v2 }
  0xb7   : > { %6761 = vmatpush3.bf16.msra.mxu0 %v7588_v54  ;;  %v7644_v54 = vld [vmem:[%s8863_s9 + $0x570] sm:$0xff]  }
  0xb8   : > { %6785 = vmatpush3.bf16.msra.mxu1 %v7589_v55  ;;  %6762 = vmatprep.subr.bf16.mxu0 %v7791_v2  ;;  %v7647_v55 = vld [vmem:[%s8863_s9 + $0x5f8] sm:$0xff]  }
  0xb9   : > { %6786 = vmatprep.subr.bf16.mxu1 %v7791_v2 }
  0xbb   : > { %6763 = vmatpush3.bf16.msra.mxu0 %v7590_v56  ;;  %v7646_v56 = vld [vmem:[%s8863_s9 + $0x578] sm:$0xff]  }
  0xbc   : > { %6787 = vmatpush3.bf16.msra.mxu1 %v7591_v57  ;;  %6792 = vmatprep.subr.bf16.mxu0 %v7791_v2  ;;  %v7648_v57 = vld [vmem:[%s8863_s9 + $0x5c0] sm:$0xff]  }
  0xbd   : > { %6804 = vmatprep.subr.bf16.mxu1 %v7791_v2 }
  0xbe   : > { %6765 = vmatmul.mubr.msk.bf16.vlgmr.msra.gmra.mrb[8].mxu0 %vm1169_vm1, %v8091_v25  ;;  %v7616_v25 = vld [vmem:[%s8863_s9 + $0x440] sm:$0xff]  }
  0xbf   : > { %6789 = vmatmul.mubr.msk.bf16.vlgmr.msra.gmra.mrb[12].mxu1 %vm1169_vm1, %v8063_v11  ;;  %6793 = vmatpush3.bf16.msra.mxu0 %v7592_v58  ;;  %v7649_v58 = vld [vmem:[%s8863_s9 + $0x5c8] sm:$0xff]  }
  0xc0   : > { %6805 = vmatpush3.bf16.msra.mxu1 %v7593_v59  ;;  %6794 = vmatprep.subr.bf16.mxu0 %v7791_v2  ;;  %v8370_v59 = vld [vmem:[%s7828_s25 + $0x10] sm:$0xff]  }
  0xc1   : > { %6806 = vmatprep.subr.bf16.mxu1 %v7791_v2  ;;  %6800 = vmatprep.mubr.msk.bf16.mxu0 %vm7792_vm0, %v7791_v2 }
  0xc2   : > { %6812 = vmatprep.mubr.msk.bf16.mxu1 %vm7792_vm0, %v7791_v2 }
  0xc3   : > { %6795 = vmatpush3.bf16.msra.mxu0 %v7594_v60  ;;  %v7650_v60 = vld [vmem:[%s8863_s9 + $0x5d0] sm:$0xff]  }
  0xc4   : > { %6807 = vmatpush3.bf16.msra.mxu1 %v7595_v61  ;;  %6796 = vmatprep.subr.bf16.mxu0 %v7791_v2  ;;  %v8381_v61 = vld [vmem:[%s7828_s25 + $0x18] sm:$0xff]  }
  0xc5   : > { %6808 = vmatprep.subr.bf16.mxu1 %v7791_v2 }
  0xc7   : > { %6797 = vmatpush3.bf16.msra.mxu0 %v7596_v63 }
  0xc8   : > { %6809 = vmatpush3.bf16.msra.mxu1 %v7597_v0  ;;  %6798 = vmatprep.subr.bf16.mxu0 %v7791_v2 }
  0xc9   : > { %6810 = vmatprep.subr.bf16.mxu1 %v7791_v2 }
  0xcb   : > { %6799 = vmatpush3.bf16.msra.mxu0 %v7598_v3 }
  0xcc   : > { %6811 = vmatpush3.bf16.msra.mxu1 %v7599_v4  ;;  %6816 = vmatprep.subr.bf16.mxu0 %v7791_v2 }
  0xcd   : > { %6828 = vmatprep.subr.bf16.mxu1 %v7791_v2 }
  0xce   : > { %6801 = vmatmul.mubr.msk.bf16.vlgmr.msra.gmra.mrb[12].mxu0 %vm1169_vm1, %v8063_v11 }
  0xcf   : > { %6813 = vmatmul.mubr.msk.bf16.vlgmr.msra.gmra.mrb[16].mxu1 %vm1169_vm1, %v8063_v11  ;;  %6817 = vmatpush3.bf16.msra.mxu0 %v7600_v6 }
  0xd0   : > { %6829 = vmatpush3.bf16.msra.mxu1 %v7601_v8  ;;  %6818 = vmatprep.subr.bf16.mxu0 %v7791_v2 }
  0xd1   : > { %6830 = vmatprep.subr.bf16.mxu1 %v7791_v2  ;;  %6824 = vmatprep.mubr.msk.bf16.mxu0 %vm7792_vm0, %v7791_v2 }
  0xd2   : > { %6836 = vmatprep.mubr.msk.bf16.mxu1 %vm7792_vm0, %v7791_v2 }
  0xd3   : > { %6819 = vmatpush3.bf16.msra.mxu0 %v7602_v9 }
  0xd4   : > { %6831 = vmatpush3.bf16.msra.mxu1 %v7603_v10  ;;  %6820 = vmatprep.subr.bf16.mxu0 %v7791_v2 }
  0xd5   : > { %6832 = vmatprep.subr.bf16.mxu1 %v7791_v2 }
  0xd7   : > { %6821 = vmatpush3.bf16.msra.mxu0 %v7604_v12 }
  0xd8   : > { %6833 = vmatpush3.bf16.msra.mxu1 %v7605_v13  ;;  %6822 = vmatprep.subr.bf16.mxu0 %v7791_v2  ;;  %v8398_v13 = vld [vmem:[%s7813_s13] ss:$0 sm:$0xff] }
  0xd9   : > { %6834 = vmatprep.subr.bf16.mxu1 %v7791_v2 }
  0xdb   : > { %6823 = vmatpush3.bf16.msra.mxu0 %v7606_v14 }
  0xdc   : > { %6835 = vmatpush3.bf16.msra.mxu1 %v7607_v15  ;;  %6852 = vmatprep.subr.bf16.mxu0 %v7791_v2 }
  0xdd   : > { %6840 = vmatprep.subr.bf16.mxu1 %v7791_v2 }
  0xde   : > { %6825 = vmatmul.mubr.msk.bf16.vlgmr.msra.gmra.mrb[16].mxu0 %vm1169_vm1, %v8063_v11 }
  0xdf   : > { %6837 = vmatmul.mubr.msk.bf16.vlgmr.msra.gmra.mrb[20].mxu1 %vm1169_vm1, %v8241_v18  ;;  %6853 = vmatpush3.bf16.msra.mxu0 %v7609_v16 }
  0xe0   : > { %6841 = vmatpush3.bf16.msra.mxu1 %v7608_v17  ;;  %6854 = vmatprep.subr.bf16.mxu0 %v7791_v2 }
  0xe1   : > { %6842 = vmatprep.subr.bf16.mxu1 %v7791_v2  ;;  %6848 = vmatprep.mubr.msk.bf16.mxu1 %vm7792_vm0, %v7791_v2 }
  0xe2   : > { %6860 = vmatprep.mubr.msk.bf16.mxu0 %vm7792_vm0, %v7791_v2 }
  0xe3   : > { %6855 = vmatpush3.bf16.msra.mxu0 %v7611_v19 }
  0xe4   : > { %6843 = vmatpush3.bf16.msra.mxu1 %v7610_v20  ;;  %6856 = vmatprep.subr.bf16.mxu0 %v7791_v2 }
  0xe5   : > { %6844 = vmatprep.subr.bf16.mxu1 %v7791_v2 }
  0xe7   : > { %6857 = vmatpush3.bf16.msra.mxu0 %v7613_v21  ;;  %v8402_v21 = vld [vmem:[%s7818_s17] ss:$0 sm:$0xff] }
  0xe8   : > { %6845 = vmatpush3.bf16.msra.mxu1 %v7612_v22  ;;  %6858 = vmatprep.subr.bf16.mxu0 %v7791_v2 }
  0xe9   : > { %6846 = vmatprep.subr.bf16.mxu1 %v7791_v2 }
  0xeb   : > { %6859 = vmatpush3.bf16.msra.mxu0 %v7615_v23  ;;  %v8405_v23 = vld [vmem:[%s7823_s21] ss:$0 sm:$0xff] }
  0xec   : > { %6847 = vmatpush3.bf16.msra.mxu1 %v7614_v24  ;;  %6864 = vmatprep.subr.bf16.mxu0 %v7791_v2 }
  0xed   : > { %6876 = vmatprep.subr.bf16.mxu1 %v7791_v2 }
  0xee   : > { %6861 = vmatmul.mubr.msk.bf16.vlgmr.msra.gmra.mrb[20].mxu0 %vm1169_vm1, %v8241_v18 }
  0xef   : > { %6849 = vmatmul.mubr.msk.bf16.vlgmr.msra.gmra.mrb[20].mxu1 %vm1169_vm1, %v8063_v11  ;;  %6865 = vmatpush3.bf16.msra.mxu0 %v7616_v25 }
  0xf0   : > { %6877 = vmatpush3.bf16.msra.mxu1 %v7617_v26  ;;  %6866 = vmatprep.subr.bf16.mxu0 %v7791_v2 }
  0xf1   : > { %6878 = vmatprep.subr.bf16.mxu1 %v7791_v2  ;;  %6872 = vmatprep.mubr.msk.bf16.mxu0 %vm7792_vm0, %v7791_v2 }
  0xf2   : > { %6884 = vmatprep.mubr.msk.bf16.mxu1 %vm7792_vm0, %v7791_v2 }
  0xf3   : > { %6867 = vmatpush3.bf16.msra.mxu0 %v7618_v27 }
  0xf4   : > { %6879 = vmatpush3.bf16.msra.mxu1 %v7619_v28  ;;  %6868 = vmatprep.subr.bf16.mxu0 %v7791_v2 }
  0xf5   : > { %6880 = vmatprep.subr.bf16.mxu1 %v7791_v2 }
  0xf7   : > { %6869 = vmatpush3.bf16.msra.mxu0 %v7620_v29 }
  0xf8   : > { %6881 = vmatpush3.bf16.msra.mxu1 %v7621_v30  ;;  %6870 = vmatprep.subr.bf16.mxu0 %v7791_v2 }
  0xf9   : > { %6882 = vmatprep.subr.bf16.mxu1 %v7791_v2 }
  0xfb   : > { %6871 = vmatpush3.bf16.msra.mxu0 %v7622_v31 }
  0xfc   : > { %6883 = vmatpush3.bf16.msra.mxu1 %v7623_v32  ;;  %6900 = vmatprep.subr.bf16.mxu0 %v7791_v2 }
  0xfd   : > { %6888 = vmatprep.subr.bf16.mxu1 %v7791_v2 }
  0xfe   : > { %6873 = vmatmul.mubr.msk.bf16.vlgmr.msra.gmra.mrb[20].mxu0 %vm1169_vm1, %v8063_v11 }
  0xff   : > { %6885 = vmatmul.mubr.msk.bf16.vlgmr.msra.gmra.mrb[24].mxu1 %vm1169_vm1, %v8241_v18  ;;  %6901 = vmatpush3.bf16.msra.mxu0 %v7625_v33 }
 0x100   : > { %6889 = vmatpush3.bf16.msra.mxu1 %v7624_v34  ;;  %6902 = vmatprep.subr.bf16.mxu0 %v7791_v2 }
 0x101   : > { %6890 = vmatprep.subr.bf16.mxu1 %v7791_v2  ;;  %6896 = vmatprep.mubr.msk.bf16.mxu1 %vm7792_vm0, %v7791_v2 }
 0x102   : > { %6908 = vmatprep.mubr.msk.bf16.mxu0 %vm7792_vm0, %v7791_v2 }
 0x103   : > { %6903 = vmatpush3.bf16.msra.mxu0 %v7627_v35 }
 0x104   : > { %6891 = vmatpush3.bf16.msra.mxu1 %v7626_v36  ;;  %6904 = vmatprep.subr.bf16.mxu0 %v7791_v2 }
 0x105   : > { %6892 = vmatprep.subr.bf16.mxu1 %v7791_v2 }
 0x107   : > { %6905 = vmatpush3.bf16.msra.mxu0 %v7629_v37 }
 0x108   : > { %6893 = vmatpush3.bf16.msra.mxu1 %v7628_v38  ;;  %6906 = vmatprep.subr.bf16.mxu0 %v7791_v2 }
 0x109   : > { %6894 = vmatprep.subr.bf16.mxu1 %v7791_v2 }
 0x10b   : > { %6907 = vmatpush3.bf16.msra.mxu0 %v7631_v39 }
 0x10c   : > { %6895 = vmatpush3.bf16.msra.mxu1 %v7630_v40  ;;  %6912 = vmatprep.subr.bf16.mxu0 %v7791_v2 }
 0x10d   : > { %6924 = vmatprep.subr.bf16.mxu1 %v7791_v2 }
 0x10e   : > { %6909 = vmatmul.mubr.msk.bf16.vlgmr.msra.gmra.mrb[24].mxu0 %vm1169_vm1, %v8241_v18 }
 0x10f   : > { %6897 = vmatmul.mubr.msk.bf16.vlgmr.msra.gmra.mrb[24].mxu1 %vm1169_vm1, %v8063_v11  ;;  %6913 = vmatpush3.bf16.msra.mxu0 %v7632_v41  ;;  %v8420_v41 = vld [vmem:[%s7828_s25] sm:$0xff]  }
 0x110   : > { %6925 = vmatpush3.bf16.msra.mxu1 %v7633_v42  ;;  %6914 = vmatprep.subr.bf16.mxu0 %v7791_v2  ;;  %v8425_v42 = vld [vmem:[%s7828_s25 + $0x8] sm:$0xff]  }
 0x111   : > { %6926 = vmatprep.subr.bf16.mxu1 %v7791_v2  ;;  %6920 = vmatprep.mubr.msk.bf16.mxu0 %vm7792_vm0, %v7791_v2 }
 0x112   : > { %6932 = vmatprep.mubr.msk.bf16.mxu1 %vm7792_vm0, %v7791_v2 }
 0x113   : > { %6915 = vmatpush3.bf16.msra.mxu0 %v7634_v43 }
 0x114   : > { %6927 = vmatpush3.bf16.msra.mxu1 %v7635_v44  ;;  %6916 = vmatprep.subr.bf16.mxu0 %v7791_v2 }
 0x115   : > { %6928 = vmatprep.subr.bf16.mxu1 %v7791_v2 }
 0x117   : > { %6917 = vmatpush3.bf16.msra.mxu0 %v7636_v45 }
 0x118   : > { %6929 = vmatpush3.bf16.msra.mxu1 %v7637_v46  ;;  %6918 = vmatprep.subr.bf16.mxu0 %v7791_v2 }
 0x119   : > { %6930 = vmatprep.subr.bf16.mxu1 %v7791_v2 }
 0x11b   : > { %6919 = vmatpush3.bf16.msra.mxu0 %v7638_v47 }
 0x11c   : > { %6931 = vmatpush3.bf16.msra.mxu1 %v7639_v48  ;;  %6948 = vmatprep.subr.bf16.mxu0 %v7791_v2 }
 0x11d   : > { %6936 = vmatprep.subr.bf16.mxu1 %v7791_v2 }
 0x11e   : > { %6921 = vmatmul.mubr.msk.bf16.vlgmr.msra.gmra.mrb[24].mxu0 %vm1169_vm1, %v8063_v11 }
 0x11f   : > { %6933 = vmatmul.mubr.msk.bf16.vlgmr.msra.gmra.mrb[28].mxu1 %vm1169_vm1, %v8241_v18  ;;  %6949 = vmatpush3.bf16.msra.mxu0 %v7641_v49 }
 0x120   : > { %6937 = vmatpush3.bf16.msra.mxu1 %v7640_v50  ;;  %6950 = vmatprep.subr.bf16.mxu0 %v7791_v2 }
 0x121   : > { %6938 = vmatprep.subr.bf16.mxu1 %v7791_v2  ;;  %6944 = vmatprep.mubr.msk.bf16.mxu1 %vm7792_vm0, %v7791_v2 }
 0x122   : > { %6956 = vmatprep.mubr.msk.bf16.mxu0 %vm7792_vm0, %v7791_v2 }
 0x123   : > { %6951 = vmatpush3.bf16.msra.mxu0 %v7643_v51 }
 0x124   : > { %6939 = vmatpush3.bf16.msra.mxu1 %v7642_v52  ;;  %6952 = vmatprep.subr.bf16.mxu0 %v7791_v2 }
 0x125   : > { %6940 = vmatprep.subr.bf16.mxu1 %v7791_v2 }
 0x127   : > { %6953 = vmatpush3.bf16.msra.mxu0 %v7645_v53 }
 0x128   : > { %6941 = vmatpush3.bf16.msra.mxu1 %v7644_v54  ;;  %6954 = vmatprep.subr.bf16.mxu0 %v7791_v2 }
 0x129   : > { %6942 = vmatprep.subr.bf16.mxu1 %v7791_v2 }
 0x12b   : > { %6955 = vmatpush3.bf16.msra.mxu0 %v7647_v55 }
 0x12c   : > { %6943 = vmatpush3.bf16.msra.mxu1 %v7646_v56  ;;  %6960 = vmatprep.subr.bf16.mxu0 %v7791_v2 }
 0x12d   : > { %6972 = vmatprep.subr.bf16.mxu1 %v7791_v2 }
 0x12e   : > { %6957 = vmatmul.mubr.msk.bf16.vlgmr.msra.gmra.mrb[28].mxu0 %vm1169_vm1, %v8241_v18 }
 0x12f   : > { %6945 = vmatmul.mubr.msk.bf16.vlgmr.msra.gmra.mrb[28].mxu1 %vm1169_vm1, %v8063_v11  ;;  %6961 = vmatpush3.bf16.msra.mxu0 %v7648_v57 }
 0x130   : > { %6962 = vmatprep.subr.bf16.mxu0 %v7791_v2  ;;  %6968 = vmatprep.mubr.msk.bf16.mxu0 %vm7792_vm0, %v7791_v2 }
 0x131   : > { %6973 = vmatpush3.bf16.msra.mxu1 %v8370_v59  ;;  %6976 = vmatprep.mubr.msk.bf16.mxu1 %vm7792_vm0, %v7791_v2 }
 0x132   : > { %6974 = vmatprep.subr.bf16.mxu1 %v7791_v2 }
 0x133   : > { %6963 = vmatpush3.bf16.msra.mxu0 %v7649_v58 }
 0x134   : > { %6964 = vmatprep.subr.bf16.mxu0 %v7791_v2 }
 0x135   : > { %6975 = vmatpush3.bf16.msra.mxu1 %v8381_v61 }
 0x136   : > { %6980 = vmatprep.subr.bf16.mxu1 %v7791_v2 }
 0x137   : > { %6965 = vmatpush3.bf16.msra.mxu0 %v7650_v60 }
 0x138   : > { %6966 = vmatprep.subr.bf16.mxu0 %v7791_v2 }
 0x13b   : > { %6967 = vmatpush3.bf16.msra.mxu0 %v7651_v62 }
 0x13c   : > { %7012 = vmatprep.subr.bf16.mxu0 %v7791_v2 }
 0x13e   : > { %6969 = vmatmul.mubr.msk.bf16.vlgmr.msra.gmra.mrb[28].mxu0 %vm1169_vm1, %v8063_v11 }
 0x13f   : > { %7013 = vmatpush3.bf16.msra.mxu0 %v8370_v59  ;;  %7016 = vmatprep.mubr.msk.bf16.mxu0 %vm7792_vm0, %v7791_v2 }
 0x140   : > { %7014 = vmatprep.subr.bf16.mxu0 %v7791_v2 }
 0x143   : > { %7015 = vmatpush3.bf16.msra.mxu0 %v8381_v61 }
 0x144   : > { %7020 = vmatprep.subr.bf16.mxu0 %v7791_v2 }
 0x151   : > { %v1282_v63 = vpop.f32.mrb[0].mxu0 }
 0x152   : > { %v1428_v0 = vpop.f32.mrb[0].mxu1  ;;  %v6670_v1 = vpop.f32.mrb[1].mxu0 }
 0x153   : > { %v1434_v3 = vmax.f32 %v1282_v63, %v1428_v0  ;;  %v6694_v4 = vpop.f32.mrb[1].mxu1  ;;  %v1285_v5 = vpop.f32.mrb[2].mxu0 }
 0x154   : > { %v1431_v11 = vpop.f32.mrb[2].mxu1  ;;  %v6671_v6 = vpop.f32.mrb[3].mxu0 }
 0x155   : > { %v6695_v7 = vpop.f32.mrb[3].mxu1 }
 0x171   : > { %v1575_v8 = vpop.f32.mrb[4].mxu0 }
 0x172   : > { %v1581_v9 = vmax.f32 %v1434_v3, %v1575_v8  ;;  %v1722_v10 = vpop.f32.mrb[4].mxu1  ;;  %v6718_v12 = vpop.f32.mrb[5].mxu0 }
 0x173   : > { %v6742_v14 = vpop.f32.mrb[5].mxu1  ;;  %v1578_v15 = vpop.f32.mrb[6].mxu0 }
 0x174   : > { %v1728_v16 = vmax.f32 %v1581_v9, %v1722_v10  ;;  %v1725_v17 = vpop.f32.mrb[6].mxu1  ;;  %v6719_v18 = vpop.f32.mrb[7].mxu0 }
 0x175   : > { %v6743_v19 = vpop.f32.mrb[7].mxu1 }
 0x176   : > { %v1736_v20 = vadd.f32 %v8398_v13, %v1728_v16 }
 0x178   : > { %v1737_v22 = vmax.f32 %v1736_v20, 0.0 }
 0x17a   : > { %v1745_v24 = vmul.f32 %v8402_v21, %v1737_v22 }
 0x17c   : > { %v8409_v25 = vadd.f32 %v8405_v23, %v1745_v24 }
 0x17e   : > { %v8413_v26 = vpack.c.bf16 %v8409_v25, %v8409_v25 }
 0x180   : > { %7017 = vmatmul.mubr.msk.bf16.vlgmr.msra.gmra.mrb[32].mxu0 %vm3209_vm2, %v8413_v26 }
 0x181   : > { %7024 = vmatprep.mubr.msk.bf16.mxu0 %vm7792_vm0, %v7791_v2  ;;  %7021 = vmatpush3.bf16.msra.mxu0 %v8420_v41 }
 0x182   : > { %v1967_v27 = vpop.f32.mrb[8].mxu1  ;;  %7022 = vmatprep.subr.bf16.mxu0 %v7791_v2 }
 0x183   : > { %v6778_v28 = vpop.f32.mrb[9].mxu1 }
 0x184   : > { %v1970_v29 = vpop.f32.mrb[10].mxu1 }
 0x185   : > { %v6779_v30 = vpop.f32.mrb[11].mxu1  ;;  %7023 = vmatpush3.bf16.msra.mxu0 %v8425_v42 }
 0x186   : > { %7028 = vmatprep.subr.bf16.mxu0 %v7791_v2 }
 0x191   : > { %v1894_v31 = vpop.f32.mrb[8].mxu0 }
 0x192   : > { %v1973_v32 = vmax.f32 %v1894_v31, %v1967_v27  ;;  %v6766_v33 = vpop.f32.mrb[9].mxu0  ;;  %v2041_v34 = vpop.f32.mrb[12].mxu1 }
 0x193   : > { %v1897_v35 = vpop.f32.mrb[10].mxu0  ;;  %v6790_v36 = vpop.f32.mrb[13].mxu1 }
 0x194   : > { %v2047_v37 = vmax.f32 %v1973_v32, %v2041_v34  ;;  %v6767_v38 = vpop.f32.mrb[11].mxu0  ;;  %v2044_v39 = vpop.f32.mrb[14].mxu1 }
 0x195   : > { %v6791_v40 = vpop.f32.mrb[15].mxu1 }
 0x1a1   : > { %v2115_v43 = vpop.f32.mrb[12].mxu0 }
 0x1a2   : > { %v2121_v44 = vmax.f32 %v2047_v37, %v2115_v43  ;;  %v6802_v45 = vpop.f32.mrb[13].mxu0  ;;  %v2193_v46 = vpop.f32.mrb[16].mxu1 }
 0x1a3   : > { %v2118_v47 = vpop.f32.mrb[14].mxu0  ;;  %v6814_v48 = vpop.f32.mrb[17].mxu1 }
 0x1a4   : > { %v6803_v49 = vpop.f32.mrb[15].mxu0  ;;  %v2196_v50 = vpop.f32.mrb[18].mxu1  ;;  %v2122_v38 = vadd.f32 %v8398_v13, %v2121_v44  ;;  %v8438_v47 = vld [vmem:[%s7828_s25 + $0x20] sm:$0xff]  }
 0x1a5   : > { %v6815_v51 = vpop.f32.mrb[19].mxu1 }
 0x1a6   : > { %v2123_v48 = vmax.f32 %v2122_v38, 0.0 }
 0x1a8   : > { %v2124_v44 = vmul.f32 %v8402_v21, %v2123_v48 }
 0x1b1   : > { %v2266_v52 = vpop.f32.mrb[16].mxu0 }
 0x1b2   : > { %v2272_v53 = vmax.f32 %v2193_v46, %v2266_v52  ;;  %v6826_v54 = vpop.f32.mrb[17].mxu0 }
 0x1b3   : > { %v2269_v55 = vpop.f32.mrb[18].mxu0 }
 0x1b4   : > { %v6827_v56 = vpop.f32.mrb[19].mxu0  ;;  %v8463_v55 = vld [vmem:[%s7828_s25 + $0x30] sm:$0xff]  }
 0x1c2   : > { %v2423_v57 = vpop.f32.mrb[20].mxu1 }
 0x1c3   : > { %v2429_v58 = vmax.f32 %v2272_v53, %v2423_v57  ;;  %v6850_v60 = vpop.f32.mrb[21].mxu1  ;;  %v8458_v53 = vadd.f32 %v8405_v23, %v2124_v44  ;;  %v7666_v44 = vld [vmem:[%s7848_s14 + $0x20] sm:$0xff]  }
 0x1c4   : > { %v2426_v62 = vpop.f32.mrb[22].mxu1 }
 0x1c5   : > { %v6851_v63 = vpop.f32.mrb[23].mxu1  ;;  %v3174_v56 = vpack.c.bf16 %v8458_v53, %v8458_v53  ;;  %v8496_v62 = vld [vmem:[%s7828_s25 + $0x48] sm:$0xff]  }
 0x1d1   : > { %v2570_v0 = vpop.f32.mrb[20].mxu0 }
 0x1d2   : > { %v2576_v1 = vmax.f32 %v2429_v58, %v2570_v0  ;;  %v6874_v3 = vpop.f32.mrb[21].mxu0  ;;  %v8485_v58 = vld [vmem:[%s7828_s25 + $0x40] sm:$0xff]  }
 0x1d3   : > { %v2573_v4 = vpop.f32.mrb[22].mxu0 }
 0x1d4   : > { %v6875_v5 = vpop.f32.mrb[23].mxu0  ;;  %v2577_v24 = vadd.f32 %v8398_v13, %v2576_v1 }
 0x1d5   : > { %v7662_v5 = vld [vmem:[%s7848_s14 + $0x10] sm:$0xff]  }
 0x1d6   : > { %v2578_v32 = vmax.f32 %v2577_v24, 0.0 }
 0x1d8   : > { %v2579_v35 = vmul.f32 %v8402_v21, %v2578_v32 }
 0x1da   : > { %v2580_v39 = vadd.f32 %v8405_v23, %v2579_v35 }
 0x1dc   : > { %v3176_v49 = vpack.c.bf16 %v2580_v39, %v7791_v2  ;;  %v8487_v60 = vpack.c.bf16 %v2580_v39, %v2580_v39 }
 0x1de   : > { %v3254_v51 = vshrl.u32 %v3176_v49, 16  ;;  %v3257_v52 = vshll.u32 %v3176_v49, 16 }
 0x1e0   : > { %v3259_v54 = vrot.slane %v3257_v52, 4 }
 0x1e2   : > { %v2721_v11 = vpop.f32.mrb[24].mxu1 }
 0x1e3   : > { %v6898_v6 = vpop.f32.mrb[25].mxu1 }
 0x1e4   : > { %v2724_v7 = vpop.f32.mrb[26].mxu1 }
 0x1e5   : > { %v6899_v8 = vpop.f32.mrb[27].mxu1 }
 0x1f1   : > { %v2867_v9 = vpop.f32.mrb[24].mxu0 }
 0x1f2   : > { %v2873_v10 = vmax.f32 %v2721_v11, %v2867_v9  ;;  %v6922_v12 = vpop.f32.mrb[25].mxu0  ;;  %v7663_v11 = vld [vmem:[%s7848_s14 + $0x18] sm:$0xff]  }
 0x1f3   : > { %v2870_v14 = vpop.f32.mrb[26].mxu0  ;;  %v6250_v12 = vld [vmem:[%s7833_s29] ss:$0 sm:$0xff] }
 0x1f4   : > { %v6923_v15 = vpop.f32.mrb[27].mxu0 }
 0x202   : > { %v3014_v16 = vpop.f32.mrb[28].mxu1 }
 0x203   : > { %v3020_v17 = vmax.f32 %v2873_v10, %v3014_v16  ;;  %v6946_v18 = vpop.f32.mrb[29].mxu1 }
 0x204   : > { %v3017_v19 = vpop.f32.mrb[30].mxu1 }
 0x205   : > { %v6947_v20 = vpop.f32.mrb[31].mxu1  ;;  %v6251_v19 = vld [vmem:[%s8868_s3] ss:$0 sm:$0xff]  ;;  %s8875_s3 = sld [smem:[#allocation23_spill]] }
 0x211   : > { %v3161_v22 = vpop.f32.mrb[28].mxu0 }
 0x212   : > { %v3167_v27 = vmax.f32 %v3020_v17, %v3161_v22  ;;  %v6970_v28 = vpop.f32.mrb[29].mxu0  ;;  %v6252_v22 = vld [vmem:[%s8869_s8] ss:$0 sm:$0xff] }
 0x213   : > { %v3164_v29 = vpop.f32.mrb[30].mxu0  ;;  %v7664_v28 = vld [vmem:[%s7848_s14] sm:$0xff]  }
 0x214   : > { %v3168_v30 = vadd.f32 %v8398_v13, %v3167_v27  ;;  %v6971_v31 = vpop.f32.mrb[31].mxu0  ;;  %v8446_v13 = vld [vmem:[%s7828_s25 + $0x28] sm:$0xff]  }
 0x216   : > { %v3169_v33 = vmax.f32 %v3168_v30, 0.0  ;;  %v7665_v30 = vld [vmem:[%s7848_s14 + $0x8] sm:$0xff]  }
 0x218   : > { %v3170_v34 = vmul.f32 %v8402_v21, %v3169_v33  ;;  %v3256_v21 = vrot.slane %v3254_v51, 3 }
 0x21a   : > { %v3171_v36 = vadd.f32 %v8405_v23, %v3170_v34  ;;  %v3260_v57 = vor.u32 %v3259_v54, %v3256_v21  ;;  %v8472_v23 = vld [vmem:[%s7828_s25 + $0x38] sm:$0xff]  }
 0x21c   : > { %v3178_v37 = vpack.c.bf16 %v3171_v36, %v7791_v2  ;;  %v8508_v63 = vpack.c.bf16 %v3171_v36, %v3171_v36 }
 0x21e   : > { %v3190_v40 = vshrl.u32 %v3178_v37, 16  ;;  %v3193_v43 = vshll.u32 %v3178_v37, 16 }
 0x220   : > { %v3192_v45 = vrot.slane %v3190_v40, 3  ;;  %v3195_v46 = vrot.slane %v3193_v43, 4 }
 0x222   : > { %v3196_v50 = vor.u32 %v3195_v46, %v3192_v45 }
 0x224   : > { %6977 = vmatmul.mubr.msk.bf16.vlgmr.msra.gmra.mrb[32].mxu1 %vm3209_vm2, %v3196_v50  ;;  %7025 = vmatmul.mubr.msk.bf16.vlgmr.msra.gmra.mrb[32].mxu0 %vm3209_vm2, %v3196_v50 }
 0x225   : > { %6981 = vmatpush3.bf16.msra.mxu1 %v8420_v41  ;;  %7029 = vmatpush3.bf16.msra.mxu0 %v8438_v47 }
 0x226   : > { %6982 = vmatprep.subr.bf16.mxu1 %v7791_v2  ;;  %7030 = vmatprep.subr.bf16.mxu0 %v7791_v2 }
 0x227   : > { %6984 = vmatprep.mubr.msk.bf16.mxu1 %vm7792_vm0, %v7791_v2  ;;  %7032 = vmatprep.mubr.msk.bf16.mxu0 %vm7792_vm0, %v7791_v2 }
 0x229   : > { %6983 = vmatpush3.bf16.msra.mxu1 %v8425_v42  ;;  %7031 = vmatpush3.bf16.msra.mxu0 %v8446_v13 }
 0x22a   : > { %6988 = vmatprep.subr.bf16.mxu1 %v7791_v2  ;;  %7036 = vmatprep.subr.bf16.mxu0 %v7791_v2 }
 0x230   : > { %6985 = vmatmul.mubr.msk.bf16.vlgmr.msra.gmra.mrb[32].mxu1 %vm3209_vm2, %v3260_v57  ;;  %7033 = vmatmul.mubr.msk.bf16.vlgmr.msra.gmra.mrb[32].mxu0 %vm3209_vm2, %v3174_v56  ;;  %v7668_v57 = vld [vmem:[%s7848_s14 + $0x30] sm:$0xff]  }
 0x231   : > { %6989 = vmatpush3.bf16.msra.mxu1 %v8438_v47  ;;  %7037 = vmatpush3.bf16.msra.mxu0 %v8463_v55 }
 0x232   : > { %6990 = vmatprep.subr.bf16.mxu1 %v7791_v2  ;;  %7038 = vmatprep.subr.bf16.mxu0 %v7791_v2 }
 0x233   : > { %6992 = vmatprep.mubr.msk.bf16.mxu1 %vm7792_vm0, %v7791_v2  ;;  %7040 = vmatprep.mubr.msk.bf16.mxu0 %vm7792_vm0, %v7791_v2 }
 0x235   : > { %6991 = vmatpush3.bf16.msra.mxu1 %v8446_v13  ;;  %7039 = vmatpush3.bf16.msra.mxu0 %v8472_v23 }
 0x236   : > { %6996 = vmatprep.subr.bf16.mxu1 %v7791_v2  ;;  %7044 = vmatprep.subr.bf16.mxu0 %v7791_v2 }
 0x23c   : > { %6993 = vmatmul.mubr.msk.bf16.vlgmr.msra.gmra.mrb[32].mxu1 %vm3209_vm2, %v8413_v26  ;;  %7041 = vmatmul.mubr.msk.bf16.vlgmr.msra.gmra.mrb[32].mxu0 %vm3209_vm2, %v8487_v60 }
 0x23d   : > { %6997 = vmatpush3.bf16.msra.mxu1 %v8463_v55  ;;  %7045 = vmatpush3.bf16.msra.mxu0 %v8485_v58 }
 0x23e   : > { %6998 = vmatprep.subr.bf16.mxu1 %v7791_v2  ;;  %7046 = vmatprep.subr.bf16.mxu0 %v7791_v2 }
 0x23f   : > { %7000 = vmatprep.mubr.msk.bf16.mxu1 %vm7792_vm0, %v7791_v2  ;;  %7048 = vmatprep.mubr.msk.bf16.mxu0 %vm7792_vm0, %v7791_v2 }
 0x241   : > { %6999 = vmatpush3.bf16.msra.mxu1 %v8472_v23  ;;  %7047 = vmatpush3.bf16.msra.mxu0 %v8496_v62 }
 0x242   : > { %7004 = vmatprep.subr.bf16.mxu1 %v7791_v2  ;;  %7092 = vmatprep.subr.bf16.mxu0 %v7791_v2 }
 0x248   : > { %7001 = vmatmul.mubr.msk.bf16.vlgmr.msra.gmra.mrb[32].mxu1 %vm3209_vm2, %v3174_v56  ;;  %7049 = vmatmul.mubr.msk.bf16.vlgmr.msra.gmra.mrb[32].mxu0 %vm3209_vm2, %v8508_v63 }
 0x249   : > { %7005 = vmatpush3.bf16.msra.mxu1 %v8485_v58  ;;  %7093 = vmatpush3.bf16.msra.mxu0 %v8370_v59 }
 0x24a   : > { %7094 = vmatprep.subr.bf16.mxu0 %v7791_v2  ;;  %7006 = vmatprep.subr.bf16.mxu1 %v7791_v2 }
 0x24b   : > { %7096 = vmatprep.mubr.msk.bf16.mxu0 %vm7792_vm0, %v7791_v2  ;;  %7008 = vmatprep.mubr.msk.bf16.mxu1 %vm7792_vm0, %v7791_v2 }
 0x24d   : > { %7095 = vmatpush3.bf16.msra.mxu0 %v8381_v61  ;;  %7007 = vmatpush3.bf16.msra.mxu1 %v8496_v62 }
 0x24e   : > { %7052 = vmatprep.subr.bf16.mxu1 %v7791_v2  ;;  %7100 = vmatprep.subr.bf16.mxu0 %v7791_v2 }
 0x250   : > { %7097 = vmatmul.mubr.msk.bf16.vlgmr.msra.gmra.mrb[36].mxu0 %vm3209_vm2, %v8487_v60 }
 0x251   : > { %7101 = vmatpush3.bf16.msra.mxu0 %v8420_v41  ;;  %7104 = vmatprep.mubr.msk.bf16.mxu0 %vm7792_vm0, %v7791_v2 }
 0x252   : > { %7102 = vmatprep.subr.bf16.mxu0 %v7791_v2 }
 0x254   : > { %7009 = vmatmul.mubr.msk.bf16.vlgmr.msra.gmra.mrb[32].mxu1 %vm3209_vm2, %v8487_v60 }
 0x255   : > { %7053 = vmatpush3.bf16.msra.mxu1 %v8370_v59  ;;  %7103 = vmatpush3.bf16.msra.mxu0 %v8425_v42  ;;  %v3173_v59 = vpack.c.bf16 %v7791_v2, %v8409_v25 }
 0x256   : > { %7054 = vmatprep.subr.bf16.mxu1 %v7791_v2  ;;  %7056 = vmatprep.mubr.msk.bf16.mxu1 %vm7792_vm0, %v7791_v2 }
 0x257   : > { %7108 = vmatprep.subr.bf16.mxu0 %v7791_v2 }
 0x259   : > { %7055 = vmatpush3.bf16.msra.mxu1 %v8381_v61  ;;  %v3896_v61 = vshll.u32 %v3173_v59, 16 }
 0x25a   : > { %7060 = vmatprep.subr.bf16.mxu1 %v7791_v2 }
 0x25b   : > { %v3898_v25 = vrot.slane %v3896_v61, 1 }
 0x25c   : > { %7057 = vmatmul.mubr.msk.bf16.vlgmr.msra.gmra.mrb[36].mxu1 %vm3209_vm2, %v3174_v56  ;;  %7105 = vmatmul.mubr.msk.bf16.vlgmr.msra.gmra.mrb[36].mxu0 %vm3209_vm2, %v3174_v56 }
 0x25d   : > { %7061 = vmatpush3.bf16.msra.mxu1 %v8420_v41  ;;  %7109 = vmatpush3.bf16.msra.mxu0 %v8438_v47  ;;  %v3175_v41 = vpack.c.bf16 %v7791_v2, %v8458_v53  ;;  %v7667_v53 = vld [vmem:[%s7848_s14 + $0x28] sm:$0xff]  }
 0x25e   : > { %7062 = vmatprep.subr.bf16.mxu1 %v7791_v2  ;;  %7110 = vmatprep.subr.bf16.mxu0 %v7791_v2 }
 0x25f   : > { %7064 = vmatprep.mubr.msk.bf16.mxu1 %vm7792_vm0, %v7791_v2  ;;  %7112 = vmatprep.mubr.msk.bf16.mxu0 %vm7792_vm0, %v7791_v2  ;;  %v4109_v0 = vshll.u32 %v3175_v41, 16  ;;  %v4107_v3 = vshrl.u32 %v3175_v41, 16 }
 0x261   : > { %7063 = vmatpush3.bf16.msra.mxu1 %v8425_v42  ;;  %7111 = vmatpush3.bf16.msra.mxu0 %v8446_v13  ;;  %v4111_v1 = vrot.slane %v4109_v0, 1 }
 0x262   : > { %7068 = vmatprep.subr.bf16.mxu1 %v7791_v2  ;;  %7116 = vmatprep.subr.bf16.mxu0 %v7791_v2 }
 0x263   : > { %v4112_v4 = vor.u32 %v4111_v1, %v4107_v3 }
 0x268   : > { %7065 = vmatmul.mubr.msk.bf16.vlgmr.msra.gmra.mrb[36].mxu1 %vm3209_vm2, %v8413_v26  ;;  %7113 = vmatmul.mubr.msk.bf16.vlgmr.msra.gmra.mrb[36].mxu0 %vm3209_vm2, %v8508_v63  ;;  %v3894_v26 = vshrl.u32 %v3173_v59, 16 }
 0x269   : > { %7069 = vmatpush3.bf16.msra.mxu1 %v8438_v47  ;;  %7117 = vmatpush3.bf16.msra.mxu0 %v8463_v55 }
 0x26a   : > { %7070 = vmatprep.subr.bf16.mxu1 %v7791_v2  ;;  %7118 = vmatprep.subr.bf16.mxu0 %v7791_v2  ;;  %v3899_v42 = vor.u32 %v3898_v25, %v3894_v26  ;;  %v7670_v25 = vld [vmem:[%s7848_s14 + $0x40] sm:$0xff]  }
 0x26b   : > { %7072 = vmatprep.mubr.msk.bf16.mxu1 %vm7792_vm0, %v7791_v2  ;;  %7120 = vmatprep.mubr.msk.bf16.mxu0 %vm7792_vm0, %v7791_v2 }
 0x26d   : > { %7071 = vmatpush3.bf16.msra.mxu1 %v8446_v13  ;;  %7119 = vmatpush3.bf16.msra.mxu0 %v8472_v23 }
 0x26e   : > { %7076 = vmatprep.subr.bf16.mxu1 %v7791_v2  ;;  %7124 = vmatprep.subr.bf16.mxu0 %v7791_v2 }
 0x274   : > { %7073 = vmatmul.mubr.msk.bf16.vlgmr.msra.gmra.mrb[36].mxu1 %vm3209_vm2, %v8487_v60  ;;  %7121 = vmatmul.mubr.msk.bf16.vlgmr.msra.gmra.mrb[36].mxu0 %vm3209_vm2, %v3899_v42 }
 0x275   : > { %7077 = vmatpush3.bf16.msra.mxu1 %v8463_v55  ;;  %7125 = vmatpush3.bf16.msra.mxu0 %v8485_v58 }
 0x276   : > { %7078 = vmatprep.subr.bf16.mxu1 %v7791_v2  ;;  %7126 = vmatprep.subr.bf16.mxu0 %v7791_v2 }
 0x277   : > { %7080 = vmatprep.mubr.msk.bf16.mxu1 %vm7792_vm0, %v7791_v2  ;;  %7128 = vmatprep.mubr.msk.bf16.mxu0 %vm7792_vm0, %v7791_v2 }
 0x279   : > { %7079 = vmatpush3.bf16.msra.mxu1 %v8472_v23  ;;  %7127 = vmatpush3.bf16.msra.mxu0 %v8496_v62 }
 0x27a   : > { %7084 = vmatprep.subr.bf16.mxu1 %v7791_v2  ;;  %7172 = vmatprep.subr.bf16.mxu0 %v7791_v2 }
 0x280   : > { %7081 = vmatmul.mubr.msk.bf16.vlgmr.msra.gmra.mrb[36].mxu1 %vm3209_vm2, %v8508_v63  ;;  %7129 = vmatmul.mubr.msk.bf16.vlgmr.msra.gmra.mrb[36].mxu0 %vm3209_vm2, %v4112_v4 }
 0x281   : > { %7085 = vmatpush3.bf16.msra.mxu1 %v8485_v58  ;;  %7088 = vmatprep.mubr.msk.bf16.mxu1 %vm7792_vm0, %v7791_v2 }
 0x282   : > { %7086 = vmatprep.subr.bf16.mxu1 %v7791_v2  ;;  %7176 = vmatprep.mubr.msk.bf16.mxu0 %vm7792_vm0, %v7791_v2 }
 0x283   : > { %7173 = vmatpush3.bf16.msra.mxu0 %v7662_v5 }
 0x284   : > { %7174 = vmatprep.subr.bf16.mxu0 %v7791_v2 }
 0x285   : > { %7087 = vmatpush3.bf16.msra.mxu1 %v8496_v62  ;;  %v7669_v62 = vld [vmem:[%s7848_s14 + $0x38] sm:$0xff]  }
 0x286   : > { %7132 = vmatprep.subr.bf16.mxu1 %v7791_v2 }
 0x287   : > { %7175 = vmatpush3.bf16.msra.mxu0 %v7663_v11 }
 0x288   : > { %7180 = vmatprep.subr.bf16.mxu0 %v7791_v2 }
 0x28c   : > { %7089 = vmatmul.mubr.msk.bf16.vlgmr.msra.gmra.mrb[36].mxu1 %vm3209_vm2, %v3899_v42  ;;  %v7671_v42 = vld [vmem:[%s7848_s14 + $0x48] sm:$0xff]  }
 0x28d   : > { %7136 = vmatprep.mubr.msk.bf16.mxu1 %vm7792_vm0, %v7791_v2  ;;  %7133 = vmatpush3.bf16.msra.mxu1 %v7662_v5  ;;  %v7672_v5 = vld [vmem:[%s8864_s6 + $0x20] sm:$0xff]  }
 0x28e   : > { %7134 = vmatprep.subr.bf16.mxu1 %v7791_v2 }
 0x291   : > { %7135 = vmatpush3.bf16.msra.mxu1 %v7663_v11  ;;  %v7673_v11 = vld [vmem:[%s8864_s6 + $0x10] sm:$0xff]  }
 0x292   : > { %7140 = vmatprep.subr.bf16.mxu1 %v7791_v2 }
 0x31b   : > { %v3698_v6 = vpop.f32.mrb[32].mxu0 }
 0x31c   : > { %v7050_v7 = vpop.f32.mrb[33].mxu0 }
 0x31d   : > { %v3701_v8 = vpop.f32.mrb[34].mxu0  ;;  %v7675_v7 = vld [vmem:[%s8864_s6 + $0x18] sm:$0xff]  }
 0x31e   : > { %v7051_v9 = vpop.f32.mrb[35].mxu0 }
 0x327   : > { %v3492_v10 = vpop.f32.mrb[32].mxu1 }
 0x328   : > { %v3705_v14 = vmax.f32 %v3492_v10, %v3698_v6  ;;  %v7010_v15 = vpop.f32.mrb[33].mxu1  ;;  %v7674_v6 = vld [vmem:[%s8864_s6 + $0x28] sm:$0xff]  }
 0x329   : > { %v3495_v16 = vpop.f32.mrb[34].mxu1  ;;  %v6299_v15 = vld [vmem:[%s7853_s19] ss:$0 sm:$0xff] }
 0x32a   : > { %v3713_v17 = vadd.f32 %v6250_v12, %v3705_v14  ;;  %v7011_v18 = vpop.f32.mrb[35].mxu1 }
 0x32c   : > { %v3714_v20 = vmax.f32 %v3713_v17, 0.0 }
 0x32e   : > { %v3722_v24 = vmul.f32 %v6251_v19, %v3714_v20 }
 0x330   : > { %v3730_v27 = vadd.f32 %v6252_v22, %v3722_v24 }
 0x332   : > { %v8614_v29 = vpack.c.bf16 %v3730_v27, %v3730_v27  ;;  %v4162_v51 = vpack.c.bf16 %v3730_v27, %v7791_v2  ;;  %v4164_v23 = vpack.c.bf16 %v7791_v2, %v3730_v27  ;;  %v6301_v27 = vld [vmem:[%s7863_s30] ss:$0 sm:$0xff] }
 0x334   : > { %7177 = vmatmul.mubr.msk.bf16.vlgmr.msra.gmra.mrb[40].mxu0 %vm3209_vm2, %v8614_v29  ;;  %v4241_v21 = vshrl.u32 %v4162_v51, 16  ;;  %v4244_v54 = vshll.u32 %v4162_v51, 16  ;;  %v4433_v63 = vshll.u32 %v4164_v23, 16  ;;  %v4431_v61 = vshrl.u32 %v4164_v23, 16 }
 0x335   : > { %7181 = vmatpush3.bf16.msra.mxu0 %v7664_v28  ;;  %7184 = vmatprep.mubr.msk.bf16.mxu0 %vm7792_vm0, %v7791_v2 }
 0x336   : > { %7182 = vmatprep.subr.bf16.mxu0 %v7791_v2  ;;  %v4243_v55 = vrot.slane %v4241_v21, 3  ;;  %v4246_v56 = vrot.slane %v4244_v54, 4  ;;  %v4435_v59 = vrot.slane %v4433_v63, 1 }
 0x338   : > { %v4247_v60 = vor.u32 %v4246_v56, %v4243_v55  ;;  %v4436_v41 = vor.u32 %v4435_v59, %v4431_v61 }
 0x339   : > { %7183 = vmatpush3.bf16.msra.mxu0 %v7665_v30 }
 0x33a   : > { %7188 = vmatprep.subr.bf16.mxu0 %v7791_v2 }
 0x353   : > { %v4150_v31 = vpop.f32.mrb[36].mxu0 }
 0x354   : > { %v7130_v32 = vpop.f32.mrb[37].mxu0 }
 0x355   : > { %v4153_v33 = vpop.f32.mrb[38].mxu0 }
 0x356   : > { %v7131_v34 = vpop.f32.mrb[39].mxu0  ;;  %v7677_v33 = vld [vmem:[%s8864_s6] sm:$0xff]  }
 0x35f   : > { %v3937_v35 = vpop.f32.mrb[36].mxu1 }
 0x360   : > { %v4157_v36 = vmax.f32 %v3937_v35, %v4150_v31  ;;  %v7090_v37 = vpop.f32.mrb[37].mxu1  ;;  %v7678_v35 = vld [vmem:[%s8864_s6 + $0x48] sm:$0xff]  }
 0x361   : > { %v3940_v38 = vpop.f32.mrb[38].mxu1  ;;  %v7679_v37 = vld [vmem:[%s8864_s6 + $0x8] sm:$0xff]  }
 0x362   : > { %v4158_v39 = vadd.f32 %v6250_v12, %v4157_v36  ;;  %v7091_v40 = vpop.f32.mrb[39].mxu1 }
 0x364   : > { %v4159_v43 = vmax.f32 %v4158_v39, 0.0  ;;  %v7680_v39 = vld [vmem:[%s8864_s6 + $0x30] sm:$0xff]  }
 0x366   : > { %v4160_v45 = vmul.f32 %v6251_v19, %v4159_v43  ;;  %v7681_v43 = vld [vmem:[%s8864_s6 + $0x38] sm:$0xff]  }
 0x368   : > { %v4161_v46 = vadd.f32 %v6252_v22, %v4160_v45  ;;  %v6300_v22 = vld [vmem:[%s7858_s24] ss:$0 sm:$0xff] }
 0x36a   : > { %v4165_v47 = vpack.c.bf16 %v4161_v46, %v7791_v2  ;;  %v4166_v58 = vpack.c.bf16 %v4161_v46, %v4161_v46  ;;  %v4167_v26 = vpack.c.bf16 %v7791_v2, %v4161_v46  ;;  %v7682_v46 = vld [vmem:[%s8870_s18 + $0x10] sm:$0xff]  }
 0x36c   : > { %v4178_v48 = vshrl.u32 %v4165_v47, 16  ;;  %v4181_v49 = vshll.u32 %v4165_v47, 16  ;;  %v4658_v0 = vshll.u32 %v4167_v26, 16  ;;  %v4656_v3 = vshrl.u32 %v4167_v26, 16  ;;  %v7683_v47 = vld [vmem:[%s8870_s18 + $0x8] sm:$0xff]  }
 0x36d   : > { %v6333_v26 = vld [vmem:[%s8871_s22] ss:$0 sm:$0xff]  ;;  %s8876_s22 = sld [smem:[#allocation19_spill]] }
 0x36e   : > { %v4180_v50 = vrot.slane %v4178_v48, 3  ;;  %v4183_v13 = vrot.slane %v4181_v49, 4  ;;  %v4660_v1 = vrot.slane %v4658_v0, 1 }
 0x370   : > { %v4184_v52 = vor.u32 %v4183_v13, %v4180_v50  ;;  %v4661_v4 = vor.u32 %v4660_v1, %v4656_v3  ;;  %v6334_v3 = vld [vmem:[%s8872_s28] ss:$0 sm:$0xff]  ;;  %s8877_s28 = sld [smem:[#allocation15_spill]] }
 0x372   : > { %7137 = vmatmul.mubr.msk.bf16.vlgmr.msra.gmra.mrb[40].mxu1 %vm3209_vm2, %v4184_v52  ;;  %7185 = vmatmul.mubr.msk.bf16.vlgmr.msra.gmra.mrb[40].mxu0 %vm3209_vm2, %v4184_v52 }
 0x373   : > { %7141 = vmatpush3.bf16.msra.mxu1 %v7664_v28  ;;  %7189 = vmatpush3.bf16.msra.mxu0 %v7666_v44 }
 0x374   : > { %7142 = vmatprep.subr.bf16.mxu1 %v7791_v2  ;;  %7190 = vmatprep.subr.bf16.mxu0 %v7791_v2 }
 0x375   : > { %7144 = vmatprep.mubr.msk.bf16.mxu1 %vm7792_vm0, %v7791_v2  ;;  %7192 = vmatprep.mubr.msk.bf16.mxu0 %vm7792_vm0, %v7791_v2 }
 0x377   : > { %7143 = vmatpush3.bf16.msra.mxu1 %v7665_v30  ;;  %7191 = vmatpush3.bf16.msra.mxu0 %v7667_v53  ;;  %v7676_v30 = vld [vmem:[%s8864_s6 + $0x40] sm:$0xff]  }
 0x378   : > { %7148 = vmatprep.subr.bf16.mxu1 %v7791_v2  ;;  %7196 = vmatprep.subr.bf16.mxu0 %v7791_v2 }
 0x37e   : > { %7145 = vmatmul.mubr.msk.bf16.vlgmr.msra.gmra.mrb[40].mxu1 %vm3209_vm2, %v4247_v60  ;;  %7193 = vmatmul.mubr.msk.bf16.vlgmr.msra.gmra.mrb[40].mxu0 %vm3209_vm2, %v4166_v58 }
 0x37f   : > { %7149 = vmatpush3.bf16.msra.mxu1 %v7666_v44  ;;  %7197 = vmatpush3.bf16.msra.mxu0 %v7668_v57 }
 0x380   : > { %7150 = vmatprep.subr.bf16.mxu1 %v7791_v2  ;;  %7198 = vmatprep.subr.bf16.mxu0 %v7791_v2 }
 0x381   : > { %7152 = vmatprep.mubr.msk.bf16.mxu1 %vm7792_vm0, %v7791_v2  ;;  %7200 = vmatprep.mubr.msk.bf16.mxu0 %vm7792_vm0, %v7791_v2 }
 0x383   : > { %7151 = vmatpush3.bf16.msra.mxu1 %v7667_v53  ;;  %7199 = vmatpush3.bf16.msra.mxu0 %v7669_v62 }
 0x384   : > { %7156 = vmatprep.subr.bf16.mxu1 %v7791_v2  ;;  %7204 = vmatprep.subr.bf16.mxu0 %v7791_v2 }
 0x38a   : > { %7153 = vmatmul.mubr.msk.bf16.vlgmr.msra.gmra.mrb[40].mxu1 %vm3209_vm2, %v8614_v29  ;;  %7201 = vmatmul.mubr.msk.bf16.vlgmr.msra.gmra.mrb[40].mxu0 %vm3209_vm2, %v4436_v41 }
 0x38b   : > { %7157 = vmatpush3.bf16.msra.mxu1 %v7668_v57  ;;  %7205 = vmatpush3.bf16.msra.mxu0 %v7670_v25 }
 0x38c   : > { %7158 = vmatprep.subr.bf16.mxu1 %v7791_v2  ;;  %7206 = vmatprep.subr.bf16.mxu0 %v7791_v2 }
 0x38d   : > { %7160 = vmatprep.mubr.msk.bf16.mxu1 %vm7792_vm0, %v7791_v2  ;;  %7208 = vmatprep.mubr.msk.bf16.mxu0 %vm7792_vm0, %v7791_v2 }
 0x38f   : > { %7159 = vmatpush3.bf16.msra.mxu1 %v7669_v62  ;;  %7207 = vmatpush3.bf16.msra.mxu0 %v7671_v42 }
 0x390   : > { %7164 = vmatprep.subr.bf16.mxu1 %v7791_v2  ;;  %7228 = vmatprep.subr.bf16.mxu0 %v7791_v2 }
 0x396   : > { %7161 = vmatmul.mubr.msk.bf16.vlgmr.msra.gmra.mrb[40].mxu1 %vm3209_vm2, %v4166_v58  ;;  %7209 = vmatmul.mubr.msk.bf16.vlgmr.msra.gmra.mrb[40].mxu0 %vm3209_vm2, %v4661_v4 }
 0x397   : > { %7165 = vmatpush3.bf16.msra.mxu1 %v7670_v25  ;;  %7168 = vmatprep.mubr.msk.bf16.mxu1 %vm7792_vm0, %v7791_v2 }
 0x398   : > { %7166 = vmatprep.subr.bf16.mxu1 %v7791_v2  ;;  %7232 = vmatprep.mubr.msk.bf16.mxu0 %vm7792_vm0, %v7791_v2 }
 0x399   : > { %7229 = vmatpush3.bf16.msra.mxu0 %v7672_v5  ;;  %v6335_v5 = vld [vmem:[%s8873_s2] ss:$0 sm:$0xff]  ;;  %s8879_s2 = sld [smem:[#allocation17_spill]] }
 0x39a   : > { %7230 = vmatprep.subr.bf16.mxu0 %v7791_v2 }
 0x39b   : > { %7167 = vmatpush3.bf16.msra.mxu1 %v7671_v42 }
 0x39c   : > { %7212 = vmatprep.subr.bf16.mxu1 %v7791_v2 }
 0x39d   : > { %7231 = vmatpush3.bf16.msra.mxu0 %v7674_v6 }
 0x39e   : > { %7244 = vmatprep.subr.bf16.mxu0 %v7791_v2 }
 0x3a2   : > { %7169 = vmatmul.mubr.msk.bf16.vlgmr.msra.gmra.mrb[40].mxu1 %vm3209_vm2, %v4436_v41 }
 0x3a3   : > { %7216 = vmatprep.mubr.msk.bf16.mxu1 %vm7792_vm0, %v7791_v2  ;;  %7213 = vmatpush3.bf16.msra.mxu1 %v7673_v11 }
 0x3a4   : > { %7214 = vmatprep.subr.bf16.mxu1 %v7791_v2 }
 0x3a7   : > { %7215 = vmatpush3.bf16.msra.mxu1 %v7675_v7  ;;  %v7684_v7 = vld [vmem:[%s8870_s18 + $0x18] sm:$0xff]  }
 0x3a8   : > { %7220 = vmatprep.subr.bf16.mxu1 %v7791_v2 }
 0x469   : > { %v4699_v8 = vpop.f32.mrb[40].mxu0 }
 0x46a   : > { %v7210_v9 = vpop.f32.mrb[41].mxu0 }
 0x46b   : > { %v4702_v10 = vpop.f32.mrb[42].mxu0 }
 0x46c   : > { %v7211_v12 = vpop.f32.mrb[43].mxu0 }
 0x475   : > { %v4486_v14 = vpop.f32.mrb[40].mxu1 }
 0x476   : > { %v4706_v16 = vmax.f32 %v4486_v14, %v4699_v8  ;;  %v7170_v17 = vpop.f32.mrb[41].mxu1  ;;  %v7685_v14 = vld [vmem:[%s8874_s27 + $0x10] sm:$0xff]   ;;  %s8880_s27 = sld [smem:[#allocation24_spill]] }
 0x477   : > { %v4489_v18 = vpop.f32.mrb[42].mxu1  ;;  %v7687_v17 = vld [vmem:[%s8876_s22 + $0x10] sm:$0xff]   ;;  %s8881_s22 = sld [smem:[#allocation25_spill]] }
 0x478   : > { %v4714_v19 = vadd.f32 %v6299_v15, %v4706_v16  ;;  %v7171_v20 = vpop.f32.mrb[43].mxu1  ;;  %v7686_v16 = vld [vmem:[%s8875_s3 + $0x10] sm:$0xff]   ;;  %s8878_s3 = sld [smem:[#allocation16_spill]] }
 0x47a   : > { %v4715_v24 = vmax.f32 %v4714_v19, 0.0 }
 0x47c   : > { %v4723_v28 = vmul.f32 %v6300_v22, %v4715_v24 }
 0x47e   : > { %v4731_v29 = vadd.f32 %v6301_v27, %v4723_v28 }
 0x480   : > { %v4732_v31 = vpack.c.bf16 %v4731_v29, %v7791_v2  ;;  %v4733_v32 = vpack.c.bf16 %v4731_v29, %v4731_v29  ;;  %v4734_v36 = vpack.c.bf16 %v7791_v2, %v4731_v29 }
 0x482   : > { %7233 = vmatmul.mubr.msk.bf16.vlgmr.msra.gmra.mrb[44].mxu0 %vm3209_vm2, %v4733_v32  ;;  %v4745_v34 = vrot.slane %v4732_v31, 3  ;;  %v4986_v38 = vrot.slane %v4734_v36, 2  ;;  %v4801_v40 = vrot.slane %v4732_v31, 2  ;;  %v4924_v45 = vrot.slane %v4734_v36, 1  ;;  %v6348_v32 = vld [vmem:[%s8877_s28] ss:$0 sm:$0xff] }
 0x483   : > { %7245 = vmatpush3.bf16.msra.mxu0 %v7676_v30  ;;  %7248 = vmatprep.mubr.msk.bf16.mxu0 %vm7792_vm0, %v7791_v2  ;;  %s8882_s28 = sld [smem:[#allocation30_spill]] }
 0x484   : > { %7217 = vmatmul.mubr.msk.bf16.vlgmr.msra.gmra.mrb[44].mxu1 %vm3209_vm2, %v4745_v34  ;;  %7246 = vmatprep.subr.bf16.mxu0 %v7791_v2 }
 0x485   : > { %7221 = vmatpush3.bf16.msra.mxu1 %v7677_v33  ;;  %7224 = vmatprep.mubr.msk.bf16.mxu1 %vm7792_vm0, %v7791_v2 }
 0x486   : > { %7222 = vmatprep.subr.bf16.mxu1 %v7791_v2 }
 0x487   : > { %7247 = vmatpush3.bf16.msra.mxu0 %v7678_v35 }
 0x488   : > { %7258 = vmatprep.subr.bf16.mxu0 %v7791_v2 }
 0x489   : > { %7223 = vmatpush3.bf16.msra.mxu1 %v7679_v37 }
 0x48a   : > { %7249 = vmatmul.mubr.msk.bf16.vlgmr.msra.gmra.mrb[48].mxu0 %vm3209_vm2, %v4986_v38  ;;  %7236 = vmatprep.subr.bf16.mxu1 %v7791_v2  ;;  %v6349_v38 = vld [vmem:[%s8878_s3] ss:$0 sm:$0xff]  ;;  %s8883_s3 = sld [smem:[#allocation20_spill]] }
 0x48b   : > { %7260 = vmatprep.mubr.msk.bf16.mxu0 %vm7792_vm0, %v7791_v2  ;;  %7259 = vmatpush3.bf16.msra.mxu0 %v7683_v47 }
 0x48c   : > { %7225 = vmatmul.mubr.msk.bf16.vlgmr.msra.gmra.mrb[48].mxu1 %vm3209_vm2, %v4801_v40  ;;  %7270 = vmatprep.subr.bf16.mxu0 %v7791_v2  ;;  %v6350_v40 = vld [vmem:[%s8879_s2] ss:$0 sm:$0xff]  ;;  %s8884_s2 = sld [smem:[#allocation21_spill]] }
 0x48d   : > { %7237 = vmatpush3.bf16.msra.mxu1 %v7680_v39  ;;  %7240 = vmatprep.mubr.msk.bf16.mxu1 %vm7792_vm0, %v7791_v2 }
 0x48e   : > { %7238 = vmatprep.subr.bf16.mxu1 %v7791_v2 }
 0x491   : > { %7239 = vmatpush3.bf16.msra.mxu1 %v7681_v43 }
 0x492   : > { %7252 = vmatprep.subr.bf16.mxu1 %v7791_v2 }
 0x494   : > { %7241 = vmatmul.mubr.msk.bf16.vlgmr.msra.gmra.mrb[52].mxu1 %vm3209_vm2, %v4924_v45 }
 0x495   : > { %7254 = vmatprep.mubr.msk.bf16.mxu1 %vm7792_vm0, %v7791_v2  ;;  %7253 = vmatpush3.bf16.msra.mxu1 %v7682_v46 }
 0x496   : > { %7264 = vmatprep.subr.bf16.mxu1 %v7791_v2 }
 0x555   : > { %v4911_v48 = vpop.f32.mrb[44].mxu0 }
 0x556   : > { %v7234_v49 = vpop.f32.mrb[45].mxu0 }
 0x557   : > { %v4795_v50 = vpop.f32.mrb[44].mxu1  ;;  %v4914_v13 = vpop.f32.mrb[46].mxu0  ;;  %v7688_v49 = vld [vmem:[%s8880_s27 + $0x10] sm:$0xff]   ;;  %s8885_s27 = sld [smem:[#allocation22_spill]] }
 0x558   : > { %v7218_v44 = vpop.f32.mrb[45].mxu1  ;;  %v7235_v51 = vpop.f32.mrb[47].mxu0 }
 0x559   : > { %v4798_v52 = vpop.f32.mrb[46].mxu1 }
 0x55a   : > { %v7219_v53 = vpop.f32.mrb[47].mxu1 }
 0x55d   : > { %v5036_v21 = vpop.f32.mrb[48].mxu0 }
 0x55e   : > { %v7250_v54 = vpop.f32.mrb[49].mxu0 }
 0x55f   : > { %v4851_v55 = vpop.f32.mrb[48].mxu1  ;;  %v5039_v56 = vpop.f32.mrb[50].mxu0  ;;  %v7689_v54 = vld [vmem:[%s8881_s22 + $0x10] sm:$0xff]   ;;  %s8886_s22 = sld [smem:[#allocation29_spill]] }
 0x560   : > { %v4852_v57 = vadd.f32 %v4851_v55, %v4795_v50  ;;  %v7226_v23 = vpop.f32.mrb[49].mxu1  ;;  %v7251_v58 = vpop.f32.mrb[51].mxu0  ;;  %v5563_v55 = vld [vmem:[%s8882_s28] sm:$0x1]  ;;  %s8887_s28 = sld [smem:[#allocation26_spill]] }
 0x561   : > { %v4854_v60 = vpop.f32.mrb[50].mxu1 }
 0x562   : > { %v7227_v62 = vpop.f32.mrb[51].mxu1  ;;  %v4917_v63 = vadd.f32 %v4911_v48, %v4852_v57  ;;  %v6359_v57 = vld [vmem:[%s8883_s3] ss:$0 sm:$0xff]  ;;  %s8888_s3 = sld [smem:[#allocation27_spill]] }
 0x567   : > { %v4974_v59 = vpop.f32.mrb[52].mxu1 }
 0x568   : > { %v4980_v61 = vadd.f32 %v4974_v59, %v4917_v63  ;;  %v7242_v25 = vpop.f32.mrb[53].mxu1  ;;  %v6360_v59 = vld [vmem:[%s8884_s2] ss:$0 sm:$0xff]  ;;  %s8889_s2 = sld [smem:[#allocation28_spill]] }
 0x569   : > { %v4977_v41 = vpop.f32.mrb[54].mxu1  ;;  %v6361_v25 = vld [vmem:[%s8885_s27] ss:$0 sm:$0xff]  ;;  %s1117_s27 = sand.u32 1, %s7744_s10  }
 0x56a   : > { %v5042_v42 = vadd.f32 %v5036_v21, %v4980_v61  ;;  %v7243_v0 = vpop.f32.mrb[55].mxu1  ;;  %s5759_s5 = scalar_lea.sflag [#allocation4], %s1117_s27 }
 0x56c   : > { %v5050_v1 = vadd.f32 %v6333_v26, %v5042_v42 }
 0x56e   : > { %v5051_v4 = vmax.f32 %v5050_v1, 0.0 }
 0x570   : > { %v5059_v11 = vmul.f32 %v6334_v3, %v5051_v4 }
 0x572   : > { %v5067_v6 = vadd.f32 %v6335_v5, %v5059_v11 }
 0x574   : > { %v8723_v8 = vpack.c.bf16 %v5067_v6, %v5067_v6  ;;  %v5068_v9 = vpack.c.bf16 %v5067_v6, %v7791_v2  ;;  %v5070_v12 = vpack.c.bf16 %v7791_v2, %v5067_v6 }
 0x576   : > { %7255 = vmatmul.mubr.msk.bf16.vlgmr.msra.gmra.mrb[56].mxu1 %vm5083_vm3, %v8723_v8  ;;  %v5128_v10 = vrot.slane %v5068_v9, 2  ;;  %v5182_v15 = vrot.slane %v5070_v12, 2  ;;  %v5085_v11 = vsel %vm5083_vm3, %v8723_v8, 0  ;;  %v5650_v9 = vld [vmem:[%s7973_s12] sm:$0x1]  ;;  %v7793_v12 = vmov 0  }
 0x577   : > { %7265 = vmatpush3.bf16.msra.mxu1 %v7684_v7  ;;  %7266 = vmatprep.mubr.msk.bf16.mxu1 %vm7792_vm0, %v7791_v2  ;;  %v5562_v7 = vld [vmem:[%s8886_s22] sm:$0x1]  ;;  %s6381_s22 = sshll.u32 %s8009_s0, 4  ;;  %s7794_s0 = smov [#allocation3]  }
 0x578   : > { %7261 = vmatmul.mubr.msk.bf16.vlgmr.msra.gmra.mrb[52].mxu0 %vm5083_vm3, %v5128_v10  ;;  %7276 = vmatprep.subr.bf16.mxu1 %v7791_v2  ;;  %s7694_s8 = sshll.u32 %s7794_s0, 4  ;;  %s7695_s8 = int_to_ptr.vmem [resolvable:$false] %s7694_s8 }
 0x579   : > { %7272 = vmatprep.mubr.msk.bf16.mxu0 %vm7792_vm0, %v7791_v2  ;;  %7271 = vmatpush3.bf16.msra.mxu0 %v7687_v17  ;;  %s7696_s9 = scalar_lea.vmem %s7695_s8, 32 }
 0x57a   : > { %7282 = vmatprep.subr.bf16.mxu0 %v7791_v2  ;;  %7543 = vset.pattern.permute.xlu0 %v7793_v12 }
 0x57e   : > { %7267 = vmatmul.mubr.msk.bf16.vlgmr.msra.gmra.mrb[60].mxu1 %vm5083_vm3, %v5182_v15 }
 0x57f   : > { %7277 = vmatpush3.bf16.msra.mxu1 %v7685_v14  ;;  %7278 = vmatprep.mubr.msk.bf16.mxu1 %vm7792_vm0, %v7791_v2 }
 0x580   : > { %7288 = vmatprep.subr.bf16.mxu1 %v7791_v2 }
 0x586   : > { %7279 = vmatmul.mubr.msk.bf16.vlgmr.msra.gmra.mrb[64].mxu1 %vm5083_vm3, %v8723_v8 }
 0x587   : > { %7289 = vmatpush3.bf16.msra.mxu1 %v7686_v16  ;;  %7290 = vmatprep.mubr.msk.bf16.mxu1 %vm7792_vm0, %v7791_v2 }
 0x588   : > { %7300 = vmatprep.subr.bf16.mxu1 %v7791_v2 }
 0x58e   : > { %7291 = vmatmul.mubr.msk.bf16.vlgmr.msra.gmra.mrb[68].mxu1 %vm5083_vm3, %v8723_v8  ;;  %v5744_v8 = vld [vmem:[#allocation2] sm:$0x1] }
 0x58f   : > { %7302 = vmatprep.mubr.msk.bf16.mxu1 %vm7792_vm0, %v7791_v2  ;;  %5747 = vperm.xlu0 %7543, %v5744_v8  }
 0x649   : > { %v5121_v18 = vpop.f32.mrb[56].mxu1 }
 0x64a   : > { %v7256_v19 = vpop.f32.mrb[57].mxu1 }
 0x64b   : > { %v5124_v20 = vpop.f32.mrb[58].mxu1  ;;  %v5172_v22 = vpop.f32.mrb[52].mxu0 }
 0x64c   : > { %v5173_v24 = vadd.f32 %v5172_v22, %v5121_v18  ;;  %v7257_v27 = vpop.f32.mrb[59].mxu1  ;;  %v7262_v28 = vpop.f32.mrb[53].mxu0  ;;  %v6374_v18 = vld [vmem:[%s8887_s28] ss:$0 sm:$0xff]  ;;  %s1118_s28 = scalar_lea.vmem [#allocation3], %s1117_s27 }
 0x64d   : > { %v5175_v29 = vpop.f32.mrb[54].mxu0  ;;  %v6375_v28 = vld [vmem:[%s8888_s3] ss:$0 sm:$0xff]  ;;  %s5771_s3 = sshll.u32 %s1118_s28, 4  ;;  %s8798_s3 = int_to_ptr.vmem [resolvable:$true] %s5771_s3 }
 0x64e   : > { %v7263_v30 = vpop.f32.mrb[55].mxu0  ;;  %v6376_v29 = vld [vmem:[%s8889_s2] ss:$0 sm:$0xff]  ;;  %s8796_s2 = scalar_lea.hbm %s7986_s4, %s6381_s22  ;;  %s7690_s6 = scalar_lea.vmem %s8798_s3, 16 }
 0x64f   : > { %p7691_p11 = scmp.ne.s32.totalorder %s8798_s3, %s7690_s6  ;;  %p7697_p0 = scmp.lt.s32.totalorder %s8798_s3, %s7695_s8 }
 0x650   : > { %p7698_p1 = scmp.lt.s32.totalorder %s7696_s9, %s7690_s6 }
 0x651   : > { %v5226_v31 = vpop.f32.mrb[60].mxu1  ;;  %p7692_p12 = pnand %p7691_p11, %p8026_p5 }
 0x652   : > { %v5232_v33 = vadd.f32 %v5226_v31, %v5173_v24  ;;  %v7268_v34 = vpop.f32.mrb[61].mxu1  ;;  %p7699_p2 = por %p7698_p1, %p7697_p0 }
 0x653   : > { %v5229_v35 = vpop.f32.mrb[62].mxu1  ;;  %v5695_v34 = vld [vmem:[%s7978_s20] sm:$0x1]  ;;  %p7693_p13 = pneg %p7692_p12 }
 0x654   : > { %v5240_v36 = vadd.f32 %v6348_v32, %v5232_v33  ;;  %v7269_v37 = vpop.f32.mrb[63].mxu1 }
 0x655   : > { %p7700_p3 = pnand %p7699_p2, %p7693_p13 }
 0x656   : > { %v5241_v39 = vmax.f32 %v5240_v36, 0.0 }
 0x658   : > { %v5249_v43 = vmul.f32 %v6349_v38, %v5241_v39 }
 0x659   : > { %v5354_v45 = vpop.f32.mrb[64].mxu1 }
 0x65a   : > { %v5257_v46 = vadd.f32 %v6350_v40, %v5249_v43  ;;  %v7280_v47 = vpop.f32.mrb[65].mxu1 }
 0x65b   : > { %v5357_v48 = vpop.f32.mrb[66].mxu1 }
 0x65c   : > { %v5261_v50 = vpack.c.bf16 %v5257_v46, %v5257_v46  ;;  %v7281_v13 = vpop.f32.mrb[67].mxu1  ;;  %v5750_v48 = vlaneseq }
 0x65d   : > { %v5748_v13 = vpop.permute.xlu0 %5747 }
 0x65e   : > { %7273 = vmatmul.mubr.msk.bf16.vlgmr.msra.gmra.mrb[56].mxu0 %vm5083_vm3, %v5261_v50  ;;  %v5272_v44 = vsel %vm5083_vm3, %v5261_v50, 0 }
 0x65f   : > { %7301 = vmatpush3.bf16.xpose.msra.mxu1 %v5272_v44  ;;  %7283 = vmatpush3.bf16.msra.mxu0 %v7688_v49  ;;  %v5751_v49 = vshrl.u32 %v5750_v48, 7 }
 0x660   : > { %7284 = vmatprep.mubr.msk.bf16.mxu0 %vm7792_vm0, %v7791_v2  ;;  %7294 = vmatprep.subr.bf16.mxu0 %v7791_v2 }
 0x661   : > { %v5477_v51 = vpop.f32.mrb[68].mxu1  ;;  %7312 = vmatprep.subr.bf16.mxu1 %v7791_v2 }
 0x662   : > { %v7292_v52 = vpop.f32.mrb[69].mxu1 }
 0x663   : > { %v5480_v53 = vpop.f32.mrb[70].mxu1 }
 0x664   : > { %v7293_v21 = vpop.f32.mrb[71].mxu1 }
 0x666   : > { %7285 = vmatmul.mubr.msk.bf16.vlgmr.msra.gmra.mrb[60].mxu0 %vm5083_vm3, %v5261_v50  ;;  %7303 = vmatmul.mubr.msk.bf16.vlgmr.msra.gmra.mrb[72].mxu1 %vm5083_vm3, %v5563_v55  ;;  %v5752_v50 = vsub.s32 0, %v5751_v49 }
 0x667   : > { %7296 = vmatprep.mubr.msk.bf16.mxu0 %vm7792_vm0, %v7791_v2  ;;  %7295 = vmatpush3.bf16.msra.mxu0 %v7689_v54 }
 0x668   : > { %7306 = vmatprep.subr.bf16.mxu0 %v7791_v2  ;;  %7314 = vmatprep.mubr.msk.bf16.mxu1 %vm7792_vm0, %v7791_v2  ;;  %v5753_v44 = vrot.slane %v5748_v13, %v5752_v50 }
 0x731   : > { %v5308_v56 = vpop.f32.mrb[56].mxu0 }
 0x732   : > { %v5355_v23 = vadd.f32 %v5354_v45, %v5308_v56  ;;  %v7274_v58 = vpop.f32.mrb[57].mxu0 }
 0x733   : > { %v5311_v60 = vpop.f32.mrb[58].mxu0 }
 0x734   : > { %v5367_v62 = vadd.f32 %v6359_v57, %v5355_v23  ;;  %v7275_v63 = vpop.f32.mrb[59].mxu0 }
 0x736   : > { %v5368_v61 = vmax.f32 %v5367_v62, 0.0 }
 0x738   : > { %v5376_v26 = vmul.f32 %v6360_v59, %v5368_v61 }
 0x739   : > { %v5431_v41 = vpop.f32.mrb[60].mxu0  ;;  %v5601_v10 = vpop.f32.mrb[72].mxu1 }
 0x73a   : > { %v5384_v42 = vadd.f32 %v6361_v25, %v5376_v26  ;;  %v5478_v0 = vadd.f32 %v5477_v51, %v5431_v41  ;;  %v7286_v1 = vpop.f32.mrb[61].mxu0  ;;  %v7304_v14 = vpop.f32.mrb[73].mxu1 }
 0x73b   : > { %v5434_v3 = vpop.f32.mrb[62].mxu0  ;;  %v5604_v15 = vpop.f32.mrb[74].mxu1 }
 0x73c   : > { %v5483_v4 = vpack.c.bf16 %v5384_v42, %v5384_v42  ;;  %v7287_v5 = vpop.f32.mrb[63].mxu0  ;;  %v7305_v16 = vpop.f32.mrb[75].mxu1 }
 0x73e   : > { %7297 = vmatmul.mubr.msk.bf16.vlgmr.msra.gmra.mrb[64].mxu0 %vm5083_vm3, %v5483_v4  ;;  %v5494_v6 = vsel %vm5083_vm3, %v5483_v4, 0 }
 0x73f   : > { %7307 = vmatpush3.bf16.xpose.msra.mxu0 %v5085_v11  ;;  %7313 = vmatpush3.bf16.xpose.msra.mxu1 %v5494_v6 }
 0x740   : > { %7308 = vmatprep.mubr.msk.bf16.mxu0 %vm7792_vm0, %v7791_v2  ;;  %7318 = vmatprep.subr.bf16.mxu0 %v7791_v2 }
 0x746   : > { %7309 = vmatmul.mubr.msk.bf16.vlgmr.msra.gmra.mrb[68].mxu0 %vm5083_vm3, %v5562_v7  ;;  %7315 = vmatmul.mubr.msk.bf16.vlgmr.msra.gmra.mrb[76].mxu1 %vm5083_vm3, %v5650_v9 }
 0x747   : > { %7320 = vmatprep.mubr.msk.bf16.mxu0 %vm7792_vm0, %v7791_v2 }
 0x811   : > { %v5530_v17 = vpop.f32.mrb[64].mxu0 }
 0x812   : > { %v5536_v19 = vadd.f32 %v5530_v17, %v5478_v0  ;;  %v7298_v20 = vpop.f32.mrb[65].mxu0 }
 0x813   : > { %v5533_v22 = vpop.f32.mrb[66].mxu0 }
 0x814   : > { %v5544_v24 = vadd.f32 %v6374_v18, %v5536_v19  ;;  %v7299_v27 = vpop.f32.mrb[67].mxu0 }
 0x816   : > { %v5545_v2 = vmax.f32 %v5544_v24, 0.0 }
 0x818   : > { %v5553_v30 = vmul.f32 %v6375_v28, %v5545_v2 }
 0x819   : > { %v5644_v35 = vpop.f32.mrb[68].mxu0  ;;  %v5688_v36 = vpop.f32.mrb[76].mxu1 }
 0x81a   : > { %v5561_v31 = vadd.f32 %v6376_v29, %v5553_v30  ;;  %v5645_v37 = vadd.f32 %v5644_v35, %v5601_v10  ;;  %v7310_v38 = vpop.f32.mrb[69].mxu0  ;;  %v7316_v39 = vpop.f32.mrb[77].mxu1 }
 0x81b   : > { %v5647_v40 = vpop.f32.mrb[70].mxu0  ;;  %v5691_v43 = vpop.f32.mrb[78].mxu1 }
 0x81c   : > { %v5696_v32 = vpack.c.bf16 %v5561_v31, %v5561_v31  ;;  %v7311_v45 = vpop.f32.mrb[71].mxu0  ;;  %v5694_v46 = vadd.f32 %v5688_v36, %v5645_v37  ;;  %v7317_v47 = vpop.f32.mrb[79].mxu1 }
 0x81e   : > { %v5701_v33 = vsel %vm5083_vm3, %v5696_v32, 0 }
 0x81f   : > { %7319 = vmatpush3.bf16.xpose.msra.mxu0 %v5701_v33 }
 0x826   : > { %7321 = vmatmul.mubr.msk.bf16.vlgmr.msra.gmra.mrb[72].mxu0 %vm5083_vm3, %v5695_v34 }
 0x8f9   : > { %v5737_v51 = vpop.f32.mrb[72].mxu0 }
 0x8fa   : > { %v5743_v52 = vadd.f32 %v5737_v51, %v5694_v46  ;;  %v7322_v53 = vpop.f32.mrb[73].mxu0 }
 0x8fb   : > { %v5740_v21 = vpop.f32.mrb[74].mxu0 }
 0x8fc   : > { %v5754_v54 = vadd.f32 %v5753_v44, %v5743_v52  ;;  %v7323_v55 = vpop.f32.mrb[75].mxu0 }
 0x8fe   : > { %v5755_v56 = vmax.f32 %v5754_v54, 0.0 }
 0x900   : > { %5757 = vst.msk [vmem:[%s1118_s28] sm:$0x1] %vm5756_vm4, %v5755_v56 }
 0x901   : > { %7703 = shalt.err (!%p7700_p3)
}
 0x902   : > { %s7704_s27 = scalar_lea.hbm %s8796_s2, 16  ;;  %s7708_s22 = scalar_lea.hbm %s7986_s4, 32 }
 0x903   : > { %p7705_p4 = scmp.ne.s32.totalorder %s8796_s2, %s7704_s27  ;;  %p7709_p9 = scmp.lt.u32.totalorder %s8796_s2, %s7986_s4 }
 0x904   : > { %p7710_p10 = scmp.lt.u32.totalorder %s7708_s22, %s7704_s27  ;;  %p7712_p12 = scmp.lt.u32.totalorder %s7704_s27, %s8796_s2 }
 0x905   : > { %p7706_p7 = pnand %p7705_p4, %p8026_p5 }
 0x906   : > { %p7711_p11 = por %p7710_p10, %p7709_p9 }
 0x907   : > { %p7707_p8 = pneg %p7706_p7 }
 0x908   : > { %p7713_p0 = por %p7712_p12, %p7711_p11 }
 0x90a   : > { %p7714_p13 = pnand %p7713_p0, %p7707_p8 }
 0x90c   : > { %7717 = shalt.err (!%p7714_p13)
}
 0x90d   : > { %7464 = dma.vmem_to_hbm [thread:$0]  (%p8026_p5), %s8798_s3, 16, %s8796_s2, %s5759_s5  }
 0x90e PF: > { %p7470_p1 = scmp.ge.s32.totalorder %s7752_s15, 2  ;;  %s5783_s9 = sand.u32 1, %s7740_s7  }
 0x90f   : > { %s5784_s8 = scalar_lea.sflag [#allocation4], %s5783_s9 }
 0x910   : > { %p7467_p2 = pnand %p7470_p1, %p8030_p6 }
 0x912   : > { %7735 = dma.done.wait (!%p7467_p2), %s5784_s8, 16  }
 0x913   : > { %7737 = vsyncadd (!%p7467_p2), %s5784_s8, 4294967280  ;;  %p87_p3 = scmp.ge.s32.totalorder %s8013_s16, 4   ;;  %s8890_s7 = smov %s7744_s10 }
 0x914   : > { %s8891_s10 = smov %s7748_s11  ;;  %s8892_s11 = smov %s8024_s23 }
 0x915   : > { %s8893_s15 = smov %s8013_s16  ;;  %89 = sbr.rel (!%p87_p3) target bundleno = 82 (0x52), region = 286 }
 0x91c   :  { %5788 = vsyncpa [#allocation4], 1 }
 0x91d   :  { %5790 = vsyncpa [#allocation4 + $0x1], 1 }

</bundles_post_ra>
